<compile_context>
chip_gen: v7x
topology: tpu7x:2x2x1
jax: 0.10.0
libtpu: 0.0.40
codegen_flags: <defaults>
</compile_context>

<pallas_src>
import functools

import numpy as np

import jax
import jax.numpy as jnp
from jax import lax
from jax.experimental import pallas as pl
from jax.experimental.pallas import tpu as pltpu

_BN_EPS = 1e-5
_CIN_ALIGN = 16  # bf16 sublane tile -> tap writes into the bf16 col are tile-aligned


def _rup(x, m):
    return (x + m - 1) // m * m


# ----------------------------------------------------------------------------
# In-kernel conv helper
# ----------------------------------------------------------------------------
def _conv3x3(x, m0, m2, pad_ref, col_ref, w_ref, b_ref, *,
             H, W, cin, cin_pad, relu):
    """3x3 'same' conv as one im2col matmul on a channel-major flat frame.

    x       : (cin, H*W) float32 value.
    m0, m2  : (1, H*W) float32 masks zeroing the wrapped left/right column.
    pad_ref : shared (>=cin_pad, H*W + 2W + 2) f32 scratch, margins zero.
    col_ref : shared (>=9*cin_pad, H*W) bf16 scratch.
    w_ref   : (cout, 9*cin_pad) bf16, BN scale folded, tap-major (dy, dx, ci);
              pad-channel columns are zero.
    b_ref   : (cout, 1) f32 shift (bias/BN folded).
    Returns (cout, H*W) float32.
    """
    HW = H * W
    # Frame interior; rows [cin:cin_pad] keep whatever they hold -- their
    # weight columns are zero so they contribute nothing.
    pad_ref[0:cin, W + 1:W + 1 + HW] = x

    # Hoisted mask broadcasts (2 per conv instead of 6 per-tap broadcasts).
    m0b = jnp.broadcast_to(m0, (cin_pad, HW))
    m2b = jnp.broadcast_to(m2, (cin_pad, HW))

    for dy in range(3):
        for dx in range(3):
            start = dy * W + dx          # = W+1 + (dy-1)*W + (dx-1)
            win = pad_ref[0:cin_pad, start:start + HW]
            if dx == 0:
                win = win * m0b
            elif dx == 2:
                win = win * m2b
            tap = dy * 3 + dx
            col_ref[tap * cin_pad:(tap + 1) * cin_pad, :] = (
                win.astype(jnp.bfloat16))

    y = jnp.dot(w_ref[...], col_ref[0:9 * cin_pad, :],
                preferred_element_type=jnp.float32)
    y = y + b_ref[...]
    return jnp.maximum(y, 0.0) if relu else y


# ----------------------------------------------------------------------------
# Fused whole-network kernel (per batch element)
# ----------------------------------------------------------------------------
def _fused_kernel(x1_ref, x2_ref, m_ref,
                  w0o_ref, b0o_ref, w1o_ref, b1o_ref,
                  w0s_ref, b0s_ref, w1s_ref, b1s_ref,
                  wc_ref, bc_ref, wl_ref, bl_ref,
                  o_ref,
                  pad_ref, col_ref,
                  *, H, W, T1, E1, E1P, T2, E2, E2P,
                  C0H, C0HP, C0, C0P, CD, CDP):
    HW = H * W

    # Zero the shared flat-pad scratch once per invocation: this provides the
    # top/bottom 'same' padding margins (never overwritten afterwards) and
    # guarantees pad-channel rows never hold uninitialized VMEM bits.
    pad_ref[...] = jnp.zeros_like(pad_ref)

    m0 = m_ref[0:1, :]   # dx = 0 mask (zero x == 0 columns)
    m2 = m_ref[1:2, :]   # dx = 2 mask (zero x == W-1 columns)

    def conv(x, w_ref, b_ref, cin, cin_pad, relu):
        return _conv3x3(x, m0, m2, pad_ref, col_ref, w_ref, b_ref,
                        H=H, W=W, cin=cin, cin_pad=cin_pad, relu=relu)

    def branch(x_ref, T, e, e_pad, w0, b0, w1, b1):
        acc = jnp.zeros((C0, HW), jnp.float32)
        for t in range(T):                               # static unroll (T small)
            x = x_ref[t].astype(jnp.float32)             # (e, HW)
            h0 = conv(x, w0, b0, e, e_pad, True)         # (C0H, HW)
            h1 = conv(h0, w1, b1, C0H, C0HP, True)       # (C0, HW)
            acc = acc + h1
        return acc * (1.0 / T)                           # one scale at the end

    a1 = branch(x1_ref, T1, E1, E1P, w0o_ref, b0o_ref, w1o_ref, b1o_ref)
    a2 = branch(x2_ref, T2, E2, E2P, w0s_ref, b0s_ref, w1s_ref, b1s_ref)

    hc = conv(a1 + a2, wc_ref, bc_ref, C0, C0P, True)    # Conconv+BN+ReLU
    o_ref[...] = conv(hc, wl_ref, bl_ref, CD, CDP, False)  # classconv


# ----------------------------------------------------------------------------
# Wrapper
# ----------------------------------------------------------------------------
def _make_col_masks(H, W):
    """(2, H*W) masks: row0 zeroes x==0 (dx=0), row1 zeroes x==W-1 (dx=2)."""
    w_idx = np.tile(np.arange(W), H)
    m = np.ones((2, H * W), np.float32)
    m[0, w_idx == 0] = 0.0
    m[1, w_idx == W - 1] = 0.0
    return jnp.asarray(m)


def forward(x1, x2, p):
    """x1: (B, T1, E1, H, W), x2: (B, T2, E2, H, W) -> (B, label_c, H, W)."""
    B, T1, E1, H, W = x1.shape
    _, T2, E2, _, _ = x2.shape
    HW = H * W                      # lane-dense when a multiple of 128
    padw = HW + 2 * W + 2
    masks = _make_col_masks(H, W)

    # NCHW -> channel-major flat layout (free reshape) + bf16 input DMA.
    x1f = x1.reshape(B, T1, E1, HW).astype(jnp.bfloat16)
    x2f = x2.reshape(B, T2, E2, HW).astype(jnp.bfloat16)

    w0o, b0o = p["optic0"]
    w1o, b1o = p["optic1"]
    w0s, b0s = p["sar0"]
    w1s, b1s = p["sar1"]
    wc, bc = p["con"]
    wl, bl = p["cls"]

    C0h, C0, Cd, L = w0o.shape[0], w1o.shape[0], wc.shape[0], wl.shape[0]
    e1p, e2p = w0o.shape[1] // 9, w0s.shape[1] // 9
    c0hp, c0p, cdp = w1o.shape[1] // 9, wc.shape[1] // 9, wl.shape[1] // 9
    cinp_max = max(e1p, e2p, c0hp, c0p, cdp)

    kernel = functools.partial(
        _fused_kernel, H=H, W=W, T1=T1, E1=E1, E1P=e1p, T2=T2, E2=E2, E2P=e2p,
        C0H=C0h, C0HP=c0hp, C0=C0, C0P=c0p, CD=Cd, CDP=cdp)

    # Explicit VMEM budget: double-buffered bf16 inputs + f32 output +
    # shared pad/col scratch + headroom for weights/masks/intermediates.
    vmem_bytes = int(
        2 * (T1 * E1 + T2 * E2) * HW * 2
        + 2 * L * HW * 4
        + cinp_max * padw * 4
        + 9 * cinp_max * HW * 2
        + (4 << 20))
    vmem_limit = min(110 << 20, max(32 << 20, vmem_bytes))

    wparams = [w0o, b0o, w1o, b1o, w0s, b0s, w1s, b1s, wc, bc, wl, bl]
    in_specs = (
        [pl.BlockSpec((None, T1, E1, HW), lambda b: (b, 0, 0, 0)),
         pl.BlockSpec((None, T2, E2, HW), lambda b: (b, 0, 0, 0)),
         pl.BlockSpec((2, HW), lambda b: (0, 0))]
        + [pl.BlockSpec(a.shape, lambda b: (0, 0)) for a in wparams])

    out = pl.pallas_call(
        kernel,
        out_shape=jax.ShapeDtypeStruct((B, L, HW), jnp.float32),
        grid=(B,),
        in_specs=in_specs,
        out_specs=pl.BlockSpec((None, L, HW), lambda b: (b, 0, 0)),
        scratch_shapes=[
            pltpu.VMEM((cinp_max, padw), jnp.float32),      # shared flat-pad
            pltpu.VMEM((9 * cinp_max, HW), jnp.bfloat16),   # shared im2col
        ],
        compiler_params=pltpu.CompilerParams(
            dimension_semantics=("parallel",),
            vmem_limit_bytes=vmem_limit),
    )(x1f, x2f, masks, *wparams)

    return out.reshape(B, L, H, W)                          # NCHW output


# ----------------------------------------------------------------------------
# Parameter construction (deterministic, synthetic); BN scale folded into w,
# input channels zero-padded to a multiple of _CIN_ALIGN in the packed form.
# ----------------------------------------------------------------------------
def _pack_weight(w_folded, cin_pad):
    """(3,3,cin,cout) f32 -> (cout, 9*cin_pad) bf16, tap-major (dy, dx, ci)."""
    _, _, cin, cout = w_folded.shape
    wt = jnp.transpose(w_folded, (3, 0, 1, 2))              # (cout, 3, 3, cin)
    wt = jnp.pad(wt, ((0, 0), (0, 0), (0, 0), (0, cin_pad - cin)))
    return wt.reshape(cout, 9 * cin_pad).astype(jnp.bfloat16)


def _conv_bn_fold(key, cin, cout, cin_pad):
    """conv3x3+bias followed by inference BN -> (packed weight, shift)."""
    kw, kb, kg, kbe, km, kv = jax.random.split(key, 6)
    w = 0.1 * jax.random.normal(kw, (3, 3, cin, cout), jnp.float32)
    bias = 0.1 * jax.random.normal(kb, (cout,), jnp.float32)
    gamma = 1.0 + 0.1 * jax.random.normal(kg, (cout,), jnp.float32)
    beta = 0.1 * jax.random.normal(kbe, (cout,), jnp.float32)
    mean = 0.1 * jax.random.normal(km, (cout,), jnp.float32)
    var = 1.0 + 0.1 * jax.random.uniform(kv, (cout,), jnp.float32)
    scale = gamma * lax.rsqrt(var + _BN_EPS)
    shift = (bias - mean) * scale + beta
    return _pack_weight(w * scale, cin_pad), shift.reshape(cout, 1)


def _conv_only(key, cin, cout, cin_pad):
    """plain conv3x3+bias -> (packed weight, shift=bias)."""
    kw, kb = jax.random.split(key)
    w = 0.1 * jax.random.normal(kw, (3, 3, cin, cout), jnp.float32)
    bias = 0.1 * jax.random.normal(kb, (cout,), jnp.float32)
    return _pack_weight(w, cin_pad), bias.reshape(cout, 1)


def init_params(key, input_c, dims0, dim_weight, label_c):
    keys = jax.random.split(key, 6)
    half = dims0 // 2
    pad = lambda c: _rup(c, _CIN_ALIGN)
    return {
        "optic0": _conv_bn_fold(keys[0], input_c[0], half, pad(input_c[0])),
        "optic1": _conv_bn_fold(keys[1], half, dims0, pad(half)),
        "sar0": _conv_bn_fold(keys[2], input_c[1], half, pad(input_c[1])),
        "sar1": _conv_bn_fold(keys[3], half, dims0, pad(half)),
        "con": _conv_bn_fold(keys[4], dims0, dim_weight, pad(dims0)),
        "cls": _conv_only(keys[5], dim_weight, label_c, pad(dim_weight)),
    }


# ----------------------------------------------------------------------------
# Pure-JAX reference (mirrors the kernel's bf16-operand / f32-accum numerics)
# ----------------------------------------------------------------------------
def _ref_conv(x_nhwc, w2, shift, relu):
    cout, k9 = w2.shape
    cin_pad = k9 // 9
    cin = x_nhwc.shape[-1]
    w_hwio = jnp.transpose(
        w2.astype(jnp.float32).reshape(cout, 3, 3, cin_pad),
        (1, 2, 3, 0))[:, :, :cin, :]
    xq = x_nhwc.astype(jnp.bfloat16).astype(jnp.float32)
    y = lax.conv_general_dilated(
        xq, w_hwio, window_strides=(1, 1), padding="SAME",
        dimension_numbers=("NHWC", "HWIO", "NHWC"),
        precision=lax.Precision.HIGHEST)
    y = y + shift.reshape(1, 1, 1, cout)
    return jnp.maximum(y, 0.0) if relu else y


def forward_ref(x1, x2, p):
    B, T1, E1, H, W = x1.shape
    _, T2, E2, _, _ = x2.shape
    x1f = jnp.transpose(x1.reshape(B * T1, E1, H, W), (0, 2, 3, 1))
    x2f = jnp.transpose(x2.reshape(B * T2, E2, H, W), (0, 2, 3, 1))
    h1 = _ref_conv(x1f, *p["optic0"], True)
    h1 = _ref_conv(h1, *p["optic1"], True)
    h2 = _ref_conv(x2f, *p["sar0"], True)
    h2 = _ref_conv(h2, *p["sar1"], True)
    C0 = h1.shape[-1]
    f1 = h1.reshape(B, T1, H, W, C0)
    f2 = h2.reshape(B, T2, H, W, C0)
    x_sum = jnp.mean(f1, axis=1) + jnp.mean(f2, axis=1)
    x_con = _ref_conv(x_sum, *p["con"], True)
    out = _ref_conv(x_con, *p["cls"], False)
    return jnp.transpose(out, (0, 3, 1, 2))


# ----------------------------------------------------------------------------
if __name__ == "__main__":
    # Small config consistent with the module's __init__ signature.
    B = 2
    T = [3, 3]
    input_c = [4, 4]
    H = W = 16
    leve_dims = [8, 16, 32]
    dim_weight = 16
    label_c = 5

    key = jax.random.PRNGKey(0)
    kp, k1, k2 = jax.random.split(key, 3)
    params = init_params(kp, input_c, leve_dims[0], dim_weight, label_c)

    x1 = jax.random.normal(k1, (B, T[0], input_c[0], H, W), jnp.float32)
    x2 = jax.random.normal(k2, (B, T[1], input_c[1], H, W), jnp.float32)

    out = jax.block_until_ready(jax.jit(forward)(x1, x2, params))
    assert out.shape == (B, label_c, H, W), out.shape

    ref = jax.block_until_ready(forward_ref(x1, x2, params))
    max_err = float(jnp.max(jnp.abs(out - ref)))
    assert jnp.allclose(out, ref, atol=2e-3, rtol=2e-3), max_err

    print("KERNEL_OK")
</pallas_src>

<mosaic_0001>
module attributes {stable_mosaic.version = 11 : i64} {
  func.func @_fused_kernel(%arg0: i32, %arg1: memref<1x3x4x256xbf16, #tpu.memory_space<vmem>>, %arg2: memref<1x3x4x256xbf16, #tpu.memory_space<vmem>>, %arg3: memref<2x256xf32, #tpu.memory_space<vmem>>, %arg4: memref<4x144xbf16, #tpu.memory_space<vmem>>, %arg5: memref<4x1xf32, #tpu.memory_space<vmem>>, %arg6: memref<8x144xbf16, #tpu.memory_space<vmem>>, %arg7: memref<8x1xf32, #tpu.memory_space<vmem>>, %arg8: memref<4x144xbf16, #tpu.memory_space<vmem>>, %arg9: memref<4x1xf32, #tpu.memory_space<vmem>>, %arg10: memref<8x144xbf16, #tpu.memory_space<vmem>>, %arg11: memref<8x1xf32, #tpu.memory_space<vmem>>, %arg12: memref<16x144xbf16, #tpu.memory_space<vmem>>, %arg13: memref<16x1xf32, #tpu.memory_space<vmem>>, %arg14: memref<5x144xbf16, #tpu.memory_space<vmem>>, %arg15: memref<5x1xf32, #tpu.memory_space<vmem>>, %arg16: memref<1x5x256xf32, #tpu.memory_space<vmem>>, %arg17: memref<16x290xf32, #tpu.memory_space<vmem>>, %arg18: memref<144x256xbf16, #tpu.memory_space<vmem>>) attributes {dimension_semantics = [#tpu.dimension_semantics<parallel>], iteration_bounds = array<i64: 2>, scalar_prefetch = 0 : i64, scratch_operands = 2 : i64, tpu.core_type = #tpu.core_type<tc>, window_params = [{transform_indices = @transform_0, window_bounds = array<i64: 1, 3, 4, 256>}, {transform_indices = @transform_1, window_bounds = array<i64: 1, 3, 4, 256>}, {pipeline_mode = #tpu.pipeline_mode<synchronous>, transform_indices = @transform_2, window_bounds = array<i64: 2, 256>}, {pipeline_mode = #tpu.pipeline_mode<synchronous>, transform_indices = @transform_3, window_bounds = array<i64: 4, 144>}, {pipeline_mode = #tpu.pipeline_mode<synchronous>, transform_indices = @transform_4, window_bounds = array<i64: 4, 1>}, {pipeline_mode = #tpu.pipeline_mode<synchronous>, transform_indices = @transform_5, window_bounds = array<i64: 8, 144>}, {pipeline_mode = #tpu.pipeline_mode<synchronous>, transform_indices = @transform_6, window_bounds = array<i64: 8, 1>}, {pipeline_mode = #tpu.pipeline_mode<synchronous>, transform_indices = @transform_7, window_bounds = array<i64: 4, 144>}, {pipeline_mode = #tpu.pipeline_mode<synchronous>, transform_indices = @transform_8, window_bounds = array<i64: 4, 1>}, {pipeline_mode = #tpu.pipeline_mode<synchronous>, transform_indices = @transform_9, window_bounds = array<i64: 8, 144>}, {pipeline_mode = #tpu.pipeline_mode<synchronous>, transform_indices = @transform_10, window_bounds = array<i64: 8, 1>}, {pipeline_mode = #tpu.pipeline_mode<synchronous>, transform_indices = @transform_11, window_bounds = array<i64: 16, 144>}, {pipeline_mode = #tpu.pipeline_mode<synchronous>, transform_indices = @transform_12, window_bounds = array<i64: 16, 1>}, {pipeline_mode = #tpu.pipeline_mode<synchronous>, transform_indices = @transform_13, window_bounds = array<i64: 5, 144>}, {pipeline_mode = #tpu.pipeline_mode<synchronous>, transform_indices = @transform_14, window_bounds = array<i64: 5, 1>}, {transform_indices = @transform_15, window_bounds = array<i64: 1, 5, 256>}]} {
    %cst = arith.constant 0.000000e+00 : f32
    %0 = vector.broadcast %cst : f32 to vector<16x290xf32>
    %c0 = arith.constant 0 : index
    %c0_0 = arith.constant 0 : index
    %1 = vector.load %arg17[%c0, %c0_0] : memref<16x290xf32, #tpu.memory_space<vmem>>, vector<16x290xf32>
    tpu.vector_store %arg17[%c0, %c0_0], %0 {strides = array<i32>} : memref<16x290xf32, #tpu.memory_space<vmem>>, vector<16x290xf32>,
    %c0_1 = arith.constant 0 : index
    %c0_2 = arith.constant 0 : index
    %2 = vector.load %arg3[%c0_1, %c0_2] : memref<2x256xf32, #tpu.memory_space<vmem>>, vector<1x256xf32>
    %c1 = arith.constant 1 : index
    %c0_3 = arith.constant 0 : index
    %3 = vector.load %arg3[%c1, %c0_3] : memref<2x256xf32, #tpu.memory_space<vmem>>, vector<1x256xf32>
    %cst_4 = arith.constant 0.000000e+00 : f32
    %4 = vector.broadcast %cst_4 : f32 to vector<8x256xf32>
    %c0_5 = arith.constant 0 : index
    %c0_6 = arith.constant 0 : index
    %c0_7 = arith.constant 0 : index
    %c0_8 = arith.constant 0 : index
    %5 = vector.load %arg1[%c0_5, %c0_6, %c0_7, %c0_8] : memref<1x3x4x256xbf16, #tpu.memory_space<vmem>>, vector<1x1x4x256xbf16>
    %6 = vector.shape_cast %5 : vector<1x1x4x256xbf16> to vector<4x256xbf16>
    %7 = arith.extf %6 : vector<4x256xbf16> to vector<4x256xf32>
    %c0_9 = arith.constant 0 : index
    %c17 = arith.constant 17 : index
    %8 = vector.load %arg17[%c0_9, %c17] : memref<16x290xf32, #tpu.memory_space<vmem>>, vector<4x256xf32>
    tpu.vector_store %arg17[%c0_9, %c17], %7 {strides = array<i32>} : memref<16x290xf32, #tpu.memory_space<vmem>>, vector<4x256xf32>,
    %9 = vector.shape_cast %2 : vector<1x256xf32> to vector<1x256xf32>
    %10 = vector.broadcast %9 : vector<1x256xf32> to vector<16x256xf32>
    %11 = vector.shape_cast %3 : vector<1x256xf32> to vector<1x256xf32>
    %12 = vector.broadcast %11 : vector<1x256xf32> to vector<16x256xf32>
    %c0_10 = arith.constant 0 : index
    %c0_11 = arith.constant 0 : index
    %13 = vector.load %arg17[%c0_10, %c0_11] : memref<16x290xf32, #tpu.memory_space<vmem>>, vector<16x256xf32>
    %14 = arith.mulf %13, %10 : vector<16x256xf32>
    %15 = arith.truncf %14 : vector<16x256xf32> to vector<16x256xbf16>
    %c0_12 = arith.constant 0 : index
    %c0_13 = arith.constant 0 : index
    %16 = vector.load %arg18[%c0_12, %c0_13] : memref<144x256xbf16, #tpu.memory_space<vmem>>, vector<16x256xbf16>
    tpu.vector_store %arg18[%c0_12, %c0_13], %15 {strides = array<i32>} : memref<144x256xbf16, #tpu.memory_space<vmem>>, vector<16x256xbf16>,
    %c0_14 = arith.constant 0 : index
    %c1_15 = arith.constant 1 : index
    %17 = vector.load %arg17[%c0_14, %c1_15] : memref<16x290xf32, #tpu.memory_space<vmem>>, vector<16x256xf32>
    %18 = arith.truncf %17 : vector<16x256xf32> to vector<16x256xbf16>
    %c16 = arith.constant 16 : index
    %c0_16 = arith.constant 0 : index
    %19 = vector.load %arg18[%c16, %c0_16] : memref<144x256xbf16, #tpu.memory_space<vmem>>, vector<16x256xbf16>
    tpu.vector_store %arg18[%c16, %c0_16], %18 {strides = array<i32>} : memref<144x256xbf16, #tpu.memory_space<vmem>>, vector<16x256xbf16>,
    %c0_17 = arith.constant 0 : index
    %c2 = arith.constant 2 : index
    %20 = vector.load %arg17[%c0_17, %c2] : memref<16x290xf32, #tpu.memory_space<vmem>>, vector<16x256xf32>
    %21 = arith.mulf %20, %12 : vector<16x256xf32>
    %22 = arith.truncf %21 : vector<16x256xf32> to vector<16x256xbf16>
    %c32 = arith.constant 32 : index
    %c0_18 = arith.constant 0 : index
    %23 = vector.load %arg18[%c32, %c0_18] : memref<144x256xbf16, #tpu.memory_space<vmem>>, vector<16x256xbf16>
    tpu.vector_store %arg18[%c32, %c0_18], %22 {strides = array<i32>} : memref<144x256xbf16, #tpu.memory_space<vmem>>, vector<16x256xbf16>,
    %c0_19 = arith.constant 0 : index
    %c16_20 = arith.constant 16 : index
    %24 = vector.load %arg17[%c0_19, %c16_20] : memref<16x290xf32, #tpu.memory_space<vmem>>, vector<16x256xf32>
    %25 = arith.mulf %24, %10 : vector<16x256xf32>
    %26 = arith.truncf %25 : vector<16x256xf32> to vector<16x256xbf16>
    %c48 = arith.constant 48 : index
    %c0_21 = arith.constant 0 : index
    %27 = vector.load %arg18[%c48, %c0_21] : memref<144x256xbf16, #tpu.memory_space<vmem>>, vector<16x256xbf16>
    tpu.vector_store %arg18[%c48, %c0_21], %26 {strides = array<i32>} : memref<144x256xbf16, #tpu.memory_space<vmem>>, vector<16x256xbf16>,
    %c0_22 = arith.constant 0 : index
    %c17_23 = arith.constant 17 : index
    %28 = vector.load %arg17[%c0_22, %c17_23] : memref<16x290xf32, #tpu.memory_space<vmem>>, vector<16x256xf32>
    %29 = arith.truncf %28 : vector<16x256xf32> to vector<16x256xbf16>
    %c64 = arith.constant 64 : index
    %c0_24 = arith.constant 0 : index
    %30 = vector.load %arg18[%c64, %c0_24] : memref<144x256xbf16, #tpu.memory_space<vmem>>, vector<16x256xbf16>
    tpu.vector_store %arg18[%c64, %c0_24], %29 {strides = array<i32>} : memref<144x256xbf16, #tpu.memory_space<vmem>>, vector<16x256xbf16>,
    %c0_25 = arith.constant 0 : index
    %c18 = arith.constant 18 : index
    %31 = vector.load %arg17[%c0_25, %c18] : memref<16x290xf32, #tpu.memory_space<vmem>>, vector<16x256xf32>
    %32 = arith.mulf %31, %12 : vector<16x256xf32>
    %33 = arith.truncf %32 : vector<16x256xf32> to vector<16x256xbf16>
    %c80 = arith.constant 80 : index
    %c0_26 = arith.constant 0 : index
    %34 = vector.load %arg18[%c80, %c0_26] : memref<144x256xbf16, #tpu.memory_space<vmem>>, vector<16x256xbf16>
    tpu.vector_store %arg18[%c80, %c0_26], %33 {strides = array<i32>} : memref<144x256xbf16, #tpu.memory_space<vmem>>, vector<16x256xbf16>,
    %c0_27 = arith.constant 0 : index
    %c32_28 = arith.constant 32 : index
    %35 = vector.load %arg17[%c0_27, %c32_28] : memref<16x290xf32, #tpu.memory_space<vmem>>, vector<16x256xf32>
    %36 = arith.mulf %35, %10 : vector<16x256xf32>
    %37 = arith.truncf %36 : vector<16x256xf32> to vector<16x256xbf16>
    %c96 = arith.constant 96 : index
    %c0_29 = arith.constant 0 : index
    %38 = vector.load %arg18[%c96, %c0_29] : memref<144x256xbf16, #tpu.memory_space<vmem>>, vector<16x256xbf16>
    tpu.vector_store %arg18[%c96, %c0_29], %37 {strides = array<i32>} : memref<144x256xbf16, #tpu.memory_space<vmem>>, vector<16x256xbf16>,
    %c0_30 = arith.constant 0 : index
    %c33 = arith.constant 33 : index
    %39 = vector.load %arg17[%c0_30, %c33] : memref<16x290xf32, #tpu.memory_space<vmem>>, vector<16x256xf32>
    %40 = arith.truncf %39 : vector<16x256xf32> to vector<16x256xbf16>
    %c112 = arith.constant 112 : index
    %c0_31 = arith.constant 0 : index
    %41 = vector.load %arg18[%c112, %c0_31] : memref<144x256xbf16, #tpu.memory_space<vmem>>, vector<16x256xbf16>
    tpu.vector_store %arg18[%c112, %c0_31], %40 {strides = array<i32>} : memref<144x256xbf16, #tpu.memory_space<vmem>>, vector<16x256xbf16>,
    %c0_32 = arith.constant 0 : index
    %c34 = arith.constant 34 : index
    %42 = vector.load %arg17[%c0_32, %c34] : memref<16x290xf32, #tpu.memory_space<vmem>>, vector<16x256xf32>
    %43 = arith.mulf %42, %12 : vector<16x256xf32>
    %44 = arith.truncf %43 : vector<16x256xf32> to vector<16x256xbf16>
    %c128 = arith.constant 128 : index
    %c0_33 = arith.constant 0 : index
    %45 = vector.load %arg18[%c128, %c0_33] : memref<144x256xbf16, #tpu.memory_space<vmem>>, vector<16x256xbf16>
    tpu.vector_store %arg18[%c128, %c0_33], %44 {strides = array<i32>} : memref<144x256xbf16, #tpu.memory_space<vmem>>, vector<16x256xbf16>,
    %c0_34 = arith.constant 0 : index
    %c0_35 = arith.constant 0 : index
    %46 = vector.load %arg4[%c0_34, %c0_35] : memref<4x144xbf16, #tpu.memory_space<vmem>>, vector<4x144xbf16>
    %c0_36 = arith.constant 0 : index
    %c0_37 = arith.constant 0 : index
    %47 = vector.load %arg18[%c0_36, %c0_37] : memref<144x256xbf16, #tpu.memory_space<vmem>>, vector<144x256xbf16>
    %cst_38 = arith.constant dense<0.000000e+00> : vector<4x256xf32>
    %48 = tpu.matmul %46, %47, %cst_38 {dimension_numbers = #tpu.dot_dimension_numbers<[1], [0], [0], [1], [0, 0, 1, 1], [], []>} : vector<4x144xbf16>, vector<144x256xbf16>, vector<4x256xf32> -> vector<4x256xf32>
    %c0_39 = arith.constant 0 : index
    %c0_40 = arith.constant 0 : index
    %49 = vector.load %arg5[%c0_39, %c0_40] : memref<4x1xf32, #tpu.memory_space<vmem>>, vector<4x1xf32>
    %50 = vector.broadcast %49 : vector<4x1xf32> to vector<4x256xf32>
    %51 = arith.addf %48, %50 : vector<4x256xf32>
    %cst_41 = arith.constant 0.000000e+00 : f32
    %52 = vector.broadcast %cst_41 : f32 to vector<4x256xf32>
    %53 = arith.maximumf %51, %52 : vector<4x256xf32>
    %c0_42 = arith.constant 0 : index
    %c17_43 = arith.constant 17 : index
    %54 = vector.load %arg17[%c0_42, %c17_43] : memref<16x290xf32, #tpu.memory_space<vmem>>, vector<4x256xf32>
    tpu.vector_store %arg17[%c0_42, %c17_43], %53 {strides = array<i32>} : memref<16x290xf32, #tpu.memory_space<vmem>>, vector<4x256xf32>,
    %55 = vector.shape_cast %2 : vector<1x256xf32> to vector<1x256xf32>
    %56 = vector.broadcast %55 : vector<1x256xf32> to vector<16x256xf32>
    %57 = vector.shape_cast %3 : vector<1x256xf32> to vector<1x256xf32>
    %58 = vector.broadcast %57 : vector<1x256xf32> to vector<16x256xf32>
    %c0_44 = arith.constant 0 : index
    %c0_45 = arith.constant 0 : index
    %59 = vector.load %arg17[%c0_44, %c0_45] : memref<16x290xf32, #tpu.memory_space<vmem>>, vector<16x256xf32>
    %60 = arith.mulf %59, %56 : vector<16x256xf32>
    %61 = arith.truncf %60 : vector<16x256xf32> to vector<16x256xbf16>
    %c0_46 = arith.constant 0 : index
    %c0_47 = arith.constant 0 : index
    %62 = vector.load %arg18[%c0_46, %c0_47] : memref<144x256xbf16, #tpu.memory_space<vmem>>, vector<16x256xbf16>
    tpu.vector_store %arg18[%c0_46, %c0_47], %61 {strides = array<i32>} : memref<144x256xbf16, #tpu.memory_space<vmem>>, vector<16x256xbf16>,
    %c0_48 = arith.constant 0 : index
    %c1_49 = arith.constant 1 : index
    %63 = vector.load %arg17[%c0_48, %c1_49] : memref<16x290xf32, #tpu.memory_space<vmem>>, vector<16x256xf32>
    %64 = arith.truncf %63 : vector<16x256xf32> to vector<16x256xbf16>
    %c16_50 = arith.constant 16 : index
    %c0_51 = arith.constant 0 : index
    %65 = vector.load %arg18[%c16_50, %c0_51] : memref<144x256xbf16, #tpu.memory_space<vmem>>, vector<16x256xbf16>
    tpu.vector_store %arg18[%c16_50, %c0_51], %64 {strides = array<i32>} : memref<144x256xbf16, #tpu.memory_space<vmem>>, vector<16x256xbf16>,
    %c0_52 = arith.constant 0 : index
    %c2_53 = arith.constant 2 : index
    %66 = vector.load %arg17[%c0_52, %c2_53] : memref<16x290xf32, #tpu.memory_space<vmem>>, vector<16x256xf32>
    %67 = arith.mulf %66, %58 : vector<16x256xf32>
    %68 = arith.truncf %67 : vector<16x256xf32> to vector<16x256xbf16>
    %c32_54 = arith.constant 32 : index
    %c0_55 = arith.constant 0 : index
    %69 = vector.load %arg18[%c32_54, %c0_55] : memref<144x256xbf16, #tpu.memory_space<vmem>>, vector<16x256xbf16>
    tpu.vector_store %arg18[%c32_54, %c0_55], %68 {strides = array<i32>} : memref<144x256xbf16, #tpu.memory_space<vmem>>, vector<16x256xbf16>,
    %c0_56 = arith.constant 0 : index
    %c16_57 = arith.constant 16 : index
    %70 = vector.load %arg17[%c0_56, %c16_57] : memref<16x290xf32, #tpu.memory_space<vmem>>, vector<16x256xf32>
    %71 = arith.mulf %70, %56 : vector<16x256xf32>
    %72 = arith.truncf %71 : vector<16x256xf32> to vector<16x256xbf16>
    %c48_58 = arith.constant 48 : index
    %c0_59 = arith.constant 0 : index
    %73 = vector.load %arg18[%c48_58, %c0_59] : memref<144x256xbf16, #tpu.memory_space<vmem>>, vector<16x256xbf16>
    tpu.vector_store %arg18[%c48_58, %c0_59], %72 {strides = array<i32>} : memref<144x256xbf16, #tpu.memory_space<vmem>>, vector<16x256xbf16>,
    %c0_60 = arith.constant 0 : index
    %c17_61 = arith.constant 17 : index
    %74 = vector.load %arg17[%c0_60, %c17_61] : memref<16x290xf32, #tpu.memory_space<vmem>>, vector<16x256xf32>
    %75 = arith.truncf %74 : vector<16x256xf32> to vector<16x256xbf16>
    %c64_62 = arith.constant 64 : index
    %c0_63 = arith.constant 0 : index
    %76 = vector.load %arg18[%c64_62, %c0_63] : memref<144x256xbf16, #tpu.memory_space<vmem>>, vector<16x256xbf16>
    tpu.vector_store %arg18[%c64_62, %c0_63], %75 {strides = array<i32>} : memref<144x256xbf16, #tpu.memory_space<vmem>>, vector<16x256xbf16>,
    %c0_64 = arith.constant 0 : index
    %c18_65 = arith.constant 18 : index
    %77 = vector.load %arg17[%c0_64, %c18_65] : memref<16x290xf32, #tpu.memory_space<vmem>>, vector<16x256xf32>
    %78 = arith.mulf %77, %58 : vector<16x256xf32>
    %79 = arith.truncf %78 : vector<16x256xf32> to vector<16x256xbf16>
    %c80_66 = arith.constant 80 : index
    %c0_67 = arith.constant 0 : index
    %80 = vector.load %arg18[%c80_66, %c0_67] : memref<144x256xbf16, #tpu.memory_space<vmem>>, vector<16x256xbf16>
    tpu.vector_store %arg18[%c80_66, %c0_67], %79 {strides = array<i32>} : memref<144x256xbf16, #tpu.memory_space<vmem>>, vector<16x256xbf16>,
    %c0_68 = arith.constant 0 : index
    %c32_69 = arith.constant 32 : index
    %81 = vector.load %arg17[%c0_68, %c32_69] : memref<16x290xf32, #tpu.memory_space<vmem>>, vector<16x256xf32>
    %82 = arith.mulf %81, %56 : vector<16x256xf32>
    %83 = arith.truncf %82 : vector<16x256xf32> to vector<16x256xbf16>
    %c96_70 = arith.constant 96 : index
    %c0_71 = arith.constant 0 : index
    %84 = vector.load %arg18[%c96_70, %c0_71] : memref<144x256xbf16, #tpu.memory_space<vmem>>, vector<16x256xbf16>
    tpu.vector_store %arg18[%c96_70, %c0_71], %83 {strides = array<i32>} : memref<144x256xbf16, #tpu.memory_space<vmem>>, vector<16x256xbf16>,
    %c0_72 = arith.constant 0 : index
    %c33_73 = arith.constant 33 : index
    %85 = vector.load %arg17[%c0_72, %c33_73] : memref<16x290xf32, #tpu.memory_space<vmem>>, vector<16x256xf32>
    %86 = arith.truncf %85 : vector<16x256xf32> to vector<16x256xbf16>
    %c112_74 = arith.constant 112 : index
    %c0_75 = arith.constant 0 : index
    %87 = vector.load %arg18[%c112_74, %c0_75] : memref<144x256xbf16, #tpu.memory_space<vmem>>, vector<16x256xbf16>
    tpu.vector_store %arg18[%c112_74, %c0_75], %86 {strides = array<i32>} : memref<144x256xbf16, #tpu.memory_space<vmem>>, vector<16x256xbf16>,
    %c0_76 = arith.constant 0 : index
    %c34_77 = arith.constant 34 : index
    %88 = vector.load %arg17[%c0_76, %c34_77] : memref<16x290xf32, #tpu.memory_space<vmem>>, vector<16x256xf32>
    %89 = arith.mulf %88, %58 : vector<16x256xf32>
    %90 = arith.truncf %89 : vector<16x256xf32> to vector<16x256xbf16>
    %c128_78 = arith.constant 128 : index
    %c0_79 = arith.constant 0 : index
    %91 = vector.load %arg18[%c128_78, %c0_79] : memref<144x256xbf16, #tpu.memory_space<vmem>>, vector<16x256xbf16>
    tpu.vector_store %arg18[%c128_78, %c0_79], %90 {strides = array<i32>} : memref<144x256xbf16, #tpu.memory_space<vmem>>, vector<16x256xbf16>,
    %c0_80 = arith.constant 0 : index
    %c0_81 = arith.constant 0 : index
    %92 = vector.load %arg6[%c0_80, %c0_81] : memref<8x144xbf16, #tpu.memory_space<vmem>>, vector<8x144xbf16>
    %c0_82 = arith.constant 0 : index
    %c0_83 = arith.constant 0 : index
    %93 = vector.load %arg18[%c0_82, %c0_83] : memref<144x256xbf16, #tpu.memory_space<vmem>>, vector<144x256xbf16>
    %cst_84 = arith.constant dense<0.000000e+00> : vector<8x256xf32>
    %94 = tpu.matmul %92, %93, %cst_84 {dimension_numbers = #tpu.dot_dimension_numbers<[1], [0], [0], [1], [0, 0, 1, 1], [], []>} : vector<8x144xbf16>, vector<144x256xbf16>, vector<8x256xf32> -> vector<8x256xf32>
    %c0_85 = arith.constant 0 : index
    %c0_86 = arith.constant 0 : index
    %95 = vector.load %arg7[%c0_85, %c0_86] : memref<8x1xf32, #tpu.memory_space<vmem>>, vector<8x1xf32>
    %96 = vector.broadcast %95 : vector<8x1xf32> to vector<8x256xf32>
    %97 = arith.addf %94, %96 : vector<8x256xf32>
    %cst_87 = arith.constant 0.000000e+00 : f32
    %98 = vector.broadcast %cst_87 : f32 to vector<8x256xf32>
    %99 = arith.maximumf %97, %98 : vector<8x256xf32>
    %100 = arith.addf %4, %99 : vector<8x256xf32>
    %c0_88 = arith.constant 0 : index
    %c1_89 = arith.constant 1 : index
    %c0_90 = arith.constant 0 : index
    %c0_91 = arith.constant 0 : index
    %101 = vector.load %arg1[%c0_88, %c1_89, %c0_90, %c0_91] : memref<1x3x4x256xbf16, #tpu.memory_space<vmem>>, vector<1x1x4x256xbf16>
    %102 = vector.shape_cast %101 : vector<1x1x4x256xbf16> to vector<4x256xbf16>
    %103 = arith.extf %102 : vector<4x256xbf16> to vector<4x256xf32>
    %c0_92 = arith.constant 0 : index
    %c17_93 = arith.constant 17 : index
    %104 = vector.load %arg17[%c0_92, %c17_93] : memref<16x290xf32, #tpu.memory_space<vmem>>, vector<4x256xf32>
    tpu.vector_store %arg17[%c0_92, %c17_93], %103 {strides = array<i32>} : memref<16x290xf32, #tpu.memory_space<vmem>>, vector<4x256xf32>,
    %105 = vector.shape_cast %2 : vector<1x256xf32> to vector<1x256xf32>
    %106 = vector.broadcast %105 : vector<1x256xf32> to vector<16x256xf32>
    %107 = vector.shape_cast %3 : vector<1x256xf32> to vector<1x256xf32>
    %108 = vector.broadcast %107 : vector<1x256xf32> to vector<16x256xf32>
    %c0_94 = arith.constant 0 : index
    %c0_95 = arith.constant 0 : index
    %109 = vector.load %arg17[%c0_94, %c0_95] : memref<16x290xf32, #tpu.memory_space<vmem>>, vector<16x256xf32>
    %110 = arith.mulf %109, %106 : vector<16x256xf32>
    %111 = arith.truncf %110 : vector<16x256xf32> to vector<16x256xbf16>
    %c0_96 = arith.constant 0 : index
    %c0_97 = arith.constant 0 : index
    %112 = vector.load %arg18[%c0_96, %c0_97] : memref<144x256xbf16, #tpu.memory_space<vmem>>, vector<16x256xbf16>
    tpu.vector_store %arg18[%c0_96, %c0_97], %111 {strides = array<i32>} : memref<144x256xbf16, #tpu.memory_space<vmem>>, vector<16x256xbf16>,
    %c0_98 = arith.constant 0 : index
    %c1_99 = arith.constant 1 : index
    %113 = vector.load %arg17[%c0_98, %c1_99] : memref<16x290xf32, #tpu.memory_space<vmem>>, vector<16x256xf32>
    %114 = arith.truncf %113 : vector<16x256xf32> to vector<16x256xbf16>
    %c16_100 = arith.constant 16 : index
    %c0_101 = arith.constant 0 : index
    %115 = vector.load %arg18[%c16_100, %c0_101] : memref<144x256xbf16, #tpu.memory_space<vmem>>, vector<16x256xbf16>
    tpu.vector_store %arg18[%c16_100, %c0_101], %114 {strides = array<i32>} : memref<144x256xbf16, #tpu.memory_space<vmem>>, vector<16x256xbf16>,
    %c0_102 = arith.constant 0 : index
    %c2_103 = arith.constant 2 : index
    %116 = vector.load %arg17[%c0_102, %c2_103] : memref<16x290xf32, #tpu.memory_space<vmem>>, vector<16x256xf32>
    %117 = arith.mulf %116, %108 : vector<16x256xf32>
    %118 = arith.truncf %117 : vector<16x256xf32> to vector<16x256xbf16>
    %c32_104 = arith.constant 32 : index
    %c0_105 = arith.constant 0 : index
    %119 = vector.load %arg18[%c32_104, %c0_105] : memref<144x256xbf16, #tpu.memory_space<vmem>>, vector<16x256xbf16>
    tpu.vector_store %arg18[%c32_104, %c0_105], %118 {strides = array<i32>} : memref<144x256xbf16, #tpu.memory_space<vmem>>, vector<16x256xbf16>,
    %c0_106 = arith.constant 0 : index
    %c16_107 = arith.constant 16 : index
    %120 = vector.load %arg17[%c0_106, %c16_107] : memref<16x290xf32, #tpu.memory_space<vmem>>, vector<16x256xf32>
    %121 = arith.mulf %120, %106 : vector<16x256xf32>
    %122 = arith.truncf %121 : vector<16x256xf32> to vector<16x256xbf16>
    %c48_108 = arith.constant 48 : index
    %c0_109 = arith.constant 0 : index
    %123 = vector.load %arg18[%c48_108, %c0_109] : memref<144x256xbf16, #tpu.memory_space<vmem>>, vector<16x256xbf16>
    tpu.vector_store %arg18[%c48_108, %c0_109], %122 {strides = array<i32>} : memref<144x256xbf16, #tpu.memory_space<vmem>>, vector<16x256xbf16>,
    %c0_110 = arith.constant 0 : index
    %c17_111 = arith.constant 17 : index
    %124 = vector.load %arg17[%c0_110, %c17_111] : memref<16x290xf32, #tpu.memory_space<vmem>>, vector<16x256xf32>
    %125 = arith.truncf %124 : vector<16x256xf32> to vector<16x256xbf16>
    %c64_112 = arith.constant 64 : index
    %c0_113 = arith.constant 0 : index
    %126 = vector.load %arg18[%c64_112, %c0_113] : memref<144x256xbf16, #tpu.memory_space<vmem>>, vector<16x256xbf16>
    tpu.vector_store %arg18[%c64_112, %c0_113], %125 {strides = array<i32>} : memref<144x256xbf16, #tpu.memory_space<vmem>>, vector<16x256xbf16>,
    %c0_114 = arith.constant 0 : index
    %c18_115 = arith.constant 18 : index
    %127 = vector.load %arg17[%c0_114, %c18_115] : memref<16x290xf32, #tpu.memory_space<vmem>>, vector<16x256xf32>
    %128 = arith.mulf %127, %108 : vector<16x256xf32>
    %129 = arith.truncf %128 : vector<16x256xf32> to vector<16x256xbf16>
    %c80_116 = arith.constant 80 : index
    %c0_117 = arith.constant 0 : index
    %130 = vector.load %arg18[%c80_116, %c0_117] : memref<144x256xbf16, #tpu.memory_space<vmem>>, vector<16x256xbf16>
    tpu.vector_store %arg18[%c80_116, %c0_117], %129 {strides = array<i32>} : memref<144x256xbf16, #tpu.memory_space<vmem>>, vector<16x256xbf16>,
    %c0_118 = arith.constant 0 : index
    %c32_119 = arith.constant 32 : index
    %131 = vector.load %arg17[%c0_118, %c32_119] : memref<16x290xf32, #tpu.memory_space<vmem>>, vector<16x256xf32>
    %132 = arith.mulf %131, %106 : vector<16x256xf32>
    %133 = arith.truncf %132 : vector<16x256xf32> to vector<16x256xbf16>
    %c96_120 = arith.constant 96 : index
    %c0_121 = arith.constant 0 : index
    %134 = vector.load %arg18[%c96_120, %c0_121] : memref<144x256xbf16, #tpu.memory_space<vmem>>, vector<16x256xbf16>
    tpu.vector_store %arg18[%c96_120, %c0_121], %133 {strides = array<i32>} : memref<144x256xbf16, #tpu.memory_space<vmem>>, vector<16x256xbf16>,
    %c0_122 = arith.constant 0 : index
    %c33_123 = arith.constant 33 : index
    %135 = vector.load %arg17[%c0_122, %c33_123] : memref<16x290xf32, #tpu.memory_space<vmem>>, vector<16x256xf32>
    %136 = arith.truncf %135 : vector<16x256xf32> to vector<16x256xbf16>
    %c112_124 = arith.constant 112 : index
    %c0_125 = arith.constant 0 : index
    %137 = vector.load %arg18[%c112_124, %c0_125] : memref<144x256xbf16, #tpu.memory_space<vmem>>, vector<16x256xbf16>
    tpu.vector_store %arg18[%c112_124, %c0_125], %136 {strides = array<i32>} : memref<144x256xbf16, #tpu.memory_space<vmem>>, vector<16x256xbf16>,
    %c0_126 = arith.constant 0 : index
    %c34_127 = arith.constant 34 : index
    %138 = vector.load %arg17[%c0_126, %c34_127] : memref<16x290xf32, #tpu.memory_space<vmem>>, vector<16x256xf32>
    %139 = arith.mulf %138, %108 : vector<16x256xf32>
    %140 = arith.truncf %139 : vector<16x256xf32> to vector<16x256xbf16>
    %c128_128 = arith.constant 128 : index
    %c0_129 = arith.constant 0 : index
    %141 = vector.load %arg18[%c128_128, %c0_129] : memref<144x256xbf16, #tpu.memory_space<vmem>>, vector<16x256xbf16>
    tpu.vector_store %arg18[%c128_128, %c0_129], %140 {strides = array<i32>} : memref<144x256xbf16, #tpu.memory_space<vmem>>, vector<16x256xbf16>,
    %c0_130 = arith.constant 0 : index
    %c0_131 = arith.constant 0 : index
    %142 = vector.load %arg4[%c0_130, %c0_131] : memref<4x144xbf16, #tpu.memory_space<vmem>>, vector<4x144xbf16>
    %c0_132 = arith.constant 0 : index
    %c0_133 = arith.constant 0 : index
    %143 = vector.load %arg18[%c0_132, %c0_133] : memref<144x256xbf16, #tpu.memory_space<vmem>>, vector<144x256xbf16>
    %cst_134 = arith.constant dense<0.000000e+00> : vector<4x256xf32>
    %144 = tpu.matmul %142, %143, %cst_134 {dimension_numbers = #tpu.dot_dimension_numbers<[1], [0], [0], [1], [0, 0, 1, 1], [], []>} : vector<4x144xbf16>, vector<144x256xbf16>, vector<4x256xf32> -> vector<4x256xf32>
    %c0_135 = arith.constant 0 : index
    %c0_136 = arith.constant 0 : index
    %145 = vector.load %arg5[%c0_135, %c0_136] : memref<4x1xf32, #tpu.memory_space<vmem>>, vector<4x1xf32>
    %146 = vector.broadcast %145 : vector<4x1xf32> to vector<4x256xf32>
    %147 = arith.addf %144, %146 : vector<4x256xf32>
    %cst_137 = arith.constant 0.000000e+00 : f32
    %148 = vector.broadcast %cst_137 : f32 to vector<4x256xf32>
    %149 = arith.maximumf %147, %148 : vector<4x256xf32>
    %c0_138 = arith.constant 0 : index
    %c17_139 = arith.constant 17 : index
    %150 = vector.load %arg17[%c0_138, %c17_139] : memref<16x290xf32, #tpu.memory_space<vmem>>, vector<4x256xf32>
    tpu.vector_store %arg17[%c0_138, %c17_139], %149 {strides = array<i32>} : memref<16x290xf32, #tpu.memory_space<vmem>>, vector<4x256xf32>,
    %151 = vector.shape_cast %2 : vector<1x256xf32> to vector<1x256xf32>
    %152 = vector.broadcast %151 : vector<1x256xf32> to vector<16x256xf32>
    %153 = vector.shape_cast %3 : vector<1x256xf32> to vector<1x256xf32>
    %154 = vector.broadcast %153 : vector<1x256xf32> to vector<16x256xf32>
    %c0_140 = arith.constant 0 : index
    %c0_141 = arith.constant 0 : index
    %155 = vector.load %arg17[%c0_140, %c0_141] : memref<16x290xf32, #tpu.memory_space<vmem>>, vector<16x256xf32>
    %156 = arith.mulf %155, %152 : vector<16x256xf32>
    %157 = arith.truncf %156 : vector<16x256xf32> to vector<16x256xbf16>
    %c0_142 = arith.constant 0 : index
    %c0_143 = arith.constant 0 : index
    %158 = vector.load %arg18[%c0_142, %c0_143] : memref<144x256xbf16, #tpu.memory_space<vmem>>, vector<16x256xbf16>
    tpu.vector_store %arg18[%c0_142, %c0_143], %157 {strides = array<i32>} : memref<144x256xbf16, #tpu.memory_space<vmem>>, vector<16x256xbf16>,
    %c0_144 = arith.constant 0 : index
    %c1_145 = arith.constant 1 : index
    %159 = vector.load %arg17[%c0_144, %c1_145] : memref<16x290xf32, #tpu.memory_space<vmem>>, vector<16x256xf32>
    %160 = arith.truncf %159 : vector<16x256xf32> to vector<16x256xbf16>
    %c16_146 = arith.constant 16 : index
    %c0_147 = arith.constant 0 : index
    %161 = vector.load %arg18[%c16_146, %c0_147] : memref<144x256xbf16, #tpu.memory_space<vmem>>, vector<16x256xbf16>
    tpu.vector_store %arg18[%c16_146, %c0_147], %160 {strides = array<i32>} : memref<144x256xbf16, #tpu.memory_space<vmem>>, vector<16x256xbf16>,
    %c0_148 = arith.constant 0 : index
    %c2_149 = arith.constant 2 : index
    %162 = vector.load %arg17[%c0_148, %c2_149] : memref<16x290xf32, #tpu.memory_space<vmem>>, vector<16x256xf32>
    %163 = arith.mulf %162, %154 : vector<16x256xf32>
    %164 = arith.truncf %163 : vector<16x256xf32> to vector<16x256xbf16>
    %c32_150 = arith.constant 32 : index
    %c0_151 = arith.constant 0 : index
    %165 = vector.load %arg18[%c32_150, %c0_151] : memref<144x256xbf16, #tpu.memory_space<vmem>>, vector<16x256xbf16>
    tpu.vector_store %arg18[%c32_150, %c0_151], %164 {strides = array<i32>} : memref<144x256xbf16, #tpu.memory_space<vmem>>, vector<16x256xbf16>,
    %c0_152 = arith.constant 0 : index
    %c16_153 = arith.constant 16 : index
    %166 = vector.load %arg17[%c0_152, %c16_153] : memref<16x290xf32, #tpu.memory_space<vmem>>, vector<16x256xf32>
    %167 = arith.mulf %166, %152 : vector<16x256xf32>
    %168 = arith.truncf %167 : vector<16x256xf32> to vector<16x256xbf16>
    %c48_154 = arith.constant 48 : index
    %c0_155 = arith.constant 0 : index
    %169 = vector.load %arg18[%c48_154, %c0_155] : memref<144x256xbf16, #tpu.memory_space<vmem>>, vector<16x256xbf16>
    tpu.vector_store %arg18[%c48_154, %c0_155], %168 {strides = array<i32>} : memref<144x256xbf16, #tpu.memory_space<vmem>>, vector<16x256xbf16>,
    %c0_156 = arith.constant 0 : index
    %c17_157 = arith.constant 17 : index
    %170 = vector.load %arg17[%c0_156, %c17_157] : memref<16x290xf32, #tpu.memory_space<vmem>>, vector<16x256xf32>
    %171 = arith.truncf %170 : vector<16x256xf32> to vector<16x256xbf16>
    %c64_158 = arith.constant 64 : index
    %c0_159 = arith.constant 0 : index
    %172 = vector.load %arg18[%c64_158, %c0_159] : memref<144x256xbf16, #tpu.memory_space<vmem>>, vector<16x256xbf16>
    tpu.vector_store %arg18[%c64_158, %c0_159], %171 {strides = array<i32>} : memref<144x256xbf16, #tpu.memory_space<vmem>>, vector<16x256xbf16>,
    %c0_160 = arith.constant 0 : index
    %c18_161 = arith.constant 18 : index
    %173 = vector.load %arg17[%c0_160, %c18_161] : memref<16x290xf32, #tpu.memory_space<vmem>>, vector<16x256xf32>
    %174 = arith.mulf %173, %154 : vector<16x256xf32>
    %175 = arith.truncf %174 : vector<16x256xf32> to vector<16x256xbf16>
    %c80_162 = arith.constant 80 : index
    %c0_163 = arith.constant 0 : index
    %176 = vector.load %arg18[%c80_162, %c0_163] : memref<144x256xbf16, #tpu.memory_space<vmem>>, vector<16x256xbf16>
    tpu.vector_store %arg18[%c80_162, %c0_163], %175 {strides = array<i32>} : memref<144x256xbf16, #tpu.memory_space<vmem>>, vector<16x256xbf16>,
    %c0_164 = arith.constant 0 : index
    %c32_165 = arith.constant 32 : index
    %177 = vector.load %arg17[%c0_164, %c32_165] : memref<16x290xf32, #tpu.memory_space<vmem>>, vector<16x256xf32>
    %178 = arith.mulf %177, %152 : vector<16x256xf32>
    %179 = arith.truncf %178 : vector<16x256xf32> to vector<16x256xbf16>
    %c96_166 = arith.constant 96 : index
    %c0_167 = arith.constant 0 : index
    %180 = vector.load %arg18[%c96_166, %c0_167] : memref<144x256xbf16, #tpu.memory_space<vmem>>, vector<16x256xbf16>
    tpu.vector_store %arg18[%c96_166, %c0_167], %179 {strides = array<i32>} : memref<144x256xbf16, #tpu.memory_space<vmem>>, vector<16x256xbf16>,
    %c0_168 = arith.constant 0 : index
    %c33_169 = arith.constant 33 : index
    %181 = vector.load %arg17[%c0_168, %c33_169] : memref<16x290xf32, #tpu.memory_space<vmem>>, vector<16x256xf32>
    %182 = arith.truncf %181 : vector<16x256xf32> to vector<16x256xbf16>
    %c112_170 = arith.constant 112 : index
    %c0_171 = arith.constant 0 : index
    %183 = vector.load %arg18[%c112_170, %c0_171] : memref<144x256xbf16, #tpu.memory_space<vmem>>, vector<16x256xbf16>
    tpu.vector_store %arg18[%c112_170, %c0_171], %182 {strides = array<i32>} : memref<144x256xbf16, #tpu.memory_space<vmem>>, vector<16x256xbf16>,
    %c0_172 = arith.constant 0 : index
    %c34_173 = arith.constant 34 : index
    %184 = vector.load %arg17[%c0_172, %c34_173] : memref<16x290xf32, #tpu.memory_space<vmem>>, vector<16x256xf32>
    %185 = arith.mulf %184, %154 : vector<16x256xf32>
    %186 = arith.truncf %185 : vector<16x256xf32> to vector<16x256xbf16>
    %c128_174 = arith.constant 128 : index
    %c0_175 = arith.constant 0 : index
    %187 = vector.load %arg18[%c128_174, %c0_175] : memref<144x256xbf16, #tpu.memory_space<vmem>>, vector<16x256xbf16>
    tpu.vector_store %arg18[%c128_174, %c0_175], %186 {strides = array<i32>} : memref<144x256xbf16, #tpu.memory_space<vmem>>, vector<16x256xbf16>,
    %c0_176 = arith.constant 0 : index
    %c0_177 = arith.constant 0 : index
    %188 = vector.load %arg6[%c0_176, %c0_177] : memref<8x144xbf16, #tpu.memory_space<vmem>>, vector<8x144xbf16>
    %c0_178 = arith.constant 0 : index
    %c0_179 = arith.constant 0 : index
    %189 = vector.load %arg18[%c0_178, %c0_179] : memref<144x256xbf16, #tpu.memory_space<vmem>>, vector<144x256xbf16>
    %cst_180 = arith.constant dense<0.000000e+00> : vector<8x256xf32>
    %190 = tpu.matmul %188, %189, %cst_180 {dimension_numbers = #tpu.dot_dimension_numbers<[1], [0], [0], [1], [0, 0, 1, 1], [], []>} : vector<8x144xbf16>, vector<144x256xbf16>, vector<8x256xf32> -> vector<8x256xf32>
    %c0_181 = arith.constant 0 : index
    %c0_182 = arith.constant 0 : index
    %191 = vector.load %arg7[%c0_181, %c0_182] : memref<8x1xf32, #tpu.memory_space<vmem>>, vector<8x1xf32>
    %192 = vector.broadcast %191 : vector<8x1xf32> to vector<8x256xf32>
    %193 = arith.addf %190, %192 : vector<8x256xf32>
    %cst_183 = arith.constant 0.000000e+00 : f32
    %194 = vector.broadcast %cst_183 : f32 to vector<8x256xf32>
    %195 = arith.maximumf %193, %194 : vector<8x256xf32>
    %196 = arith.addf %100, %195 : vector<8x256xf32>
    %c0_184 = arith.constant 0 : index
    %c2_185 = arith.constant 2 : index
    %c0_186 = arith.constant 0 : index
    %c0_187 = arith.constant 0 : index
    %197 = vector.load %arg1[%c0_184, %c2_185, %c0_186, %c0_187] : memref<1x3x4x256xbf16, #tpu.memory_space<vmem>>, vector<1x1x4x256xbf16>
    %198 = vector.shape_cast %197 : vector<1x1x4x256xbf16> to vector<4x256xbf16>
    %199 = arith.extf %198 : vector<4x256xbf16> to vector<4x256xf32>
    %c0_188 = arith.constant 0 : index
    %c17_189 = arith.constant 17 : index
    %200 = vector.load %arg17[%c0_188, %c17_189] : memref<16x290xf32, #tpu.memory_space<vmem>>, vector<4x256xf32>
    tpu.vector_store %arg17[%c0_188, %c17_189], %199 {strides = array<i32>} : memref<16x290xf32, #tpu.memory_space<vmem>>, vector<4x256xf32>,
    %201 = vector.shape_cast %2 : vector<1x256xf32> to vector<1x256xf32>
    %202 = vector.broadcast %201 : vector<1x256xf32> to vector<16x256xf32>
    %203 = vector.shape_cast %3 : vector<1x256xf32> to vector<1x256xf32>
    %204 = vector.broadcast %203 : vector<1x256xf32> to vector<16x256xf32>
    %c0_190 = arith.constant 0 : index
    %c0_191 = arith.constant 0 : index
    %205 = vector.load %arg17[%c0_190, %c0_191] : memref<16x290xf32, #tpu.memory_space<vmem>>, vector<16x256xf32>
    %206 = arith.mulf %205, %202 : vector<16x256xf32>
    %207 = arith.truncf %206 : vector<16x256xf32> to vector<16x256xbf16>
    %c0_192 = arith.constant 0 : index
    %c0_193 = arith.constant 0 : index
    %208 = vector.load %arg18[%c0_192, %c0_193] : memref<144x256xbf16, #tpu.memory_space<vmem>>, vector<16x256xbf16>
    tpu.vector_store %arg18[%c0_192, %c0_193], %207 {strides = array<i32>} : memref<144x256xbf16, #tpu.memory_space<vmem>>, vector<16x256xbf16>,
    %c0_194 = arith.constant 0 : index
    %c1_195 = arith.constant 1 : index
    %209 = vector.load %arg17[%c0_194, %c1_195] : memref<16x290xf32, #tpu.memory_space<vmem>>, vector<16x256xf32>
    %210 = arith.truncf %209 : vector<16x256xf32> to vector<16x256xbf16>
    %c16_196 = arith.constant 16 : index
    %c0_197 = arith.constant 0 : index
    %211 = vector.load %arg18[%c16_196, %c0_197] : memref<144x256xbf16, #tpu.memory_space<vmem>>, vector<16x256xbf16>
    tpu.vector_store %arg18[%c16_196, %c0_197], %210 {strides = array<i32>} : memref<144x256xbf16, #tpu.memory_space<vmem>>, vector<16x256xbf16>,
    %c0_198 = arith.constant 0 : index
    %c2_199 = arith.constant 2 : index
    %212 = vector.load %arg17[%c0_198, %c2_199] : memref<16x290xf32, #tpu.memory_space<vmem>>, vector<16x256xf32>
    %213 = arith.mulf %212, %204 : vector<16x256xf32>
    %214 = arith.truncf %213 : vector<16x256xf32> to vector<16x256xbf16>
    %c32_200 = arith.constant 32 : index
    %c0_201 = arith.constant 0 : index
    %215 = vector.load %arg18[%c32_200, %c0_201] : memref<144x256xbf16, #tpu.memory_space<vmem>>, vector<16x256xbf16>
    tpu.vector_store %arg18[%c32_200, %c0_201], %214 {strides = array<i32>} : memref<144x256xbf16, #tpu.memory_space<vmem>>, vector<16x256xbf16>,
    %c0_202 = arith.constant 0 : index
    %c16_203 = arith.constant 16 : index
    %216 = vector.load %arg17[%c0_202, %c16_203] : memref<16x290xf32, #tpu.memory_space<vmem>>, vector<16x256xf32>
    %217 = arith.mulf %216, %202 : vector<16x256xf32>
    %218 = arith.truncf %217 : vector<16x256xf32> to vector<16x256xbf16>
    %c48_204 = arith.constant 48 : index
    %c0_205 = arith.constant 0 : index
    %219 = vector.load %arg18[%c48_204, %c0_205] : memref<144x256xbf16, #tpu.memory_space<vmem>>, vector<16x256xbf16>
    tpu.vector_store %arg18[%c48_204, %c0_205], %218 {strides = array<i32>} : memref<144x256xbf16, #tpu.memory_space<vmem>>, vector<16x256xbf16>,
    %c0_206 = arith.constant 0 : index
    %c17_207 = arith.constant 17 : index
    %220 = vector.load %arg17[%c0_206, %c17_207] : memref<16x290xf32, #tpu.memory_space<vmem>>, vector<16x256xf32>
    %221 = arith.truncf %220 : vector<16x256xf32> to vector<16x256xbf16>
    %c64_208 = arith.constant 64 : index
    %c0_209 = arith.constant 0 : index
    %222 = vector.load %arg18[%c64_208, %c0_209] : memref<144x256xbf16, #tpu.memory_space<vmem>>, vector<16x256xbf16>
    tpu.vector_store %arg18[%c64_208, %c0_209], %221 {strides = array<i32>} : memref<144x256xbf16, #tpu.memory_space<vmem>>, vector<16x256xbf16>,
    %c0_210 = arith.constant 0 : index
    %c18_211 = arith.constant 18 : index
    %223 = vector.load %arg17[%c0_210, %c18_211] : memref<16x290xf32, #tpu.memory_space<vmem>>, vector<16x256xf32>
    %224 = arith.mulf %223, %204 : vector<16x256xf32>
    %225 = arith.truncf %224 : vector<16x256xf32> to vector<16x256xbf16>
    %c80_212 = arith.constant 80 : index
    %c0_213 = arith.constant 0 : index
    %226 = vector.load %arg18[%c80_212, %c0_213] : memref<144x256xbf16, #tpu.memory_space<vmem>>, vector<16x256xbf16>
    tpu.vector_store %arg18[%c80_212, %c0_213], %225 {strides = array<i32>} : memref<144x256xbf16, #tpu.memory_space<vmem>>, vector<16x256xbf16>,
    %c0_214 = arith.constant 0 : index
    %c32_215 = arith.constant 32 : index
    %227 = vector.load %arg17[%c0_214, %c32_215] : memref<16x290xf32, #tpu.memory_space<vmem>>, vector<16x256xf32>
    %228 = arith.mulf %227, %202 : vector<16x256xf32>
    %229 = arith.truncf %228 : vector<16x256xf32> to vector<16x256xbf16>
    %c96_216 = arith.constant 96 : index
    %c0_217 = arith.constant 0 : index
    %230 = vector.load %arg18[%c96_216, %c0_217] : memref<144x256xbf16, #tpu.memory_space<vmem>>, vector<16x256xbf16>
    tpu.vector_store %arg18[%c96_216, %c0_217], %229 {strides = array<i32>} : memref<144x256xbf16, #tpu.memory_space<vmem>>, vector<16x256xbf16>,
    %c0_218 = arith.constant 0 : index
    %c33_219 = arith.constant 33 : index
    %231 = vector.load %arg17[%c0_218, %c33_219] : memref<16x290xf32, #tpu.memory_space<vmem>>, vector<16x256xf32>
    %232 = arith.truncf %231 : vector<16x256xf32> to vector<16x256xbf16>
    %c112_220 = arith.constant 112 : index
    %c0_221 = arith.constant 0 : index
    %233 = vector.load %arg18[%c112_220, %c0_221] : memref<144x256xbf16, #tpu.memory_space<vmem>>, vector<16x256xbf16>
    tpu.vector_store %arg18[%c112_220, %c0_221], %232 {strides = array<i32>} : memref<144x256xbf16, #tpu.memory_space<vmem>>, vector<16x256xbf16>,
    %c0_222 = arith.constant 0 : index
    %c34_223 = arith.constant 34 : index
    %234 = vector.load %arg17[%c0_222, %c34_223] : memref<16x290xf32, #tpu.memory_space<vmem>>, vector<16x256xf32>
    %235 = arith.mulf %234, %204 : vector<16x256xf32>
    %236 = arith.truncf %235 : vector<16x256xf32> to vector<16x256xbf16>
    %c128_224 = arith.constant 128 : index
    %c0_225 = arith.constant 0 : index
    %237 = vector.load %arg18[%c128_224, %c0_225] : memref<144x256xbf16, #tpu.memory_space<vmem>>, vector<16x256xbf16>
    tpu.vector_store %arg18[%c128_224, %c0_225], %236 {strides = array<i32>} : memref<144x256xbf16, #tpu.memory_space<vmem>>, vector<16x256xbf16>,
    %c0_226 = arith.constant 0 : index
    %c0_227 = arith.constant 0 : index
    %238 = vector.load %arg4[%c0_226, %c0_227] : memref<4x144xbf16, #tpu.memory_space<vmem>>, vector<4x144xbf16>
    %c0_228 = arith.constant 0 : index
    %c0_229 = arith.constant 0 : index
    %239 = vector.load %arg18[%c0_228, %c0_229] : memref<144x256xbf16, #tpu.memory_space<vmem>>, vector<144x256xbf16>
    %cst_230 = arith.constant dense<0.000000e+00> : vector<4x256xf32>
    %240 = tpu.matmul %238, %239, %cst_230 {dimension_numbers = #tpu.dot_dimension_numbers<[1], [0], [0], [1], [0, 0, 1, 1], [], []>} : vector<4x144xbf16>, vector<144x256xbf16>, vector<4x256xf32> -> vector<4x256xf32>
    %c0_231 = arith.constant 0 : index
    %c0_232 = arith.constant 0 : index
    %241 = vector.load %arg5[%c0_231, %c0_232] : memref<4x1xf32, #tpu.memory_space<vmem>>, vector<4x1xf32>
    %242 = vector.broadcast %241 : vector<4x1xf32> to vector<4x256xf32>
    %243 = arith.addf %240, %242 : vector<4x256xf32>
    %cst_233 = arith.constant 0.000000e+00 : f32
    %244 = vector.broadcast %cst_233 : f32 to vector<4x256xf32>
    %245 = arith.maximumf %243, %244 : vector<4x256xf32>
    %c0_234 = arith.constant 0 : index
    %c17_235 = arith.constant 17 : index
    %246 = vector.load %arg17[%c0_234, %c17_235] : memref<16x290xf32, #tpu.memory_space<vmem>>, vector<4x256xf32>
    tpu.vector_store %arg17[%c0_234, %c17_235], %245 {strides = array<i32>} : memref<16x290xf32, #tpu.memory_space<vmem>>, vector<4x256xf32>,
    %247 = vector.shape_cast %2 : vector<1x256xf32> to vector<1x256xf32>
    %248 = vector.broadcast %247 : vector<1x256xf32> to vector<16x256xf32>
    %249 = vector.shape_cast %3 : vector<1x256xf32> to vector<1x256xf32>
    %250 = vector.broadcast %249 : vector<1x256xf32> to vector<16x256xf32>
    %c0_236 = arith.constant 0 : index
    %c0_237 = arith.constant 0 : index
    %251 = vector.load %arg17[%c0_236, %c0_237] : memref<16x290xf32, #tpu.memory_space<vmem>>, vector<16x256xf32>
    %252 = arith.mulf %251, %248 : vector<16x256xf32>
    %253 = arith.truncf %252 : vector<16x256xf32> to vector<16x256xbf16>
    %c0_238 = arith.constant 0 : index
    %c0_239 = arith.constant 0 : index
    %254 = vector.load %arg18[%c0_238, %c0_239] : memref<144x256xbf16, #tpu.memory_space<vmem>>, vector<16x256xbf16>
    tpu.vector_store %arg18[%c0_238, %c0_239], %253 {strides = array<i32>} : memref<144x256xbf16, #tpu.memory_space<vmem>>, vector<16x256xbf16>,
    %c0_240 = arith.constant 0 : index
    %c1_241 = arith.constant 1 : index
    %255 = vector.load %arg17[%c0_240, %c1_241] : memref<16x290xf32, #tpu.memory_space<vmem>>, vector<16x256xf32>
    %256 = arith.truncf %255 : vector<16x256xf32> to vector<16x256xbf16>
    %c16_242 = arith.constant 16 : index
    %c0_243 = arith.constant 0 : index
    %257 = vector.load %arg18[%c16_242, %c0_243] : memref<144x256xbf16, #tpu.memory_space<vmem>>, vector<16x256xbf16>
    tpu.vector_store %arg18[%c16_242, %c0_243], %256 {strides = array<i32>} : memref<144x256xbf16, #tpu.memory_space<vmem>>, vector<16x256xbf16>,
    %c0_244 = arith.constant 0 : index
    %c2_245 = arith.constant 2 : index
    %258 = vector.load %arg17[%c0_244, %c2_245] : memref<16x290xf32, #tpu.memory_space<vmem>>, vector<16x256xf32>
    %259 = arith.mulf %258, %250 : vector<16x256xf32>
    %260 = arith.truncf %259 : vector<16x256xf32> to vector<16x256xbf16>
    %c32_246 = arith.constant 32 : index
    %c0_247 = arith.constant 0 : index
    %261 = vector.load %arg18[%c32_246, %c0_247] : memref<144x256xbf16, #tpu.memory_space<vmem>>, vector<16x256xbf16>
    tpu.vector_store %arg18[%c32_246, %c0_247], %260 {strides = array<i32>} : memref<144x256xbf16, #tpu.memory_space<vmem>>, vector<16x256xbf16>,
    %c0_248 = arith.constant 0 : index
    %c16_249 = arith.constant 16 : index
    %262 = vector.load %arg17[%c0_248, %c16_249] : memref<16x290xf32, #tpu.memory_space<vmem>>, vector<16x256xf32>
    %263 = arith.mulf %262, %248 : vector<16x256xf32>
    %264 = arith.truncf %263 : vector<16x256xf32> to vector<16x256xbf16>
    %c48_250 = arith.constant 48 : index
    %c0_251 = arith.constant 0 : index
    %265 = vector.load %arg18[%c48_250, %c0_251] : memref<144x256xbf16, #tpu.memory_space<vmem>>, vector<16x256xbf16>
    tpu.vector_store %arg18[%c48_250, %c0_251], %264 {strides = array<i32>} : memref<144x256xbf16, #tpu.memory_space<vmem>>, vector<16x256xbf16>,
    %c0_252 = arith.constant 0 : index
    %c17_253 = arith.constant 17 : index
    %266 = vector.load %arg17[%c0_252, %c17_253] : memref<16x290xf32, #tpu.memory_space<vmem>>, vector<16x256xf32>
    %267 = arith.truncf %266 : vector<16x256xf32> to vector<16x256xbf16>
    %c64_254 = arith.constant 64 : index
    %c0_255 = arith.constant 0 : index
    %268 = vector.load %arg18[%c64_254, %c0_255] : memref<144x256xbf16, #tpu.memory_space<vmem>>, vector<16x256xbf16>
    tpu.vector_store %arg18[%c64_254, %c0_255], %267 {strides = array<i32>} : memref<144x256xbf16, #tpu.memory_space<vmem>>, vector<16x256xbf16>,
    %c0_256 = arith.constant 0 : index
    %c18_257 = arith.constant 18 : index
    %269 = vector.load %arg17[%c0_256, %c18_257] : memref<16x290xf32, #tpu.memory_space<vmem>>, vector<16x256xf32>
    %270 = arith.mulf %269, %250 : vector<16x256xf32>
    %271 = arith.truncf %270 : vector<16x256xf32> to vector<16x256xbf16>
    %c80_258 = arith.constant 80 : index
    %c0_259 = arith.constant 0 : index
    %272 = vector.load %arg18[%c80_258, %c0_259] : memref<144x256xbf16, #tpu.memory_space<vmem>>, vector<16x256xbf16>
    tpu.vector_store %arg18[%c80_258, %c0_259], %271 {strides = array<i32>} : memref<144x256xbf16, #tpu.memory_space<vmem>>, vector<16x256xbf16>,
    %c0_260 = arith.constant 0 : index
    %c32_261 = arith.constant 32 : index
    %273 = vector.load %arg17[%c0_260, %c32_261] : memref<16x290xf32, #tpu.memory_space<vmem>>, vector<16x256xf32>
    %274 = arith.mulf %273, %248 : vector<16x256xf32>
    %275 = arith.truncf %274 : vector<16x256xf32> to vector<16x256xbf16>
    %c96_262 = arith.constant 96 : index
    %c0_263 = arith.constant 0 : index
    %276 = vector.load %arg18[%c96_262, %c0_263] : memref<144x256xbf16, #tpu.memory_space<vmem>>, vector<16x256xbf16>
    tpu.vector_store %arg18[%c96_262, %c0_263], %275 {strides = array<i32>} : memref<144x256xbf16, #tpu.memory_space<vmem>>, vector<16x256xbf16>,
    %c0_264 = arith.constant 0 : index
    %c33_265 = arith.constant 33 : index
    %277 = vector.load %arg17[%c0_264, %c33_265] : memref<16x290xf32, #tpu.memory_space<vmem>>, vector<16x256xf32>
    %278 = arith.truncf %277 : vector<16x256xf32> to vector<16x256xbf16>
    %c112_266 = arith.constant 112 : index
    %c0_267 = arith.constant 0 : index
    %279 = vector.load %arg18[%c112_266, %c0_267] : memref<144x256xbf16, #tpu.memory_space<vmem>>, vector<16x256xbf16>
    tpu.vector_store %arg18[%c112_266, %c0_267], %278 {strides = array<i32>} : memref<144x256xbf16, #tpu.memory_space<vmem>>, vector<16x256xbf16>,
    %c0_268 = arith.constant 0 : index
    %c34_269 = arith.constant 34 : index
    %280 = vector.load %arg17[%c0_268, %c34_269] : memref<16x290xf32, #tpu.memory_space<vmem>>, vector<16x256xf32>
    %281 = arith.mulf %280, %250 : vector<16x256xf32>
    %282 = arith.truncf %281 : vector<16x256xf32> to vector<16x256xbf16>
    %c128_270 = arith.constant 128 : index
    %c0_271 = arith.constant 0 : index
    %283 = vector.load %arg18[%c128_270, %c0_271] : memref<144x256xbf16, #tpu.memory_space<vmem>>, vector<16x256xbf16>
    tpu.vector_store %arg18[%c128_270, %c0_271], %282 {strides = array<i32>} : memref<144x256xbf16, #tpu.memory_space<vmem>>, vector<16x256xbf16>,
    %c0_272 = arith.constant 0 : index
    %c0_273 = arith.constant 0 : index
    %284 = vector.load %arg6[%c0_272, %c0_273] : memref<8x144xbf16, #tpu.memory_space<vmem>>, vector<8x144xbf16>
    %c0_274 = arith.constant 0 : index
    %c0_275 = arith.constant 0 : index
    %285 = vector.load %arg18[%c0_274, %c0_275] : memref<144x256xbf16, #tpu.memory_space<vmem>>, vector<144x256xbf16>
    %cst_276 = arith.constant dense<0.000000e+00> : vector<8x256xf32>
    %286 = tpu.matmul %284, %285, %cst_276 {dimension_numbers = #tpu.dot_dimension_numbers<[1], [0], [0], [1], [0, 0, 1, 1], [], []>} : vector<8x144xbf16>, vector<144x256xbf16>, vector<8x256xf32> -> vector<8x256xf32>
    %c0_277 = arith.constant 0 : index
    %c0_278 = arith.constant 0 : index
    %287 = vector.load %arg7[%c0_277, %c0_278] : memref<8x1xf32, #tpu.memory_space<vmem>>, vector<8x1xf32>
    %288 = vector.broadcast %287 : vector<8x1xf32> to vector<8x256xf32>
    %289 = arith.addf %286, %288 : vector<8x256xf32>
    %cst_279 = arith.constant 0.000000e+00 : f32
    %290 = vector.broadcast %cst_279 : f32 to vector<8x256xf32>
    %291 = arith.maximumf %289, %290 : vector<8x256xf32>
    %292 = arith.addf %196, %291 : vector<8x256xf32>
    %cst_280 = arith.constant 0.333333343 : f32
    %293 = vector.broadcast %cst_280 : f32 to vector<8x256xf32>
    %294 = arith.mulf %292, %293 : vector<8x256xf32>
    %cst_281 = arith.constant 0.000000e+00 : f32
    %295 = vector.broadcast %cst_281 : f32 to vector<8x256xf32>
    %c0_282 = arith.constant 0 : index
    %c0_283 = arith.constant 0 : index
    %c0_284 = arith.constant 0 : index
    %c0_285 = arith.constant 0 : index
    %296 = vector.load %arg2[%c0_282, %c0_283, %c0_284, %c0_285] : memref<1x3x4x256xbf16, #tpu.memory_space<vmem>>, vector<1x1x4x256xbf16>
    %297 = vector.shape_cast %296 : vector<1x1x4x256xbf16> to vector<4x256xbf16>
    %298 = arith.extf %297 : vector<4x256xbf16> to vector<4x256xf32>
    %c0_286 = arith.constant 0 : index
    %c17_287 = arith.constant 17 : index
    %299 = vector.load %arg17[%c0_286, %c17_287] : memref<16x290xf32, #tpu.memory_space<vmem>>, vector<4x256xf32>
    tpu.vector_store %arg17[%c0_286, %c17_287], %298 {strides = array<i32>} : memref<16x290xf32, #tpu.memory_space<vmem>>, vector<4x256xf32>,
    %300 = vector.shape_cast %2 : vector<1x256xf32> to vector<1x256xf32>
    %301 = vector.broadcast %300 : vector<1x256xf32> to vector<16x256xf32>
    %302 = vector.shape_cast %3 : vector<1x256xf32> to vector<1x256xf32>
    %303 = vector.broadcast %302 : vector<1x256xf32> to vector<16x256xf32>
    %c0_288 = arith.constant 0 : index
    %c0_289 = arith.constant 0 : index
    %304 = vector.load %arg17[%c0_288, %c0_289] : memref<16x290xf32, #tpu.memory_space<vmem>>, vector<16x256xf32>
    %305 = arith.mulf %304, %301 : vector<16x256xf32>
    %306 = arith.truncf %305 : vector<16x256xf32> to vector<16x256xbf16>
    %c0_290 = arith.constant 0 : index
    %c0_291 = arith.constant 0 : index
    %307 = vector.load %arg18[%c0_290, %c0_291] : memref<144x256xbf16, #tpu.memory_space<vmem>>, vector<16x256xbf16>
    tpu.vector_store %arg18[%c0_290, %c0_291], %306 {strides = array<i32>} : memref<144x256xbf16, #tpu.memory_space<vmem>>, vector<16x256xbf16>,
    %c0_292 = arith.constant 0 : index
    %c1_293 = arith.constant 1 : index
    %308 = vector.load %arg17[%c0_292, %c1_293] : memref<16x290xf32, #tpu.memory_space<vmem>>, vector<16x256xf32>
    %309 = arith.truncf %308 : vector<16x256xf32> to vector<16x256xbf16>
    %c16_294 = arith.constant 16 : index
    %c0_295 = arith.constant 0 : index
    %310 = vector.load %arg18[%c16_294, %c0_295] : memref<144x256xbf16, #tpu.memory_space<vmem>>, vector<16x256xbf16>
    tpu.vector_store %arg18[%c16_294, %c0_295], %309 {strides = array<i32>} : memref<144x256xbf16, #tpu.memory_space<vmem>>, vector<16x256xbf16>,
    %c0_296 = arith.constant 0 : index
    %c2_297 = arith.constant 2 : index
    %311 = vector.load %arg17[%c0_296, %c2_297] : memref<16x290xf32, #tpu.memory_space<vmem>>, vector<16x256xf32>
    %312 = arith.mulf %311, %303 : vector<16x256xf32>
    %313 = arith.truncf %312 : vector<16x256xf32> to vector<16x256xbf16>
    %c32_298 = arith.constant 32 : index
    %c0_299 = arith.constant 0 : index
    %314 = vector.load %arg18[%c32_298, %c0_299] : memref<144x256xbf16, #tpu.memory_space<vmem>>, vector<16x256xbf16>
    tpu.vector_store %arg18[%c32_298, %c0_299], %313 {strides = array<i32>} : memref<144x256xbf16, #tpu.memory_space<vmem>>, vector<16x256xbf16>,
    %c0_300 = arith.constant 0 : index
    %c16_301 = arith.constant 16 : index
    %315 = vector.load %arg17[%c0_300, %c16_301] : memref<16x290xf32, #tpu.memory_space<vmem>>, vector<16x256xf32>
    %316 = arith.mulf %315, %301 : vector<16x256xf32>
    %317 = arith.truncf %316 : vector<16x256xf32> to vector<16x256xbf16>
    %c48_302 = arith.constant 48 : index
    %c0_303 = arith.constant 0 : index
    %318 = vector.load %arg18[%c48_302, %c0_303] : memref<144x256xbf16, #tpu.memory_space<vmem>>, vector<16x256xbf16>
    tpu.vector_store %arg18[%c48_302, %c0_303], %317 {strides = array<i32>} : memref<144x256xbf16, #tpu.memory_space<vmem>>, vector<16x256xbf16>,
    %c0_304 = arith.constant 0 : index
    %c17_305 = arith.constant 17 : index
    %319 = vector.load %arg17[%c0_304, %c17_305] : memref<16x290xf32, #tpu.memory_space<vmem>>, vector<16x256xf32>
    %320 = arith.truncf %319 : vector<16x256xf32> to vector<16x256xbf16>
    %c64_306 = arith.constant 64 : index
    %c0_307 = arith.constant 0 : index
    %321 = vector.load %arg18[%c64_306, %c0_307] : memref<144x256xbf16, #tpu.memory_space<vmem>>, vector<16x256xbf16>
    tpu.vector_store %arg18[%c64_306, %c0_307], %320 {strides = array<i32>} : memref<144x256xbf16, #tpu.memory_space<vmem>>, vector<16x256xbf16>,
    %c0_308 = arith.constant 0 : index
    %c18_309 = arith.constant 18 : index
    %322 = vector.load %arg17[%c0_308, %c18_309] : memref<16x290xf32, #tpu.memory_space<vmem>>, vector<16x256xf32>
    %323 = arith.mulf %322, %303 : vector<16x256xf32>
    %324 = arith.truncf %323 : vector<16x256xf32> to vector<16x256xbf16>
    %c80_310 = arith.constant 80 : index
    %c0_311 = arith.constant 0 : index
    %325 = vector.load %arg18[%c80_310, %c0_311] : memref<144x256xbf16, #tpu.memory_space<vmem>>, vector<16x256xbf16>
    tpu.vector_store %arg18[%c80_310, %c0_311], %324 {strides = array<i32>} : memref<144x256xbf16, #tpu.memory_space<vmem>>, vector<16x256xbf16>,
    %c0_312 = arith.constant 0 : index
    %c32_313 = arith.constant 32 : index
    %326 = vector.load %arg17[%c0_312, %c32_313] : memref<16x290xf32, #tpu.memory_space<vmem>>, vector<16x256xf32>
    %327 = arith.mulf %326, %301 : vector<16x256xf32>
    %328 = arith.truncf %327 : vector<16x256xf32> to vector<16x256xbf16>
    %c96_314 = arith.constant 96 : index
    %c0_315 = arith.constant 0 : index
    %329 = vector.load %arg18[%c96_314, %c0_315] : memref<144x256xbf16, #tpu.memory_space<vmem>>, vector<16x256xbf16>
    tpu.vector_store %arg18[%c96_314, %c0_315], %328 {strides = array<i32>} : memref<144x256xbf16, #tpu.memory_space<vmem>>, vector<16x256xbf16>,
    %c0_316 = arith.constant 0 : index
    %c33_317 = arith.constant 33 : index
    %330 = vector.load %arg17[%c0_316, %c33_317] : memref<16x290xf32, #tpu.memory_space<vmem>>, vector<16x256xf32>
    %331 = arith.truncf %330 : vector<16x256xf32> to vector<16x256xbf16>
    %c112_318 = arith.constant 112 : index
    %c0_319 = arith.constant 0 : index
    %332 = vector.load %arg18[%c112_318, %c0_319] : memref<144x256xbf16, #tpu.memory_space<vmem>>, vector<16x256xbf16>
    tpu.vector_store %arg18[%c112_318, %c0_319], %331 {strides = array<i32>} : memref<144x256xbf16, #tpu.memory_space<vmem>>, vector<16x256xbf16>,
    %c0_320 = arith.constant 0 : index
    %c34_321 = arith.constant 34 : index
    %333 = vector.load %arg17[%c0_320, %c34_321] : memref<16x290xf32, #tpu.memory_space<vmem>>, vector<16x256xf32>
    %334 = arith.mulf %333, %303 : vector<16x256xf32>
    %335 = arith.truncf %334 : vector<16x256xf32> to vector<16x256xbf16>
    %c128_322 = arith.constant 128 : index
    %c0_323 = arith.constant 0 : index
    %336 = vector.load %arg18[%c128_322, %c0_323] : memref<144x256xbf16, #tpu.memory_space<vmem>>, vector<16x256xbf16>
    tpu.vector_store %arg18[%c128_322, %c0_323], %335 {strides = array<i32>} : memref<144x256xbf16, #tpu.memory_space<vmem>>, vector<16x256xbf16>,
    %c0_324 = arith.constant 0 : index
    %c0_325 = arith.constant 0 : index
    %337 = vector.load %arg8[%c0_324, %c0_325] : memref<4x144xbf16, #tpu.memory_space<vmem>>, vector<4x144xbf16>
    %c0_326 = arith.constant 0 : index
    %c0_327 = arith.constant 0 : index
    %338 = vector.load %arg18[%c0_326, %c0_327] : memref<144x256xbf16, #tpu.memory_space<vmem>>, vector<144x256xbf16>
    %cst_328 = arith.constant dense<0.000000e+00> : vector<4x256xf32>
    %339 = tpu.matmul %337, %338, %cst_328 {dimension_numbers = #tpu.dot_dimension_numbers<[1], [0], [0], [1], [0, 0, 1, 1], [], []>} : vector<4x144xbf16>, vector<144x256xbf16>, vector<4x256xf32> -> vector<4x256xf32>
    %c0_329 = arith.constant 0 : index
    %c0_330 = arith.constant 0 : index
    %340 = vector.load %arg9[%c0_329, %c0_330] : memref<4x1xf32, #tpu.memory_space<vmem>>, vector<4x1xf32>
    %341 = vector.broadcast %340 : vector<4x1xf32> to vector<4x256xf32>
    %342 = arith.addf %339, %341 : vector<4x256xf32>
    %cst_331 = arith.constant 0.000000e+00 : f32
    %343 = vector.broadcast %cst_331 : f32 to vector<4x256xf32>
    %344 = arith.maximumf %342, %343 : vector<4x256xf32>
    %c0_332 = arith.constant 0 : index
    %c17_333 = arith.constant 17 : index
    %345 = vector.load %arg17[%c0_332, %c17_333] : memref<16x290xf32, #tpu.memory_space<vmem>>, vector<4x256xf32>
    tpu.vector_store %arg17[%c0_332, %c17_333], %344 {strides = array<i32>} : memref<16x290xf32, #tpu.memory_space<vmem>>, vector<4x256xf32>,
    %346 = vector.shape_cast %2 : vector<1x256xf32> to vector<1x256xf32>
    %347 = vector.broadcast %346 : vector<1x256xf32> to vector<16x256xf32>
    %348 = vector.shape_cast %3 : vector<1x256xf32> to vector<1x256xf32>
    %349 = vector.broadcast %348 : vector<1x256xf32> to vector<16x256xf32>
    %c0_334 = arith.constant 0 : index
    %c0_335 = arith.constant 0 : index
    %350 = vector.load %arg17[%c0_334, %c0_335] : memref<16x290xf32, #tpu.memory_space<vmem>>, vector<16x256xf32>
    %351 = arith.mulf %350, %347 : vector<16x256xf32>
    %352 = arith.truncf %351 : vector<16x256xf32> to vector<16x256xbf16>
    %c0_336 = arith.constant 0 : index
    %c0_337 = arith.constant 0 : index
    %353 = vector.load %arg18[%c0_336, %c0_337] : memref<144x256xbf16, #tpu.memory_space<vmem>>, vector<16x256xbf16>
    tpu.vector_store %arg18[%c0_336, %c0_337], %352 {strides = array<i32>} : memref<144x256xbf16, #tpu.memory_space<vmem>>, vector<16x256xbf16>,
    %c0_338 = arith.constant 0 : index
    %c1_339 = arith.constant 1 : index
    %354 = vector.load %arg17[%c0_338, %c1_339] : memref<16x290xf32, #tpu.memory_space<vmem>>, vector<16x256xf32>
    %355 = arith.truncf %354 : vector<16x256xf32> to vector<16x256xbf16>
    %c16_340 = arith.constant 16 : index
    %c0_341 = arith.constant 0 : index
    %356 = vector.load %arg18[%c16_340, %c0_341] : memref<144x256xbf16, #tpu.memory_space<vmem>>, vector<16x256xbf16>
    tpu.vector_store %arg18[%c16_340, %c0_341], %355 {strides = array<i32>} : memref<144x256xbf16, #tpu.memory_space<vmem>>, vector<16x256xbf16>,
    %c0_342 = arith.constant 0 : index
    %c2_343 = arith.constant 2 : index
    %357 = vector.load %arg17[%c0_342, %c2_343] : memref<16x290xf32, #tpu.memory_space<vmem>>, vector<16x256xf32>
    %358 = arith.mulf %357, %349 : vector<16x256xf32>
    %359 = arith.truncf %358 : vector<16x256xf32> to vector<16x256xbf16>
    %c32_344 = arith.constant 32 : index
    %c0_345 = arith.constant 0 : index
    %360 = vector.load %arg18[%c32_344, %c0_345] : memref<144x256xbf16, #tpu.memory_space<vmem>>, vector<16x256xbf16>
    tpu.vector_store %arg18[%c32_344, %c0_345], %359 {strides = array<i32>} : memref<144x256xbf16, #tpu.memory_space<vmem>>, vector<16x256xbf16>,
    %c0_346 = arith.constant 0 : index
    %c16_347 = arith.constant 16 : index
    %361 = vector.load %arg17[%c0_346, %c16_347] : memref<16x290xf32, #tpu.memory_space<vmem>>, vector<16x256xf32>
    %362 = arith.mulf %361, %347 : vector<16x256xf32>
    %363 = arith.truncf %362 : vector<16x256xf32> to vector<16x256xbf16>
    %c48_348 = arith.constant 48 : index
    %c0_349 = arith.constant 0 : index
    %364 = vector.load %arg18[%c48_348, %c0_349] : memref<144x256xbf16, #tpu.memory_space<vmem>>, vector<16x256xbf16>
    tpu.vector_store %arg18[%c48_348, %c0_349], %363 {strides = array<i32>} : memref<144x256xbf16, #tpu.memory_space<vmem>>, vector<16x256xbf16>,
    %c0_350 = arith.constant 0 : index
    %c17_351 = arith.constant 17 : index
    %365 = vector.load %arg17[%c0_350, %c17_351] : memref<16x290xf32, #tpu.memory_space<vmem>>, vector<16x256xf32>
    %366 = arith.truncf %365 : vector<16x256xf32> to vector<16x256xbf16>
    %c64_352 = arith.constant 64 : index
    %c0_353 = arith.constant 0 : index
    %367 = vector.load %arg18[%c64_352, %c0_353] : memref<144x256xbf16, #tpu.memory_space<vmem>>, vector<16x256xbf16>
    tpu.vector_store %arg18[%c64_352, %c0_353], %366 {strides = array<i32>} : memref<144x256xbf16, #tpu.memory_space<vmem>>, vector<16x256xbf16>,
    %c0_354 = arith.constant 0 : index
    %c18_355 = arith.constant 18 : index
    %368 = vector.load %arg17[%c0_354, %c18_355] : memref<16x290xf32, #tpu.memory_space<vmem>>, vector<16x256xf32>
    %369 = arith.mulf %368, %349 : vector<16x256xf32>
    %370 = arith.truncf %369 : vector<16x256xf32> to vector<16x256xbf16>
    %c80_356 = arith.constant 80 : index
    %c0_357 = arith.constant 0 : index
    %371 = vector.load %arg18[%c80_356, %c0_357] : memref<144x256xbf16, #tpu.memory_space<vmem>>, vector<16x256xbf16>
    tpu.vector_store %arg18[%c80_356, %c0_357], %370 {strides = array<i32>} : memref<144x256xbf16, #tpu.memory_space<vmem>>, vector<16x256xbf16>,
    %c0_358 = arith.constant 0 : index
    %c32_359 = arith.constant 32 : index
    %372 = vector.load %arg17[%c0_358, %c32_359] : memref<16x290xf32, #tpu.memory_space<vmem>>, vector<16x256xf32>
    %373 = arith.mulf %372, %347 : vector<16x256xf32>
    %374 = arith.truncf %373 : vector<16x256xf32> to vector<16x256xbf16>
    %c96_360 = arith.constant 96 : index
    %c0_361 = arith.constant 0 : index
    %375 = vector.load %arg18[%c96_360, %c0_361] : memref<144x256xbf16, #tpu.memory_space<vmem>>, vector<16x256xbf16>
    tpu.vector_store %arg18[%c96_360, %c0_361], %374 {strides = array<i32>} : memref<144x256xbf16, #tpu.memory_space<vmem>>, vector<16x256xbf16>,
    %c0_362 = arith.constant 0 : index
    %c33_363 = arith.constant 33 : index
    %376 = vector.load %arg17[%c0_362, %c33_363] : memref<16x290xf32, #tpu.memory_space<vmem>>, vector<16x256xf32>
    %377 = arith.truncf %376 : vector<16x256xf32> to vector<16x256xbf16>
    %c112_364 = arith.constant 112 : index
    %c0_365 = arith.constant 0 : index
    %378 = vector.load %arg18[%c112_364, %c0_365] : memref<144x256xbf16, #tpu.memory_space<vmem>>, vector<16x256xbf16>
    tpu.vector_store %arg18[%c112_364, %c0_365], %377 {strides = array<i32>} : memref<144x256xbf16, #tpu.memory_space<vmem>>, vector<16x256xbf16>,
    %c0_366 = arith.constant 0 : index
    %c34_367 = arith.constant 34 : index
    %379 = vector.load %arg17[%c0_366, %c34_367] : memref<16x290xf32, #tpu.memory_space<vmem>>, vector<16x256xf32>
    %380 = arith.mulf %379, %349 : vector<16x256xf32>
    %381 = arith.truncf %380 : vector<16x256xf32> to vector<16x256xbf16>
    %c128_368 = arith.constant 128 : index
    %c0_369 = arith.constant 0 : index
    %382 = vector.load %arg18[%c128_368, %c0_369] : memref<144x256xbf16, #tpu.memory_space<vmem>>, vector<16x256xbf16>
    tpu.vector_store %arg18[%c128_368, %c0_369], %381 {strides = array<i32>} : memref<144x256xbf16, #tpu.memory_space<vmem>>, vector<16x256xbf16>,
    %c0_370 = arith.constant 0 : index
    %c0_371 = arith.constant 0 : index
    %383 = vector.load %arg10[%c0_370, %c0_371] : memref<8x144xbf16, #tpu.memory_space<vmem>>, vector<8x144xbf16>
    %c0_372 = arith.constant 0 : index
    %c0_373 = arith.constant 0 : index
    %384 = vector.load %arg18[%c0_372, %c0_373] : memref<144x256xbf16, #tpu.memory_space<vmem>>, vector<144x256xbf16>
    %cst_374 = arith.constant dense<0.000000e+00> : vector<8x256xf32>
    %385 = tpu.matmul %383, %384, %cst_374 {dimension_numbers = #tpu.dot_dimension_numbers<[1], [0], [0], [1], [0, 0, 1, 1], [], []>} : vector<8x144xbf16>, vector<144x256xbf16>, vector<8x256xf32> -> vector<8x256xf32>
    %c0_375 = arith.constant 0 : index
    %c0_376 = arith.constant 0 : index
    %386 = vector.load %arg11[%c0_375, %c0_376] : memref<8x1xf32, #tpu.memory_space<vmem>>, vector<8x1xf32>
    %387 = vector.broadcast %386 : vector<8x1xf32> to vector<8x256xf32>
    %388 = arith.addf %385, %387 : vector<8x256xf32>
    %cst_377 = arith.constant 0.000000e+00 : f32
    %389 = vector.broadcast %cst_377 : f32 to vector<8x256xf32>
    %390 = arith.maximumf %388, %389 : vector<8x256xf32>
    %391 = arith.addf %295, %390 : vector<8x256xf32>
    %c0_378 = arith.constant 0 : index
    %c1_379 = arith.constant 1 : index
    %c0_380 = arith.constant 0 : index
    %c0_381 = arith.constant 0 : index
    %392 = vector.load %arg2[%c0_378, %c1_379, %c0_380, %c0_381] : memref<1x3x4x256xbf16, #tpu.memory_space<vmem>>, vector<1x1x4x256xbf16>
    %393 = vector.shape_cast %392 : vector<1x1x4x256xbf16> to vector<4x256xbf16>
    %394 = arith.extf %393 : vector<4x256xbf16> to vector<4x256xf32>
    %c0_382 = arith.constant 0 : index
    %c17_383 = arith.constant 17 : index
    %395 = vector.load %arg17[%c0_382, %c17_383] : memref<16x290xf32, #tpu.memory_space<vmem>>, vector<4x256xf32>
    tpu.vector_store %arg17[%c0_382, %c17_383], %394 {strides = array<i32>} : memref<16x290xf32, #tpu.memory_space<vmem>>, vector<4x256xf32>,
    %396 = vector.shape_cast %2 : vector<1x256xf32> to vector<1x256xf32>
    %397 = vector.broadcast %396 : vector<1x256xf32> to vector<16x256xf32>
    %398 = vector.shape_cast %3 : vector<1x256xf32> to vector<1x256xf32>
    %399 = vector.broadcast %398 : vector<1x256xf32> to vector<16x256xf32>
    %c0_384 = arith.constant 0 : index
    %c0_385 = arith.constant 0 : index
    %400 = vector.load %arg17[%c0_384, %c0_385] : memref<16x290xf32, #tpu.memory_space<vmem>>, vector<16x256xf32>
    %401 = arith.mulf %400, %397 : vector<16x256xf32>
    %402 = arith.truncf %401 : vector<16x256xf32> to vector<16x256xbf16>
    %c0_386 = arith.constant 0 : index
    %c0_387 = arith.constant 0 : index
    %403 = vector.load %arg18[%c0_386, %c0_387] : memref<144x256xbf16, #tpu.memory_space<vmem>>, vector<16x256xbf16>
    tpu.vector_store %arg18[%c0_386, %c0_387], %402 {strides = array<i32>} : memref<144x256xbf16, #tpu.memory_space<vmem>>, vector<16x256xbf16>,
    %c0_388 = arith.constant 0 : index
    %c1_389 = arith.constant 1 : index
    %404 = vector.load %arg17[%c0_388, %c1_389] : memref<16x290xf32, #tpu.memory_space<vmem>>, vector<16x256xf32>
    %405 = arith.truncf %404 : vector<16x256xf32> to vector<16x256xbf16>
    %c16_390 = arith.constant 16 : index
    %c0_391 = arith.constant 0 : index
    %406 = vector.load %arg18[%c16_390, %c0_391] : memref<144x256xbf16, #tpu.memory_space<vmem>>, vector<16x256xbf16>
    tpu.vector_store %arg18[%c16_390, %c0_391], %405 {strides = array<i32>} : memref<144x256xbf16, #tpu.memory_space<vmem>>, vector<16x256xbf16>,
    %c0_392 = arith.constant 0 : index
    %c2_393 = arith.constant 2 : index
    %407 = vector.load %arg17[%c0_392, %c2_393] : memref<16x290xf32, #tpu.memory_space<vmem>>, vector<16x256xf32>
    %408 = arith.mulf %407, %399 : vector<16x256xf32>
    %409 = arith.truncf %408 : vector<16x256xf32> to vector<16x256xbf16>
    %c32_394 = arith.constant 32 : index
    %c0_395 = arith.constant 0 : index
    %410 = vector.load %arg18[%c32_394, %c0_395] : memref<144x256xbf16, #tpu.memory_space<vmem>>, vector<16x256xbf16>
    tpu.vector_store %arg18[%c32_394, %c0_395], %409 {strides = array<i32>} : memref<144x256xbf16, #tpu.memory_space<vmem>>, vector<16x256xbf16>,
    %c0_396 = arith.constant 0 : index
    %c16_397 = arith.constant 16 : index
    %411 = vector.load %arg17[%c0_396, %c16_397] : memref<16x290xf32, #tpu.memory_space<vmem>>, vector<16x256xf32>
    %412 = arith.mulf %411, %397 : vector<16x256xf32>
    %413 = arith.truncf %412 : vector<16x256xf32> to vector<16x256xbf16>
    %c48_398 = arith.constant 48 : index
    %c0_399 = arith.constant 0 : index
    %414 = vector.load %arg18[%c48_398, %c0_399] : memref<144x256xbf16, #tpu.memory_space<vmem>>, vector<16x256xbf16>
    tpu.vector_store %arg18[%c48_398, %c0_399], %413 {strides = array<i32>} : memref<144x256xbf16, #tpu.memory_space<vmem>>, vector<16x256xbf16>,
    %c0_400 = arith.constant 0 : index
    %c17_401 = arith.constant 17 : index
    %415 = vector.load %arg17[%c0_400, %c17_401] : memref<16x290xf32, #tpu.memory_space<vmem>>, vector<16x256xf32>
    %416 = arith.truncf %415 : vector<16x256xf32> to vector<16x256xbf16>
    %c64_402 = arith.constant 64 : index
    %c0_403 = arith.constant 0 : index
    %417 = vector.load %arg18[%c64_402, %c0_403] : memref<144x256xbf16, #tpu.memory_space<vmem>>, vector<16x256xbf16>
    tpu.vector_store %arg18[%c64_402, %c0_403], %416 {strides = array<i32>} : memref<144x256xbf16, #tpu.memory_space<vmem>>, vector<16x256xbf16>,
    %c0_404 = arith.constant 0 : index
    %c18_405 = arith.constant 18 : index
    %418 = vector.load %arg17[%c0_404, %c18_405] : memref<16x290xf32, #tpu.memory_space<vmem>>, vector<16x256xf32>
    %419 = arith.mulf %418, %399 : vector<16x256xf32>
    %420 = arith.truncf %419 : vector<16x256xf32> to vector<16x256xbf16>
    %c80_406 = arith.constant 80 : index
    %c0_407 = arith.constant 0 : index
    %421 = vector.load %arg18[%c80_406, %c0_407] : memref<144x256xbf16, #tpu.memory_space<vmem>>, vector<16x256xbf16>
    tpu.vector_store %arg18[%c80_406, %c0_407], %420 {strides = array<i32>} : memref<144x256xbf16, #tpu.memory_space<vmem>>, vector<16x256xbf16>,
    %c0_408 = arith.constant 0 : index
    %c32_409 = arith.constant 32 : index
    %422 = vector.load %arg17[%c0_408, %c32_409] : memref<16x290xf32, #tpu.memory_space<vmem>>, vector<16x256xf32>
    %423 = arith.mulf %422, %397 : vector<16x256xf32>
    %424 = arith.truncf %423 : vector<16x256xf32> to vector<16x256xbf16>
    %c96_410 = arith.constant 96 : index
    %c0_411 = arith.constant 0 : index
    %425 = vector.load %arg18[%c96_410, %c0_411] : memref<144x256xbf16, #tpu.memory_space<vmem>>, vector<16x256xbf16>
    tpu.vector_store %arg18[%c96_410, %c0_411], %424 {strides = array<i32>} : memref<144x256xbf16, #tpu.memory_space<vmem>>, vector<16x256xbf16>,
    %c0_412 = arith.constant 0 : index
    %c33_413 = arith.constant 33 : index
    %426 = vector.load %arg17[%c0_412, %c33_413] : memref<16x290xf32, #tpu.memory_space<vmem>>, vector<16x256xf32>
    %427 = arith.truncf %426 : vector<16x256xf32> to vector<16x256xbf16>
    %c112_414 = arith.constant 112 : index
    %c0_415 = arith.constant 0 : index
    %428 = vector.load %arg18[%c112_414, %c0_415] : memref<144x256xbf16, #tpu.memory_space<vmem>>, vector<16x256xbf16>
    tpu.vector_store %arg18[%c112_414, %c0_415], %427 {strides = array<i32>} : memref<144x256xbf16, #tpu.memory_space<vmem>>, vector<16x256xbf16>,
    %c0_416 = arith.constant 0 : index
    %c34_417 = arith.constant 34 : index
    %429 = vector.load %arg17[%c0_416, %c34_417] : memref<16x290xf32, #tpu.memory_space<vmem>>, vector<16x256xf32>
    %430 = arith.mulf %429, %399 : vector<16x256xf32>
    %431 = arith.truncf %430 : vector<16x256xf32> to vector<16x256xbf16>
    %c128_418 = arith.constant 128 : index
    %c0_419 = arith.constant 0 : index
    %432 = vector.load %arg18[%c128_418, %c0_419] : memref<144x256xbf16, #tpu.memory_space<vmem>>, vector<16x256xbf16>
    tpu.vector_store %arg18[%c128_418, %c0_419], %431 {strides = array<i32>} : memref<144x256xbf16, #tpu.memory_space<vmem>>, vector<16x256xbf16>,
    %c0_420 = arith.constant 0 : index
    %c0_421 = arith.constant 0 : index
    %433 = vector.load %arg8[%c0_420, %c0_421] : memref<4x144xbf16, #tpu.memory_space<vmem>>, vector<4x144xbf16>
    %c0_422 = arith.constant 0 : index
    %c0_423 = arith.constant 0 : index
    %434 = vector.load %arg18[%c0_422, %c0_423] : memref<144x256xbf16, #tpu.memory_space<vmem>>, vector<144x256xbf16>
    %cst_424 = arith.constant dense<0.000000e+00> : vector<4x256xf32>
    %435 = tpu.matmul %433, %434, %cst_424 {dimension_numbers = #tpu.dot_dimension_numbers<[1], [0], [0], [1], [0, 0, 1, 1], [], []>} : vector<4x144xbf16>, vector<144x256xbf16>, vector<4x256xf32> -> vector<4x256xf32>
    %c0_425 = arith.constant 0 : index
    %c0_426 = arith.constant 0 : index
    %436 = vector.load %arg9[%c0_425, %c0_426] : memref<4x1xf32, #tpu.memory_space<vmem>>, vector<4x1xf32>
    %437 = vector.broadcast %436 : vector<4x1xf32> to vector<4x256xf32>
    %438 = arith.addf %435, %437 : vector<4x256xf32>
    %cst_427 = arith.constant 0.000000e+00 : f32
    %439 = vector.broadcast %cst_427 : f32 to vector<4x256xf32>
    %440 = arith.maximumf %438, %439 : vector<4x256xf32>
    %c0_428 = arith.constant 0 : index
    %c17_429 = arith.constant 17 : index
    %441 = vector.load %arg17[%c0_428, %c17_429] : memref<16x290xf32, #tpu.memory_space<vmem>>, vector<4x256xf32>
    tpu.vector_store %arg17[%c0_428, %c17_429], %440 {strides = array<i32>} : memref<16x290xf32, #tpu.memory_space<vmem>>, vector<4x256xf32>,
    %442 = vector.shape_cast %2 : vector<1x256xf32> to vector<1x256xf32>
    %443 = vector.broadcast %442 : vector<1x256xf32> to vector<16x256xf32>
    %444 = vector.shape_cast %3 : vector<1x256xf32> to vector<1x256xf32>
    %445 = vector.broadcast %444 : vector<1x256xf32> to vector<16x256xf32>
    %c0_430 = arith.constant 0 : index
    %c0_431 = arith.constant 0 : index
    %446 = vector.load %arg17[%c0_430, %c0_431] : memref<16x290xf32, #tpu.memory_space<vmem>>, vector<16x256xf32>
    %447 = arith.mulf %446, %443 : vector<16x256xf32>
    %448 = arith.truncf %447 : vector<16x256xf32> to vector<16x256xbf16>
    %c0_432 = arith.constant 0 : index
    %c0_433 = arith.constant 0 : index
    %449 = vector.load %arg18[%c0_432, %c0_433] : memref<144x256xbf16, #tpu.memory_space<vmem>>, vector<16x256xbf16>
    tpu.vector_store %arg18[%c0_432, %c0_433], %448 {strides = array<i32>} : memref<144x256xbf16, #tpu.memory_space<vmem>>, vector<16x256xbf16>,
    %c0_434 = arith.constant 0 : index
    %c1_435 = arith.constant 1 : index
    %450 = vector.load %arg17[%c0_434, %c1_435] : memref<16x290xf32, #tpu.memory_space<vmem>>, vector<16x256xf32>
    %451 = arith.truncf %450 : vector<16x256xf32> to vector<16x256xbf16>
    %c16_436 = arith.constant 16 : index
    %c0_437 = arith.constant 0 : index
    %452 = vector.load %arg18[%c16_436, %c0_437] : memref<144x256xbf16, #tpu.memory_space<vmem>>, vector<16x256xbf16>
    tpu.vector_store %arg18[%c16_436, %c0_437], %451 {strides = array<i32>} : memref<144x256xbf16, #tpu.memory_space<vmem>>, vector<16x256xbf16>,
    %c0_438 = arith.constant 0 : index
    %c2_439 = arith.constant 2 : index
    %453 = vector.load %arg17[%c0_438, %c2_439] : memref<16x290xf32, #tpu.memory_space<vmem>>, vector<16x256xf32>
    %454 = arith.mulf %453, %445 : vector<16x256xf32>
    %455 = arith.truncf %454 : vector<16x256xf32> to vector<16x256xbf16>
    %c32_440 = arith.constant 32 : index
    %c0_441 = arith.constant 0 : index
    %456 = vector.load %arg18[%c32_440, %c0_441] : memref<144x256xbf16, #tpu.memory_space<vmem>>, vector<16x256xbf16>
    tpu.vector_store %arg18[%c32_440, %c0_441], %455 {strides = array<i32>} : memref<144x256xbf16, #tpu.memory_space<vmem>>, vector<16x256xbf16>,
    %c0_442 = arith.constant 0 : index
    %c16_443 = arith.constant 16 : index
    %457 = vector.load %arg17[%c0_442, %c16_443] : memref<16x290xf32, #tpu.memory_space<vmem>>, vector<16x256xf32>
    %458 = arith.mulf %457, %443 : vector<16x256xf32>
    %459 = arith.truncf %458 : vector<16x256xf32> to vector<16x256xbf16>
    %c48_444 = arith.constant 48 : index
    %c0_445 = arith.constant 0 : index
    %460 = vector.load %arg18[%c48_444, %c0_445] : memref<144x256xbf16, #tpu.memory_space<vmem>>, vector<16x256xbf16>
    tpu.vector_store %arg18[%c48_444, %c0_445], %459 {strides = array<i32>} : memref<144x256xbf16, #tpu.memory_space<vmem>>, vector<16x256xbf16>,
    %c0_446 = arith.constant 0 : index
    %c17_447 = arith.constant 17 : index
    %461 = vector.load %arg17[%c0_446, %c17_447] : memref<16x290xf32, #tpu.memory_space<vmem>>, vector<16x256xf32>
    %462 = arith.truncf %461 : vector<16x256xf32> to vector<16x256xbf16>
    %c64_448 = arith.constant 64 : index
    %c0_449 = arith.constant 0 : index
    %463 = vector.load %arg18[%c64_448, %c0_449] : memref<144x256xbf16, #tpu.memory_space<vmem>>, vector<16x256xbf16>
    tpu.vector_store %arg18[%c64_448, %c0_449], %462 {strides = array<i32>} : memref<144x256xbf16, #tpu.memory_space<vmem>>, vector<16x256xbf16>,
    %c0_450 = arith.constant 0 : index
    %c18_451 = arith.constant 18 : index
    %464 = vector.load %arg17[%c0_450, %c18_451] : memref<16x290xf32, #tpu.memory_space<vmem>>, vector<16x256xf32>
    %465 = arith.mulf %464, %445 : vector<16x256xf32>
    %466 = arith.truncf %465 : vector<16x256xf32> to vector<16x256xbf16>
    %c80_452 = arith.constant 80 : index
    %c0_453 = arith.constant 0 : index
    %467 = vector.load %arg18[%c80_452, %c0_453] : memref<144x256xbf16, #tpu.memory_space<vmem>>, vector<16x256xbf16>
    tpu.vector_store %arg18[%c80_452, %c0_453], %466 {strides = array<i32>} : memref<144x256xbf16, #tpu.memory_space<vmem>>, vector<16x256xbf16>,
    %c0_454 = arith.constant 0 : index
    %c32_455 = arith.constant 32 : index
    %468 = vector.load %arg17[%c0_454, %c32_455] : memref<16x290xf32, #tpu.memory_space<vmem>>, vector<16x256xf32>
    %469 = arith.mulf %468, %443 : vector<16x256xf32>
    %470 = arith.truncf %469 : vector<16x256xf32> to vector<16x256xbf16>
    %c96_456 = arith.constant 96 : index
    %c0_457 = arith.constant 0 : index
    %471 = vector.load %arg18[%c96_456, %c0_457] : memref<144x256xbf16, #tpu.memory_space<vmem>>, vector<16x256xbf16>
    tpu.vector_store %arg18[%c96_456, %c0_457], %470 {strides = array<i32>} : memref<144x256xbf16, #tpu.memory_space<vmem>>, vector<16x256xbf16>,
    %c0_458 = arith.constant 0 : index
    %c33_459 = arith.constant 33 : index
    %472 = vector.load %arg17[%c0_458, %c33_459] : memref<16x290xf32, #tpu.memory_space<vmem>>, vector<16x256xf32>
    %473 = arith.truncf %472 : vector<16x256xf32> to vector<16x256xbf16>
    %c112_460 = arith.constant 112 : index
    %c0_461 = arith.constant 0 : index
    %474 = vector.load %arg18[%c112_460, %c0_461] : memref<144x256xbf16, #tpu.memory_space<vmem>>, vector<16x256xbf16>
    tpu.vector_store %arg18[%c112_460, %c0_461], %473 {strides = array<i32>} : memref<144x256xbf16, #tpu.memory_space<vmem>>, vector<16x256xbf16>,
    %c0_462 = arith.constant 0 : index
    %c34_463 = arith.constant 34 : index
    %475 = vector.load %arg17[%c0_462, %c34_463] : memref<16x290xf32, #tpu.memory_space<vmem>>, vector<16x256xf32>
    %476 = arith.mulf %475, %445 : vector<16x256xf32>
    %477 = arith.truncf %476 : vector<16x256xf32> to vector<16x256xbf16>
    %c128_464 = arith.constant 128 : index
    %c0_465 = arith.constant 0 : index
    %478 = vector.load %arg18[%c128_464, %c0_465] : memref<144x256xbf16, #tpu.memory_space<vmem>>, vector<16x256xbf16>
    tpu.vector_store %arg18[%c128_464, %c0_465], %477 {strides = array<i32>} : memref<144x256xbf16, #tpu.memory_space<vmem>>, vector<16x256xbf16>,
    %c0_466 = arith.constant 0 : index
    %c0_467 = arith.constant 0 : index
    %479 = vector.load %arg10[%c0_466, %c0_467] : memref<8x144xbf16, #tpu.memory_space<vmem>>, vector<8x144xbf16>
    %c0_468 = arith.constant 0 : index
    %c0_469 = arith.constant 0 : index
    %480 = vector.load %arg18[%c0_468, %c0_469] : memref<144x256xbf16, #tpu.memory_space<vmem>>, vector<144x256xbf16>
    %cst_470 = arith.constant dense<0.000000e+00> : vector<8x256xf32>
    %481 = tpu.matmul %479, %480, %cst_470 {dimension_numbers = #tpu.dot_dimension_numbers<[1], [0], [0], [1], [0, 0, 1, 1], [], []>} : vector<8x144xbf16>, vector<144x256xbf16>, vector<8x256xf32> -> vector<8x256xf32>
    %c0_471 = arith.constant 0 : index
    %c0_472 = arith.constant 0 : index
    %482 = vector.load %arg11[%c0_471, %c0_472] : memref<8x1xf32, #tpu.memory_space<vmem>>, vector<8x1xf32>
    %483 = vector.broadcast %482 : vector<8x1xf32> to vector<8x256xf32>
    %484 = arith.addf %481, %483 : vector<8x256xf32>
    %cst_473 = arith.constant 0.000000e+00 : f32
    %485 = vector.broadcast %cst_473 : f32 to vector<8x256xf32>
    %486 = arith.maximumf %484, %485 : vector<8x256xf32>
    %487 = arith.addf %391, %486 : vector<8x256xf32>
    %c0_474 = arith.constant 0 : index
    %c2_475 = arith.constant 2 : index
    %c0_476 = arith.constant 0 : index
    %c0_477 = arith.constant 0 : index
    %488 = vector.load %arg2[%c0_474, %c2_475, %c0_476, %c0_477] : memref<1x3x4x256xbf16, #tpu.memory_space<vmem>>, vector<1x1x4x256xbf16>
    %489 = vector.shape_cast %488 : vector<1x1x4x256xbf16> to vector<4x256xbf16>
    %490 = arith.extf %489 : vector<4x256xbf16> to vector<4x256xf32>
    %c0_478 = arith.constant 0 : index
    %c17_479 = arith.constant 17 : index
    %491 = vector.load %arg17[%c0_478, %c17_479] : memref<16x290xf32, #tpu.memory_space<vmem>>, vector<4x256xf32>
    tpu.vector_store %arg17[%c0_478, %c17_479], %490 {strides = array<i32>} : memref<16x290xf32, #tpu.memory_space<vmem>>, vector<4x256xf32>,
    %492 = vector.shape_cast %2 : vector<1x256xf32> to vector<1x256xf32>
    %493 = vector.broadcast %492 : vector<1x256xf32> to vector<16x256xf32>
    %494 = vector.shape_cast %3 : vector<1x256xf32> to vector<1x256xf32>
    %495 = vector.broadcast %494 : vector<1x256xf32> to vector<16x256xf32>
    %c0_480 = arith.constant 0 : index
    %c0_481 = arith.constant 0 : index
    %496 = vector.load %arg17[%c0_480, %c0_481] : memref<16x290xf32, #tpu.memory_space<vmem>>, vector<16x256xf32>
    %497 = arith.mulf %496, %493 : vector<16x256xf32>
    %498 = arith.truncf %497 : vector<16x256xf32> to vector<16x256xbf16>
    %c0_482 = arith.constant 0 : index
    %c0_483 = arith.constant 0 : index
    %499 = vector.load %arg18[%c0_482, %c0_483] : memref<144x256xbf16, #tpu.memory_space<vmem>>, vector<16x256xbf16>
    tpu.vector_store %arg18[%c0_482, %c0_483], %498 {strides = array<i32>} : memref<144x256xbf16, #tpu.memory_space<vmem>>, vector<16x256xbf16>,
    %c0_484 = arith.constant 0 : index
    %c1_485 = arith.constant 1 : index
    %500 = vector.load %arg17[%c0_484, %c1_485] : memref<16x290xf32, #tpu.memory_space<vmem>>, vector<16x256xf32>
    %501 = arith.truncf %500 : vector<16x256xf32> to vector<16x256xbf16>
    %c16_486 = arith.constant 16 : index
    %c0_487 = arith.constant 0 : index
    %502 = vector.load %arg18[%c16_486, %c0_487] : memref<144x256xbf16, #tpu.memory_space<vmem>>, vector<16x256xbf16>
    tpu.vector_store %arg18[%c16_486, %c0_487], %501 {strides = array<i32>} : memref<144x256xbf16, #tpu.memory_space<vmem>>, vector<16x256xbf16>,
    %c0_488 = arith.constant 0 : index
    %c2_489 = arith.constant 2 : index
    %503 = vector.load %arg17[%c0_488, %c2_489] : memref<16x290xf32, #tpu.memory_space<vmem>>, vector<16x256xf32>
    %504 = arith.mulf %503, %495 : vector<16x256xf32>
    %505 = arith.truncf %504 : vector<16x256xf32> to vector<16x256xbf16>
    %c32_490 = arith.constant 32 : index
    %c0_491 = arith.constant 0 : index
    %506 = vector.load %arg18[%c32_490, %c0_491] : memref<144x256xbf16, #tpu.memory_space<vmem>>, vector<16x256xbf16>
    tpu.vector_store %arg18[%c32_490, %c0_491], %505 {strides = array<i32>} : memref<144x256xbf16, #tpu.memory_space<vmem>>, vector<16x256xbf16>,
    %c0_492 = arith.constant 0 : index
    %c16_493 = arith.constant 16 : index
    %507 = vector.load %arg17[%c0_492, %c16_493] : memref<16x290xf32, #tpu.memory_space<vmem>>, vector<16x256xf32>
    %508 = arith.mulf %507, %493 : vector<16x256xf32>
    %509 = arith.truncf %508 : vector<16x256xf32> to vector<16x256xbf16>
    %c48_494 = arith.constant 48 : index
    %c0_495 = arith.constant 0 : index
    %510 = vector.load %arg18[%c48_494, %c0_495] : memref<144x256xbf16, #tpu.memory_space<vmem>>, vector<16x256xbf16>
    tpu.vector_store %arg18[%c48_494, %c0_495], %509 {strides = array<i32>} : memref<144x256xbf16, #tpu.memory_space<vmem>>, vector<16x256xbf16>,
    %c0_496 = arith.constant 0 : index
    %c17_497 = arith.constant 17 : index
    %511 = vector.load %arg17[%c0_496, %c17_497] : memref<16x290xf32, #tpu.memory_space<vmem>>, vector<16x256xf32>
    %512 = arith.truncf %511 : vector<16x256xf32> to vector<16x256xbf16>
    %c64_498 = arith.constant 64 : index
    %c0_499 = arith.constant 0 : index
    %513 = vector.load %arg18[%c64_498, %c0_499] : memref<144x256xbf16, #tpu.memory_space<vmem>>, vector<16x256xbf16>
    tpu.vector_store %arg18[%c64_498, %c0_499], %512 {strides = array<i32>} : memref<144x256xbf16, #tpu.memory_space<vmem>>, vector<16x256xbf16>,
    %c0_500 = arith.constant 0 : index
    %c18_501 = arith.constant 18 : index
    %514 = vector.load %arg17[%c0_500, %c18_501] : memref<16x290xf32, #tpu.memory_space<vmem>>, vector<16x256xf32>
    %515 = arith.mulf %514, %495 : vector<16x256xf32>
    %516 = arith.truncf %515 : vector<16x256xf32> to vector<16x256xbf16>
    %c80_502 = arith.constant 80 : index
    %c0_503 = arith.constant 0 : index
    %517 = vector.load %arg18[%c80_502, %c0_503] : memref<144x256xbf16, #tpu.memory_space<vmem>>, vector<16x256xbf16>
    tpu.vector_store %arg18[%c80_502, %c0_503], %516 {strides = array<i32>} : memref<144x256xbf16, #tpu.memory_space<vmem>>, vector<16x256xbf16>,
    %c0_504 = arith.constant 0 : index
    %c32_505 = arith.constant 32 : index
    %518 = vector.load %arg17[%c0_504, %c32_505] : memref<16x290xf32, #tpu.memory_space<vmem>>, vector<16x256xf32>
    %519 = arith.mulf %518, %493 : vector<16x256xf32>
    %520 = arith.truncf %519 : vector<16x256xf32> to vector<16x256xbf16>
    %c96_506 = arith.constant 96 : index
    %c0_507 = arith.constant 0 : index
    %521 = vector.load %arg18[%c96_506, %c0_507] : memref<144x256xbf16, #tpu.memory_space<vmem>>, vector<16x256xbf16>
    tpu.vector_store %arg18[%c96_506, %c0_507], %520 {strides = array<i32>} : memref<144x256xbf16, #tpu.memory_space<vmem>>, vector<16x256xbf16>,
    %c0_508 = arith.constant 0 : index
    %c33_509 = arith.constant 33 : index
    %522 = vector.load %arg17[%c0_508, %c33_509] : memref<16x290xf32, #tpu.memory_space<vmem>>, vector<16x256xf32>
    %523 = arith.truncf %522 : vector<16x256xf32> to vector<16x256xbf16>
    %c112_510 = arith.constant 112 : index
    %c0_511 = arith.constant 0 : index
    %524 = vector.load %arg18[%c112_510, %c0_511] : memref<144x256xbf16, #tpu.memory_space<vmem>>, vector<16x256xbf16>
    tpu.vector_store %arg18[%c112_510, %c0_511], %523 {strides = array<i32>} : memref<144x256xbf16, #tpu.memory_space<vmem>>, vector<16x256xbf16>,
    %c0_512 = arith.constant 0 : index
    %c34_513 = arith.constant 34 : index
    %525 = vector.load %arg17[%c0_512, %c34_513] : memref<16x290xf32, #tpu.memory_space<vmem>>, vector<16x256xf32>
    %526 = arith.mulf %525, %495 : vector<16x256xf32>
    %527 = arith.truncf %526 : vector<16x256xf32> to vector<16x256xbf16>
    %c128_514 = arith.constant 128 : index
    %c0_515 = arith.constant 0 : index
    %528 = vector.load %arg18[%c128_514, %c0_515] : memref<144x256xbf16, #tpu.memory_space<vmem>>, vector<16x256xbf16>
    tpu.vector_store %arg18[%c128_514, %c0_515], %527 {strides = array<i32>} : memref<144x256xbf16, #tpu.memory_space<vmem>>, vector<16x256xbf16>,
    %c0_516 = arith.constant 0 : index
    %c0_517 = arith.constant 0 : index
    %529 = vector.load %arg8[%c0_516, %c0_517] : memref<4x144xbf16, #tpu.memory_space<vmem>>, vector<4x144xbf16>
    %c0_518 = arith.constant 0 : index
    %c0_519 = arith.constant 0 : index
    %530 = vector.load %arg18[%c0_518, %c0_519] : memref<144x256xbf16, #tpu.memory_space<vmem>>, vector<144x256xbf16>
    %cst_520 = arith.constant dense<0.000000e+00> : vector<4x256xf32>
    %531 = tpu.matmul %529, %530, %cst_520 {dimension_numbers = #tpu.dot_dimension_numbers<[1], [0], [0], [1], [0, 0, 1, 1], [], []>} : vector<4x144xbf16>, vector<144x256xbf16>, vector<4x256xf32> -> vector<4x256xf32>
    %c0_521 = arith.constant 0 : index
    %c0_522 = arith.constant 0 : index
    %532 = vector.load %arg9[%c0_521, %c0_522] : memref<4x1xf32, #tpu.memory_space<vmem>>, vector<4x1xf32>
    %533 = vector.broadcast %532 : vector<4x1xf32> to vector<4x256xf32>
    %534 = arith.addf %531, %533 : vector<4x256xf32>
    %cst_523 = arith.constant 0.000000e+00 : f32
    %535 = vector.broadcast %cst_523 : f32 to vector<4x256xf32>
    %536 = arith.maximumf %534, %535 : vector<4x256xf32>
    %c0_524 = arith.constant 0 : index
    %c17_525 = arith.constant 17 : index
    %537 = vector.load %arg17[%c0_524, %c17_525] : memref<16x290xf32, #tpu.memory_space<vmem>>, vector<4x256xf32>
    tpu.vector_store %arg17[%c0_524, %c17_525], %536 {strides = array<i32>} : memref<16x290xf32, #tpu.memory_space<vmem>>, vector<4x256xf32>,
    %538 = vector.shape_cast %2 : vector<1x256xf32> to vector<1x256xf32>
    %539 = vector.broadcast %538 : vector<1x256xf32> to vector<16x256xf32>
    %540 = vector.shape_cast %3 : vector<1x256xf32> to vector<1x256xf32>
    %541 = vector.broadcast %540 : vector<1x256xf32> to vector<16x256xf32>
    %c0_526 = arith.constant 0 : index
    %c0_527 = arith.constant 0 : index
    %542 = vector.load %arg17[%c0_526, %c0_527] : memref<16x290xf32, #tpu.memory_space<vmem>>, vector<16x256xf32>
    %543 = arith.mulf %542, %539 : vector<16x256xf32>
    %544 = arith.truncf %543 : vector<16x256xf32> to vector<16x256xbf16>
    %c0_528 = arith.constant 0 : index
    %c0_529 = arith.constant 0 : index
    %545 = vector.load %arg18[%c0_528, %c0_529] : memref<144x256xbf16, #tpu.memory_space<vmem>>, vector<16x256xbf16>
    tpu.vector_store %arg18[%c0_528, %c0_529], %544 {strides = array<i32>} : memref<144x256xbf16, #tpu.memory_space<vmem>>, vector<16x256xbf16>,
    %c0_530 = arith.constant 0 : index
    %c1_531 = arith.constant 1 : index
    %546 = vector.load %arg17[%c0_530, %c1_531] : memref<16x290xf32, #tpu.memory_space<vmem>>, vector<16x256xf32>
    %547 = arith.truncf %546 : vector<16x256xf32> to vector<16x256xbf16>
    %c16_532 = arith.constant 16 : index
    %c0_533 = arith.constant 0 : index
    %548 = vector.load %arg18[%c16_532, %c0_533] : memref<144x256xbf16, #tpu.memory_space<vmem>>, vector<16x256xbf16>
    tpu.vector_store %arg18[%c16_532, %c0_533], %547 {strides = array<i32>} : memref<144x256xbf16, #tpu.memory_space<vmem>>, vector<16x256xbf16>,
    %c0_534 = arith.constant 0 : index
    %c2_535 = arith.constant 2 : index
    %549 = vector.load %arg17[%c0_534, %c2_535] : memref<16x290xf32, #tpu.memory_space<vmem>>, vector<16x256xf32>
    %550 = arith.mulf %549, %541 : vector<16x256xf32>
    %551 = arith.truncf %550 : vector<16x256xf32> to vector<16x256xbf16>
    %c32_536 = arith.constant 32 : index
    %c0_537 = arith.constant 0 : index
    %552 = vector.load %arg18[%c32_536, %c0_537] : memref<144x256xbf16, #tpu.memory_space<vmem>>, vector<16x256xbf16>
    tpu.vector_store %arg18[%c32_536, %c0_537], %551 {strides = array<i32>} : memref<144x256xbf16, #tpu.memory_space<vmem>>, vector<16x256xbf16>,
    %c0_538 = arith.constant 0 : index
    %c16_539 = arith.constant 16 : index
    %553 = vector.load %arg17[%c0_538, %c16_539] : memref<16x290xf32, #tpu.memory_space<vmem>>, vector<16x256xf32>
    %554 = arith.mulf %553, %539 : vector<16x256xf32>
    %555 = arith.truncf %554 : vector<16x256xf32> to vector<16x256xbf16>
    %c48_540 = arith.constant 48 : index
    %c0_541 = arith.constant 0 : index
    %556 = vector.load %arg18[%c48_540, %c0_541] : memref<144x256xbf16, #tpu.memory_space<vmem>>, vector<16x256xbf16>
    tpu.vector_store %arg18[%c48_540, %c0_541], %555 {strides = array<i32>} : memref<144x256xbf16, #tpu.memory_space<vmem>>, vector<16x256xbf16>,
    %c0_542 = arith.constant 0 : index
    %c17_543 = arith.constant 17 : index
    %557 = vector.load %arg17[%c0_542, %c17_543] : memref<16x290xf32, #tpu.memory_space<vmem>>, vector<16x256xf32>
    %558 = arith.truncf %557 : vector<16x256xf32> to vector<16x256xbf16>
    %c64_544 = arith.constant 64 : index
    %c0_545 = arith.constant 0 : index
    %559 = vector.load %arg18[%c64_544, %c0_545] : memref<144x256xbf16, #tpu.memory_space<vmem>>, vector<16x256xbf16>
    tpu.vector_store %arg18[%c64_544, %c0_545], %558 {strides = array<i32>} : memref<144x256xbf16, #tpu.memory_space<vmem>>, vector<16x256xbf16>,
    %c0_546 = arith.constant 0 : index
    %c18_547 = arith.constant 18 : index
    %560 = vector.load %arg17[%c0_546, %c18_547] : memref<16x290xf32, #tpu.memory_space<vmem>>, vector<16x256xf32>
    %561 = arith.mulf %560, %541 : vector<16x256xf32>
    %562 = arith.truncf %561 : vector<16x256xf32> to vector<16x256xbf16>
    %c80_548 = arith.constant 80 : index
    %c0_549 = arith.constant 0 : index
    %563 = vector.load %arg18[%c80_548, %c0_549] : memref<144x256xbf16, #tpu.memory_space<vmem>>, vector<16x256xbf16>
    tpu.vector_store %arg18[%c80_548, %c0_549], %562 {strides = array<i32>} : memref<144x256xbf16, #tpu.memory_space<vmem>>, vector<16x256xbf16>,
    %c0_550 = arith.constant 0 : index
    %c32_551 = arith.constant 32 : index
    %564 = vector.load %arg17[%c0_550, %c32_551] : memref<16x290xf32, #tpu.memory_space<vmem>>, vector<16x256xf32>
    %565 = arith.mulf %564, %539 : vector<16x256xf32>
    %566 = arith.truncf %565 : vector<16x256xf32> to vector<16x256xbf16>
    %c96_552 = arith.constant 96 : index
    %c0_553 = arith.constant 0 : index
    %567 = vector.load %arg18[%c96_552, %c0_553] : memref<144x256xbf16, #tpu.memory_space<vmem>>, vector<16x256xbf16>
    tpu.vector_store %arg18[%c96_552, %c0_553], %566 {strides = array<i32>} : memref<144x256xbf16, #tpu.memory_space<vmem>>, vector<16x256xbf16>,
    %c0_554 = arith.constant 0 : index
    %c33_555 = arith.constant 33 : index
    %568 = vector.load %arg17[%c0_554, %c33_555] : memref<16x290xf32, #tpu.memory_space<vmem>>, vector<16x256xf32>
    %569 = arith.truncf %568 : vector<16x256xf32> to vector<16x256xbf16>
    %c112_556 = arith.constant 112 : index
    %c0_557 = arith.constant 0 : index
    %570 = vector.load %arg18[%c112_556, %c0_557] : memref<144x256xbf16, #tpu.memory_space<vmem>>, vector<16x256xbf16>
    tpu.vector_store %arg18[%c112_556, %c0_557], %569 {strides = array<i32>} : memref<144x256xbf16, #tpu.memory_space<vmem>>, vector<16x256xbf16>,
    %c0_558 = arith.constant 0 : index
    %c34_559 = arith.constant 34 : index
    %571 = vector.load %arg17[%c0_558, %c34_559] : memref<16x290xf32, #tpu.memory_space<vmem>>, vector<16x256xf32>
    %572 = arith.mulf %571, %541 : vector<16x256xf32>
    %573 = arith.truncf %572 : vector<16x256xf32> to vector<16x256xbf16>
    %c128_560 = arith.constant 128 : index
    %c0_561 = arith.constant 0 : index
    %574 = vector.load %arg18[%c128_560, %c0_561] : memref<144x256xbf16, #tpu.memory_space<vmem>>, vector<16x256xbf16>
    tpu.vector_store %arg18[%c128_560, %c0_561], %573 {strides = array<i32>} : memref<144x256xbf16, #tpu.memory_space<vmem>>, vector<16x256xbf16>,
    %c0_562 = arith.constant 0 : index
    %c0_563 = arith.constant 0 : index
    %575 = vector.load %arg10[%c0_562, %c0_563] : memref<8x144xbf16, #tpu.memory_space<vmem>>, vector<8x144xbf16>
    %c0_564 = arith.constant 0 : index
    %c0_565 = arith.constant 0 : index
    %576 = vector.load %arg18[%c0_564, %c0_565] : memref<144x256xbf16, #tpu.memory_space<vmem>>, vector<144x256xbf16>
    %cst_566 = arith.constant dense<0.000000e+00> : vector<8x256xf32>
    %577 = tpu.matmul %575, %576, %cst_566 {dimension_numbers = #tpu.dot_dimension_numbers<[1], [0], [0], [1], [0, 0, 1, 1], [], []>} : vector<8x144xbf16>, vector<144x256xbf16>, vector<8x256xf32> -> vector<8x256xf32>
    %c0_567 = arith.constant 0 : index
    %c0_568 = arith.constant 0 : index
    %578 = vector.load %arg11[%c0_567, %c0_568] : memref<8x1xf32, #tpu.memory_space<vmem>>, vector<8x1xf32>
    %579 = vector.broadcast %578 : vector<8x1xf32> to vector<8x256xf32>
    %580 = arith.addf %577, %579 : vector<8x256xf32>
    %cst_569 = arith.constant 0.000000e+00 : f32
    %581 = vector.broadcast %cst_569 : f32 to vector<8x256xf32>
    %582 = arith.maximumf %580, %581 : vector<8x256xf32>
    %583 = arith.addf %487, %582 : vector<8x256xf32>
    %cst_570 = arith.constant 0.333333343 : f32
    %584 = vector.broadcast %cst_570 : f32 to vector<8x256xf32>
    %585 = arith.mulf %583, %584 : vector<8x256xf32>
    %586 = arith.addf %294, %585 : vector<8x256xf32>
    %c0_571 = arith.constant 0 : index
    %c17_572 = arith.constant 17 : index
    %587 = vector.load %arg17[%c0_571, %c17_572] : memref<16x290xf32, #tpu.memory_space<vmem>>, vector<8x256xf32>
    tpu.vector_store %arg17[%c0_571, %c17_572], %586 {strides = array<i32>} : memref<16x290xf32, #tpu.memory_space<vmem>>, vector<8x256xf32>,
    %588 = vector.shape_cast %2 : vector<1x256xf32> to vector<1x256xf32>
    %589 = vector.broadcast %588 : vector<1x256xf32> to vector<16x256xf32>
    %590 = vector.shape_cast %3 : vector<1x256xf32> to vector<1x256xf32>
    %591 = vector.broadcast %590 : vector<1x256xf32> to vector<16x256xf32>
    %c0_573 = arith.constant 0 : index
    %c0_574 = arith.constant 0 : index
    %592 = vector.load %arg17[%c0_573, %c0_574] : memref<16x290xf32, #tpu.memory_space<vmem>>, vector<16x256xf32>
    %593 = arith.mulf %592, %589 : vector<16x256xf32>
    %594 = arith.truncf %593 : vector<16x256xf32> to vector<16x256xbf16>
    %c0_575 = arith.constant 0 : index
    %c0_576 = arith.constant 0 : index
    %595 = vector.load %arg18[%c0_575, %c0_576] : memref<144x256xbf16, #tpu.memory_space<vmem>>, vector<16x256xbf16>
    tpu.vector_store %arg18[%c0_575, %c0_576], %594 {strides = array<i32>} : memref<144x256xbf16, #tpu.memory_space<vmem>>, vector<16x256xbf16>,
    %c0_577 = arith.constant 0 : index
    %c1_578 = arith.constant 1 : index
    %596 = vector.load %arg17[%c0_577, %c1_578] : memref<16x290xf32, #tpu.memory_space<vmem>>, vector<16x256xf32>
    %597 = arith.truncf %596 : vector<16x256xf32> to vector<16x256xbf16>
    %c16_579 = arith.constant 16 : index
    %c0_580 = arith.constant 0 : index
    %598 = vector.load %arg18[%c16_579, %c0_580] : memref<144x256xbf16, #tpu.memory_space<vmem>>, vector<16x256xbf16>
    tpu.vector_store %arg18[%c16_579, %c0_580], %597 {strides = array<i32>} : memref<144x256xbf16, #tpu.memory_space<vmem>>, vector<16x256xbf16>,
    %c0_581 = arith.constant 0 : index
    %c2_582 = arith.constant 2 : index
    %599 = vector.load %arg17[%c0_581, %c2_582] : memref<16x290xf32, #tpu.memory_space<vmem>>, vector<16x256xf32>
    %600 = arith.mulf %599, %591 : vector<16x256xf32>
    %601 = arith.truncf %600 : vector<16x256xf32> to vector<16x256xbf16>
    %c32_583 = arith.constant 32 : index
    %c0_584 = arith.constant 0 : index
    %602 = vector.load %arg18[%c32_583, %c0_584] : memref<144x256xbf16, #tpu.memory_space<vmem>>, vector<16x256xbf16>
    tpu.vector_store %arg18[%c32_583, %c0_584], %601 {strides = array<i32>} : memref<144x256xbf16, #tpu.memory_space<vmem>>, vector<16x256xbf16>,
    %c0_585 = arith.constant 0 : index
    %c16_586 = arith.constant 16 : index
    %603 = vector.load %arg17[%c0_585, %c16_586] : memref<16x290xf32, #tpu.memory_space<vmem>>, vector<16x256xf32>
    %604 = arith.mulf %603, %589 : vector<16x256xf32>
    %605 = arith.truncf %604 : vector<16x256xf32> to vector<16x256xbf16>
    %c48_587 = arith.constant 48 : index
    %c0_588 = arith.constant 0 : index
    %606 = vector.load %arg18[%c48_587, %c0_588] : memref<144x256xbf16, #tpu.memory_space<vmem>>, vector<16x256xbf16>
    tpu.vector_store %arg18[%c48_587, %c0_588], %605 {strides = array<i32>} : memref<144x256xbf16, #tpu.memory_space<vmem>>, vector<16x256xbf16>,
    %c0_589 = arith.constant 0 : index
    %c17_590 = arith.constant 17 : index
    %607 = vector.load %arg17[%c0_589, %c17_590] : memref<16x290xf32, #tpu.memory_space<vmem>>, vector<16x256xf32>
    %608 = arith.truncf %607 : vector<16x256xf32> to vector<16x256xbf16>
    %c64_591 = arith.constant 64 : index
    %c0_592 = arith.constant 0 : index
    %609 = vector.load %arg18[%c64_591, %c0_592] : memref<144x256xbf16, #tpu.memory_space<vmem>>, vector<16x256xbf16>
    tpu.vector_store %arg18[%c64_591, %c0_592], %608 {strides = array<i32>} : memref<144x256xbf16, #tpu.memory_space<vmem>>, vector<16x256xbf16>,
    %c0_593 = arith.constant 0 : index
    %c18_594 = arith.constant 18 : index
    %610 = vector.load %arg17[%c0_593, %c18_594] : memref<16x290xf32, #tpu.memory_space<vmem>>, vector<16x256xf32>
    %611 = arith.mulf %610, %591 : vector<16x256xf32>
    %612 = arith.truncf %611 : vector<16x256xf32> to vector<16x256xbf16>
    %c80_595 = arith.constant 80 : index
    %c0_596 = arith.constant 0 : index
    %613 = vector.load %arg18[%c80_595, %c0_596] : memref<144x256xbf16, #tpu.memory_space<vmem>>, vector<16x256xbf16>
    tpu.vector_store %arg18[%c80_595, %c0_596], %612 {strides = array<i32>} : memref<144x256xbf16, #tpu.memory_space<vmem>>, vector<16x256xbf16>,
    %c0_597 = arith.constant 0 : index
    %c32_598 = arith.constant 32 : index
    %614 = vector.load %arg17[%c0_597, %c32_598] : memref<16x290xf32, #tpu.memory_space<vmem>>, vector<16x256xf32>
    %615 = arith.mulf %614, %589 : vector<16x256xf32>
    %616 = arith.truncf %615 : vector<16x256xf32> to vector<16x256xbf16>
    %c96_599 = arith.constant 96 : index
    %c0_600 = arith.constant 0 : index
    %617 = vector.load %arg18[%c96_599, %c0_600] : memref<144x256xbf16, #tpu.memory_space<vmem>>, vector<16x256xbf16>
    tpu.vector_store %arg18[%c96_599, %c0_600], %616 {strides = array<i32>} : memref<144x256xbf16, #tpu.memory_space<vmem>>, vector<16x256xbf16>,
    %c0_601 = arith.constant 0 : index
    %c33_602 = arith.constant 33 : index
    %618 = vector.load %arg17[%c0_601, %c33_602] : memref<16x290xf32, #tpu.memory_space<vmem>>, vector<16x256xf32>
    %619 = arith.truncf %618 : vector<16x256xf32> to vector<16x256xbf16>
    %c112_603 = arith.constant 112 : index
    %c0_604 = arith.constant 0 : index
    %620 = vector.load %arg18[%c112_603, %c0_604] : memref<144x256xbf16, #tpu.memory_space<vmem>>, vector<16x256xbf16>
    tpu.vector_store %arg18[%c112_603, %c0_604], %619 {strides = array<i32>} : memref<144x256xbf16, #tpu.memory_space<vmem>>, vector<16x256xbf16>,
    %c0_605 = arith.constant 0 : index
    %c34_606 = arith.constant 34 : index
    %621 = vector.load %arg17[%c0_605, %c34_606] : memref<16x290xf32, #tpu.memory_space<vmem>>, vector<16x256xf32>
    %622 = arith.mulf %621, %591 : vector<16x256xf32>
    %623 = arith.truncf %622 : vector<16x256xf32> to vector<16x256xbf16>
    %c128_607 = arith.constant 128 : index
    %c0_608 = arith.constant 0 : index
    %624 = vector.load %arg18[%c128_607, %c0_608] : memref<144x256xbf16, #tpu.memory_space<vmem>>, vector<16x256xbf16>
    tpu.vector_store %arg18[%c128_607, %c0_608], %623 {strides = array<i32>} : memref<144x256xbf16, #tpu.memory_space<vmem>>, vector<16x256xbf16>,
    %c0_609 = arith.constant 0 : index
    %c0_610 = arith.constant 0 : index
    %625 = vector.load %arg12[%c0_609, %c0_610] : memref<16x144xbf16, #tpu.memory_space<vmem>>, vector<16x144xbf16>
    %c0_611 = arith.constant 0 : index
    %c0_612 = arith.constant 0 : index
    %626 = vector.load %arg18[%c0_611, %c0_612] : memref<144x256xbf16, #tpu.memory_space<vmem>>, vector<144x256xbf16>
    %cst_613 = arith.constant dense<0.000000e+00> : vector<16x256xf32>
    %627 = tpu.matmul %625, %626, %cst_613 {dimension_numbers = #tpu.dot_dimension_numbers<[1], [0], [0], [1], [0, 0, 1, 1], [], []>} : vector<16x144xbf16>, vector<144x256xbf16>, vector<16x256xf32> -> vector<16x256xf32>
    %c0_614 = arith.constant 0 : index
    %c0_615 = arith.constant 0 : index
    %628 = vector.load %arg13[%c0_614, %c0_615] : memref<16x1xf32, #tpu.memory_space<vmem>>, vector<16x1xf32>
    %629 = vector.broadcast %628 : vector<16x1xf32> to vector<16x256xf32>
    %630 = arith.addf %627, %629 : vector<16x256xf32>
    %cst_616 = arith.constant 0.000000e+00 : f32
    %631 = vector.broadcast %cst_616 : f32 to vector<16x256xf32>
    %632 = arith.maximumf %630, %631 : vector<16x256xf32>
    %c0_617 = arith.constant 0 : index
    %c17_618 = arith.constant 17 : index
    %633 = vector.load %arg17[%c0_617, %c17_618] : memref<16x290xf32, #tpu.memory_space<vmem>>, vector<16x256xf32>
    tpu.vector_store %arg17[%c0_617, %c17_618], %632 {strides = array<i32>} : memref<16x290xf32, #tpu.memory_space<vmem>>, vector<16x256xf32>,
    %634 = vector.shape_cast %2 : vector<1x256xf32> to vector<1x256xf32>
    %635 = vector.broadcast %634 : vector<1x256xf32> to vector<16x256xf32>
    %636 = vector.shape_cast %3 : vector<1x256xf32> to vector<1x256xf32>
    %637 = vector.broadcast %636 : vector<1x256xf32> to vector<16x256xf32>
    %c0_619 = arith.constant 0 : index
    %c0_620 = arith.constant 0 : index
    %638 = vector.load %arg17[%c0_619, %c0_620] : memref<16x290xf32, #tpu.memory_space<vmem>>, vector<16x256xf32>
    %639 = arith.mulf %638, %635 : vector<16x256xf32>
    %640 = arith.truncf %639 : vector<16x256xf32> to vector<16x256xbf16>
    %c0_621 = arith.constant 0 : index
    %c0_622 = arith.constant 0 : index
    %641 = vector.load %arg18[%c0_621, %c0_622] : memref<144x256xbf16, #tpu.memory_space<vmem>>, vector<16x256xbf16>
    tpu.vector_store %arg18[%c0_621, %c0_622], %640 {strides = array<i32>} : memref<144x256xbf16, #tpu.memory_space<vmem>>, vector<16x256xbf16>,
    %c0_623 = arith.constant 0 : index
    %c1_624 = arith.constant 1 : index
    %642 = vector.load %arg17[%c0_623, %c1_624] : memref<16x290xf32, #tpu.memory_space<vmem>>, vector<16x256xf32>
    %643 = arith.truncf %642 : vector<16x256xf32> to vector<16x256xbf16>
    %c16_625 = arith.constant 16 : index
    %c0_626 = arith.constant 0 : index
    %644 = vector.load %arg18[%c16_625, %c0_626] : memref<144x256xbf16, #tpu.memory_space<vmem>>, vector<16x256xbf16>
    tpu.vector_store %arg18[%c16_625, %c0_626], %643 {strides = array<i32>} : memref<144x256xbf16, #tpu.memory_space<vmem>>, vector<16x256xbf16>,
    %c0_627 = arith.constant 0 : index
    %c2_628 = arith.constant 2 : index
    %645 = vector.load %arg17[%c0_627, %c2_628] : memref<16x290xf32, #tpu.memory_space<vmem>>, vector<16x256xf32>
    %646 = arith.mulf %645, %637 : vector<16x256xf32>
    %647 = arith.truncf %646 : vector<16x256xf32> to vector<16x256xbf16>
    %c32_629 = arith.constant 32 : index
    %c0_630 = arith.constant 0 : index
    %648 = vector.load %arg18[%c32_629, %c0_630] : memref<144x256xbf16, #tpu.memory_space<vmem>>, vector<16x256xbf16>
    tpu.vector_store %arg18[%c32_629, %c0_630], %647 {strides = array<i32>} : memref<144x256xbf16, #tpu.memory_space<vmem>>, vector<16x256xbf16>,
    %c0_631 = arith.constant 0 : index
    %c16_632 = arith.constant 16 : index
    %649 = vector.load %arg17[%c0_631, %c16_632] : memref<16x290xf32, #tpu.memory_space<vmem>>, vector<16x256xf32>
    %650 = arith.mulf %649, %635 : vector<16x256xf32>
    %651 = arith.truncf %650 : vector<16x256xf32> to vector<16x256xbf16>
    %c48_633 = arith.constant 48 : index
    %c0_634 = arith.constant 0 : index
    %652 = vector.load %arg18[%c48_633, %c0_634] : memref<144x256xbf16, #tpu.memory_space<vmem>>, vector<16x256xbf16>
    tpu.vector_store %arg18[%c48_633, %c0_634], %651 {strides = array<i32>} : memref<144x256xbf16, #tpu.memory_space<vmem>>, vector<16x256xbf16>,
    %c0_635 = arith.constant 0 : index
    %c17_636 = arith.constant 17 : index
    %653 = vector.load %arg17[%c0_635, %c17_636] : memref<16x290xf32, #tpu.memory_space<vmem>>, vector<16x256xf32>
    %654 = arith.truncf %653 : vector<16x256xf32> to vector<16x256xbf16>
    %c64_637 = arith.constant 64 : index
    %c0_638 = arith.constant 0 : index
    %655 = vector.load %arg18[%c64_637, %c0_638] : memref<144x256xbf16, #tpu.memory_space<vmem>>, vector<16x256xbf16>
    tpu.vector_store %arg18[%c64_637, %c0_638], %654 {strides = array<i32>} : memref<144x256xbf16, #tpu.memory_space<vmem>>, vector<16x256xbf16>,
    %c0_639 = arith.constant 0 : index
    %c18_640 = arith.constant 18 : index
    %656 = vector.load %arg17[%c0_639, %c18_640] : memref<16x290xf32, #tpu.memory_space<vmem>>, vector<16x256xf32>
    %657 = arith.mulf %656, %637 : vector<16x256xf32>
    %658 = arith.truncf %657 : vector<16x256xf32> to vector<16x256xbf16>
    %c80_641 = arith.constant 80 : index
    %c0_642 = arith.constant 0 : index
    %659 = vector.load %arg18[%c80_641, %c0_642] : memref<144x256xbf16, #tpu.memory_space<vmem>>, vector<16x256xbf16>
    tpu.vector_store %arg18[%c80_641, %c0_642], %658 {strides = array<i32>} : memref<144x256xbf16, #tpu.memory_space<vmem>>, vector<16x256xbf16>,
    %c0_643 = arith.constant 0 : index
    %c32_644 = arith.constant 32 : index
    %660 = vector.load %arg17[%c0_643, %c32_644] : memref<16x290xf32, #tpu.memory_space<vmem>>, vector<16x256xf32>
    %661 = arith.mulf %660, %635 : vector<16x256xf32>
    %662 = arith.truncf %661 : vector<16x256xf32> to vector<16x256xbf16>
    %c96_645 = arith.constant 96 : index
    %c0_646 = arith.constant 0 : index
    %663 = vector.load %arg18[%c96_645, %c0_646] : memref<144x256xbf16, #tpu.memory_space<vmem>>, vector<16x256xbf16>
    tpu.vector_store %arg18[%c96_645, %c0_646], %662 {strides = array<i32>} : memref<144x256xbf16, #tpu.memory_space<vmem>>, vector<16x256xbf16>,
    %c0_647 = arith.constant 0 : index
    %c33_648 = arith.constant 33 : index
    %664 = vector.load %arg17[%c0_647, %c33_648] : memref<16x290xf32, #tpu.memory_space<vmem>>, vector<16x256xf32>
    %665 = arith.truncf %664 : vector<16x256xf32> to vector<16x256xbf16>
    %c112_649 = arith.constant 112 : index
    %c0_650 = arith.constant 0 : index
    %666 = vector.load %arg18[%c112_649, %c0_650] : memref<144x256xbf16, #tpu.memory_space<vmem>>, vector<16x256xbf16>
    tpu.vector_store %arg18[%c112_649, %c0_650], %665 {strides = array<i32>} : memref<144x256xbf16, #tpu.memory_space<vmem>>, vector<16x256xbf16>,
    %c0_651 = arith.constant 0 : index
    %c34_652 = arith.constant 34 : index
    %667 = vector.load %arg17[%c0_651, %c34_652] : memref<16x290xf32, #tpu.memory_space<vmem>>, vector<16x256xf32>
    %668 = arith.mulf %667, %637 : vector<16x256xf32>
    %669 = arith.truncf %668 : vector<16x256xf32> to vector<16x256xbf16>
    %c128_653 = arith.constant 128 : index
    %c0_654 = arith.constant 0 : index
    %670 = vector.load %arg18[%c128_653, %c0_654] : memref<144x256xbf16, #tpu.memory_space<vmem>>, vector<16x256xbf16>
    tpu.vector_store %arg18[%c128_653, %c0_654], %669 {strides = array<i32>} : memref<144x256xbf16, #tpu.memory_space<vmem>>, vector<16x256xbf16>,
    %c0_655 = arith.constant 0 : index
    %c0_656 = arith.constant 0 : index
    %671 = vector.load %arg14[%c0_655, %c0_656] : memref<5x144xbf16, #tpu.memory_space<vmem>>, vector<5x144xbf16>
    %c0_657 = arith.constant 0 : index
    %c0_658 = arith.constant 0 : index
    %672 = vector.load %arg18[%c0_657, %c0_658] : memref<144x256xbf16, #tpu.memory_space<vmem>>, vector<144x256xbf16>
    %cst_659 = arith.constant dense<0.000000e+00> : vector<5x256xf32>
    %673 = tpu.matmul %671, %672, %cst_659 {dimension_numbers = #tpu.dot_dimension_numbers<[1], [0], [0], [1], [0, 0, 1, 1], [], []>} : vector<5x144xbf16>, vector<144x256xbf16>, vector<5x256xf32> -> vector<5x256xf32>
    %c0_660 = arith.constant 0 : index
    %c0_661 = arith.constant 0 : index
    %674 = vector.load %arg15[%c0_660, %c0_661] : memref<5x1xf32, #tpu.memory_space<vmem>>, vector<5x1xf32>
    %675 = vector.broadcast %674 : vector<5x1xf32> to vector<5x256xf32>
    %676 = arith.addf %673, %675 : vector<5x256xf32>
    %c0_662 = arith.constant 0 : index
    %c0_663 = arith.constant 0 : index
    %c0_664 = arith.constant 0 : index
    %677 = vector.load %arg16[%c0_662, %c0_663, %c0_664] : memref<1x5x256xf32, #tpu.memory_space<vmem>>, vector<1x5x256xf32>
    %678 = vector.shape_cast %677 : vector<1x5x256xf32> to vector<5x256xf32>
    %679 = vector.shape_cast %676 : vector<5x256xf32> to vector<1x5x256xf32>
    tpu.vector_store %arg16[%c0_662, %c0_663, %c0_664], %679 {strides = array<i32>} : memref<1x5x256xf32, #tpu.memory_space<vmem>>, vector<1x5x256xf32>,
    return
  }
  func.func @transform_0(%arg0: i32) -> (i32, i32, i32, i32) {
    %c0_i32 = arith.constant 0 : i32
    %c0_i32_0 = arith.constant 0 : i32
    %c0_i32_1 = arith.constant 0 : i32
    %c0_i32_2 = arith.constant 0 : i32
    return %arg0, %c0_i32, %c0_i32_0, %c0_i32_1 : i32, i32, i32, i32
  }
  func.func @transform_1(%arg0: i32) -> (i32, i32, i32, i32) {
    %c0_i32 = arith.constant 0 : i32
    %c0_i32_0 = arith.constant 0 : i32
    %c0_i32_1 = arith.constant 0 : i32
    %c0_i32_2 = arith.constant 0 : i32
    return %arg0, %c0_i32, %c0_i32_0, %c0_i32_1 : i32, i32, i32, i32
  }
  func.func @transform_2(%arg0: i32) -> (i32, i32) {
    %c0_i32 = arith.constant 0 : i32
    %c0_i32_0 = arith.constant 0 : i32
    %c0_i32_1 = arith.constant 0 : i32
    return %c0_i32, %c0_i32_0 : i32, i32
  }
  func.func @transform_3(%arg0: i32) -> (i32, i32) {
    %c0_i32 = arith.constant 0 : i32
    %c0_i32_0 = arith.constant 0 : i32
    %c0_i32_1 = arith.constant 0 : i32
    return %c0_i32, %c0_i32_0 : i32, i32
  }
  func.func @transform_4(%arg0: i32) -> (i32, i32) {
    %c0_i32 = arith.constant 0 : i32
    %c0_i32_0 = arith.constant 0 : i32
    %c0_i32_1 = arith.constant 0 : i32
    return %c0_i32, %c0_i32_0 : i32, i32
  }
  func.func @transform_5(%arg0: i32) -> (i32, i32) {
    %c0_i32 = arith.constant 0 : i32
    %c0_i32_0 = arith.constant 0 : i32
    %c0_i32_1 = arith.constant 0 : i32
    return %c0_i32, %c0_i32_0 : i32, i32
  }
  func.func @transform_6(%arg0: i32) -> (i32, i32) {
    %c0_i32 = arith.constant 0 : i32
    %c0_i32_0 = arith.constant 0 : i32
    %c0_i32_1 = arith.constant 0 : i32
    return %c0_i32, %c0_i32_0 : i32, i32
  }
  func.func @transform_7(%arg0: i32) -> (i32, i32) {
    %c0_i32 = arith.constant 0 : i32
    %c0_i32_0 = arith.constant 0 : i32
    %c0_i32_1 = arith.constant 0 : i32
    return %c0_i32, %c0_i32_0 : i32, i32
  }
  func.func @transform_8(%arg0: i32) -> (i32, i32) {
    %c0_i32 = arith.constant 0 : i32
    %c0_i32_0 = arith.constant 0 : i32
    %c0_i32_1 = arith.constant 0 : i32
    return %c0_i32, %c0_i32_0 : i32, i32
  }
  func.func @transform_9(%arg0: i32) -> (i32, i32) {
    %c0_i32 = arith.constant 0 : i32
    %c0_i32_0 = arith.constant 0 : i32
    %c0_i32_1 = arith.constant 0 : i32
    return %c0_i32, %c0_i32_0 : i32, i32
  }
  func.func @transform_10(%arg0: i32) -> (i32, i32) {
    %c0_i32 = arith.constant 0 : i32
    %c0_i32_0 = arith.constant 0 : i32
    %c0_i32_1 = arith.constant 0 : i32
    return %c0_i32, %c0_i32_0 : i32, i32
  }
  func.func @transform_11(%arg0: i32) -> (i32, i32) {
    %c0_i32 = arith.constant 0 : i32
    %c0_i32_0 = arith.constant 0 : i32
    %c0_i32_1 = arith.constant 0 : i32
    return %c0_i32, %c0_i32_0 : i32, i32
  }
  func.func @transform_12(%arg0: i32) -> (i32, i32) {
    %c0_i32 = arith.constant 0 : i32
    %c0_i32_0 = arith.constant 0 : i32
    %c0_i32_1 = arith.constant 0 : i32
    return %c0_i32, %c0_i32_0 : i32, i32
  }
  func.func @transform_13(%arg0: i32) -> (i32, i32) {
    %c0_i32 = arith.constant 0 : i32
    %c0_i32_0 = arith.constant 0 : i32
    %c0_i32_1 = arith.constant 0 : i32
    return %c0_i32, %c0_i32_0 : i32, i32
  }
  func.func @transform_14(%arg0: i32) -> (i32, i32) {
    %c0_i32 = arith.constant 0 : i32
    %c0_i32_0 = arith.constant 0 : i32
    %c0_i32_1 = arith.constant 0 : i32
    return %c0_i32, %c0_i32_0 : i32, i32
  }
  func.func @transform_15(%arg0: i32) -> (i32, i32, i32) {
    %c0_i32 = arith.constant 0 : i32
    %c0_i32_0 = arith.constant 0 : i32
    %c0_i32_1 = arith.constant 0 : i32
    return %arg0, %c0_i32, %c0_i32_0 : i32, i32, i32
  }
}

</mosaic_0001>

<bundles_post_ra>
// kernel: forward.1
= control target key start
LH: loop header
LB: loop body
LE: loop exit
PB: predicated region body
PF: predicated region fallthrough
CT: control target
= control target key end

     0   :  { %s5516_s18 = smov 0   ;;  %s7626_s0 = inlined_call_operand.vmem [shape: bf16[2,3,4,256], index: 0, kind: input, shape index: {}]   ;;  %s7627_s1 = inlined_call_operand.vmem [shape: bf16[2,3,4,256], index: 1, kind: input, shape index: {}]   ;;  %s7628_s2 = inlined_call_operand.vmem [shape: f32[2,256], index: 2, kind: input, shape index: {}]   ;;  %s7629_s3 = inlined_call_operand.vmem [shape: bf16[4,144], index: 3, kind: input, shape index: {}]   ;;  %s7630_s4 = inlined_call_operand.vmem [shape: f32[4,1], index: 4, kind: input, shape index: {}]   ;;  %s7631_s5 = inlined_call_operand.vmem [shape: bf16[8,144], index: 5, kind: input, shape index: {}]   ;;  %s7632_s6 = inlined_call_operand.vmem [shape: f32[8,1], index: 6, kind: input, shape index: {}]   ;;  %s7633_s7 = inlined_call_operand.vmem [shape: bf16[4,144], index: 7, kind: input, shape index: {}]   ;;  %s7634_s8 = inlined_call_operand.vmem [shape: f32[4,1], index: 8, kind: input, shape index: {}]   ;;  %s7635_s9 = inlined_call_operand.vmem [shape: bf16[8,144], index: 9, kind: input, shape index: {}]   ;;  %s7636_s10 = inlined_call_operand.vmem [shape: f32[8,1], index: 10, kind: input, shape index: {}]   ;;  %s7637_s11 = inlined_call_operand.vmem [shape: bf16[16,144], index: 11, kind: input, shape index: {}]   ;;  %s7638_s12 = inlined_call_operand.vmem [shape: f32[16,1], index: 12, kind: input, shape index: {}]   ;;  %s7639_s13 = inlined_call_operand.vmem [shape: bf16[5,144], index: 13, kind: input, shape index: {}]   ;;  %s7640_s14 = inlined_call_operand.vmem [shape: f32[5,1], index: 14, kind: input, shape index: {}]   ;;  %s7641_s15 = inlined_call_operand.vmem [shape: f32[2,5,256], index: 15, kind: output, shape index: {}]  }
   0x1 LB: > { %s5290_s19 = sadd.s32 4294967295, %s5418_s18   ;;  %p5294_p0 = scmp.ge.s32.totalorder %s5418_s18, 1  ;;  %s5418_s18 = sphi %s5516_s18, %s25_s18  }
   0x2   : > { %p447_p1 = scmp.lt.s32.totalorder %s5418_s18, 3 }
   0x4   : > { %p448_p2 = pnand %p5294_p0, %p447_p1 }
   0x6   : > { %451 = sbr.rel (%p448_p2) target bundleno = 4624 (0x1210), region = 80 }
   0xd   : > { %v545_v0 = vlaneseq  ;;  %p500_p3 = scmp.lt.s32.totalorder %s5290_s19, 1  ;;  %v5420_v1 = vmov 0.0   ;;  %vm518_vm0 = vcmask 277504   ;;  %v5299_v3 = vld [vmem:[%s7628_s2 + $0x1] ss:$2 sm:$0x3] }
   0xe   : > { %516 = vst [vmem:[#allocation2] sm:$0xff] %v5420_v1  ;;  %517 = vst [vmem:[#allocation2 + $0x8] sm:$0xff] %v5420_v1  ;;  %v523_v6 = vld [vmem:[%s7628_s2] ss:$2 sm:$0x3]  ;;  %s5421_s28 = smov 2  }
   0xf   : > { %520 = vst [vmem:[#allocation2 + $0x18] sm:$0xff] %v5420_v1  ;;  %v546_v2 = vshrl.u32 %v545_v0, 7  ;;  %519 = vst.msk [vmem:[#allocation2 + $0x10] sm:$0xff] %vm518_vm0, %v5420_v1  ;;  %s7646_s19 = smov (!%p500_p3, %s5290_s19), 1  ;;  %s5422_s29 = smov 16   ;;  %vm534_vm1 = vcmask 138240  }
  0x10   : > { %522 = vst.msk [vmem:[#allocation2 + $0x28] sm:$0xff] %vm518_vm0, %v5420_v1  ;;  %s5343_s24 = smul.u32 12, %s7646_s19  ;;  %s5423_s30 = smov 17   ;;  %vm539_vm2 = vcmask 1043592   ;;  %vm542_vm3 = vcmask 134144   ;;  %vm611_vm4 = vcmask 15360  }
  0x11   : > { %v547_v4 = vsub.s32 0, %v546_v2  ;;  %v551_v5 = vsub.s32 1, %v546_v2  ;;  %s5424_s16 = smov 18   ;;  %s5425_s17 = smov 32   ;;  %vm651_vm5 = vcmask 130048   ;;  %vm756_vm6 = vcmask 261120  }
  0x12   : > { %s5545_s27 = scalar_lea.vmem %s7626_s0, %s5343_s24  ;;  %s5426_s20 = smov 34   ;;  %vm716_vm7 = vcmask 146432   ;;  %vm594_vm8 = vcmask 1039360   ;;  %vm634_vm9 = vcmask 1031168   ;;  %vm674_vm10 = vcmask 916480  }
  0x13   : > { %v563_v7 = vrot.slane %v5299_v3, %v551_v5  ;;  %v5547_v8 = vrot.slane %v523_v6, %v547_v4  ;;  %v5550_v9 = vld [vmem:[%s5545_s27] sm:$0xff]   ;;  %v559_v12 = vrot.slane %v5299_v3, %v547_v4  ;;  %v5555_v14 = vrot.slane %v523_v6, %v551_v5  ;;  %s5427_s21 = smov 127   ;;  %s5428_s22 = smov 126  }
  0x14   : > { %v527_v10 = vunpack.c.l.bf16 %v5550_v9  ;;  %s5429_s23 = smov 112   ;;  %s5430_s25 = smov 111   ;;  %vm699_vm11 = vcmask 908288   ;;  %vm739_vm12 = vcmask 900096   ;;  %vm779_vm13 = vcmask 785408  }
  0x15   : > { %609 = vrot.lane.b32.xlu1 %v563_v7, %s5421_s28  ;;  %v5576_v25 = vmul.f32 0.0, %v5555_v14  ;;  %v5603_v35 = vmul.f32 0.0, %v5547_v8  ;;  %s5431_s26 = smov 110   ;;  %vm804_vm14 = vcmask 777216   ;;  %vm843_vm15 = vcmask 769024  }
  0x16   : > { %v529_v11 = vcombine.high %v527_v10, %v527_v10 }
  0x17   : > { %v5573_v24 = vld [vmem:[#allocation2 + $0x28] sm:$0xff] }
  0x18   : > { %v5368_v13 = vpack.i.bf16 %v529_v11, %v527_v10 }
  0x19   : > { %647 = vrot.lane.b32.xlu1 %v5547_v8, %s5422_s29 }
  0x1a   : > { %5369 = vrot.lane.b32.xlu0 %v5368_v13, %s5423_s30 }
  0x1d   : > { %712 = vrot.lane.b32.xlu1 %v559_v12, %s5424_s16 }
  0x1e   : > { %607 = vrot.lane.b32.xlu0 %v559_v12, %s5421_s28  ;;  %s5432_s28 = smov 96  }
  0x21   : > { %752 = vrot.lane.b32.xlu1 %v5547_v8, %s5425_s17 }
  0x22   : > { %649 = vrot.lane.b32.xlu0 %v5555_v14, %s5422_s29 }
  0x25   : > { %817 = vrot.lane.b32.xlu1 %v559_v12, %s5426_s20 }
  0x26   : > { %714 = vrot.lane.b32.xlu0 %v563_v7, %s5424_s16 }
  0x2a   : > { %754 = vrot.lane.b32.xlu0 %v5555_v14, %s5425_s17  ;;  %s5433_s17 = smov 95  }
  0x2e   : > { %819 = vrot.lane.b32.xlu0 %v563_v7, %s5426_s20  ;;  %s5435_s20 = smov 94  }
  0x87   : > { %v5560_v18 = vpop.permute.xlu1 %609 }
  0x88   : > { %v5648_v49 = vmul.f32 %v5560_v18, %v5573_v24 }
  0x8b   : > { %v5565_v20 = vpop.permute.xlu1 %647 }
  0x8c   : > { %v5370_v15 = vpop.permute.xlu0 %5369  ;;  %v5582_v27 = vmul.f32 0.0, %v5565_v20 }
  0x8d   : > { %v5372_v16 = vunpack.i.h.bf16 %v5370_v15  ;;  %v5371_v17 = vunpack.i.l.bf16 %v5370_v15 }
  0x8f   : > { %543 = vst.msk [vmem:[#allocation2 + $0x10] sm:$0xf] %vm542_vm3, %v5372_v16  ;;  %v535_v19 = vsel %vm534_vm1, %v5371_v17, %v5372_v16  ;;  %v5650_v50 = vpop.permute.xlu1 %712 }
  0x90   : > { %540 = vst.msk [vmem:[#allocation2] sm:$0xf] %vm539_vm2, %v5371_v17  ;;  %541 = vst [vmem:[#allocation2 + $0x8] sm:$0xf] %v535_v19  ;;  %v5567_v21 = vpop.permute.xlu0 %607  ;;  %v5659_v55 = vmul.f32 0.0, %v5650_v50 }
  0x91   : > { %v5579_v26 = vmul.f32 0.0, %v5567_v21  ;;  %v5633_v44 = vsel %vm611_vm4, %v5567_v21, %v5560_v18 }
  0x92   : > { %v5644_v48 = vmul.f32 0.0, %v5633_v44 }
  0x93   : > { %v5682_v63 = vpop.permute.xlu1 %752 }
  0x94   : > { %v5615_v40 = vpop.permute.xlu0 %649  ;;  %v5691_v3 = vmul.f32 0.0, %v5682_v63 }
  0x95   : > { %v5625_v43 = vmul.f32 %v5615_v40, %v5573_v24  ;;  %v5664_v56 = vsel %vm651_vm5, %v5565_v20, %v5615_v40 }
  0x96   : > { %v5569_v22 = vld [vmem:[#allocation2 + $0x10] sm:$0xff]  ;;  %v5678_v61 = vmul.f32 0.0, %v5664_v56 }
  0x97   : > { %v5571_v23 = vld [vmem:[#allocation2] sm:$0xff]  ;;  %v5584_v28 = vld [vmem:[#allocation2 + $0x8] sm:$0xff]  ;;  %v5588_v29 = vpack.c.bf16 %v5573_v24, %v5569_v22  ;;  %v658_v42 = vmul.f32 %v5615_v40, %v5569_v22  ;;  %v618_v47 = vmul.f32 %v5560_v18, %v5569_v22 }
  0x98   : > { %v5592_v30 = vpack.c.bf16 %v5420_v1, %v5571_v23  ;;  %v616_v31 = vmul.f32 %v5567_v21, %v5571_v23  ;;  %v656_v32 = vmul.f32 %v5565_v20, %v5571_v23  ;;  %v569_v33 = vmul.f32 %v5584_v28, %v5555_v14  ;;  %v5652_v51 = vpop.permute.xlu0 %714 }
  0x99   : > { %v568_v34 = vmul.f32 %v5571_v23, %v5547_v8  ;;  %592 = vrot.lane.b32.xlu0 %v5588_v29, %s5427_s21  ;;  %v5619_v41 = vpack.c.bf16 %v5420_v1, %v5584_v28  ;;  %v664_v45 = vpack.c.bf16 %v5625_v43, %v658_v42  ;;  %v617_v46 = vmul.f32 %v5633_v44, %v5584_v28 }
  0x9a   : > { %588 = vrot.lane.b32.xlu1 %v5592_v30, %s5427_s21  ;;  %v573_v36 = vpack.c.bf16 %v5576_v25, %v569_v33  ;;  %v622_v37 = vpack.c.bf16 %v5579_v26, %v616_v31  ;;  %v662_v38 = vpack.c.bf16 %v5582_v27, %v656_v32  ;;  %v624_v53 = vpack.c.bf16 %v5648_v49, %v618_v47  ;;  %v5726_v31 = vpop.permute.xlu1 %817 }
  0x9b   : > { %v572_v39 = vpack.c.bf16 %v5603_v35, %v568_v34  ;;  %v623_v52 = vpack.c.bf16 %v5644_v48, %v617_v46  ;;  %v721_v54 = vmul.f32 %v5650_v50, %v5571_v23  ;;  %v723_v57 = vmul.f32 %v5652_v51, %v5569_v22 }
  0x9c   : > { %888 = vmatprep.subr.bf16.mxu0 %v573_v36  ;;  %v5672_v58 = vmul.f32 %v5652_v51, %v5573_v24  ;;  %v657_v60 = vmul.f32 %v5664_v56, %v5584_v28  ;;  %v5680_v62 = vpop.permute.xlu0 %754  ;;  %v761_v2 = vmul.f32 %v5682_v63, %v5571_v23  ;;  %v5706_v10 = vsel %vm716_vm7, %v5650_v50, %v5652_v51  ;;  %v5740_v36 = vld.sshfl [vmem:[%s7629_s3] sm:$0x33 pattern:$0x76325410] }
  0x9d   : > { %628 = vrot.lane.b32.xlu0 %v622_v37, %s5428_s22  ;;  %889 = vmatpush1.bf16.msra.mxu0 %v572_v39  ;;  %v727_v59 = vpack.c.bf16 %v5659_v55, %v721_v54  ;;  %v763_v5 = vmul.f32 %v5680_v62, %v5569_v22  ;;  %v5698_v6 = vmul.f32 %v5680_v62, %v5573_v24  ;;  %v5720_v17 = vmul.f32 0.0, %v5706_v10 }
  0x9e   : > { %668 = vrot.lane.b32.xlu1 %v662_v38, %s5429_s23  ;;  %v729_v0 = vpack.c.bf16 %v5672_v58, %v723_v57  ;;  %v663_v4 = vpack.c.bf16 %v5678_v61, %v657_v60  ;;  %v5702_v7 = vsel %vm756_vm6, %v5682_v63, %v5680_v62  ;;  %v767_v11 = vpack.c.bf16 %v5691_v3, %v761_v2 }
  0x9f   : > { %v762_v12 = vmul.f32 %v5702_v7, %v5584_v28  ;;  %v769_v13 = vpack.c.bf16 %v5698_v6, %v763_v5  ;;  %v5715_v15 = vmul.f32 0.0, %v5702_v7  ;;  %v722_v16 = vmul.f32 %v5706_v10, %v5584_v28 }
  0xa0   : > { %v5722_v19 = vpop.permute.xlu0 %819  ;;  %v5749_v39 = vcombine.high %v5740_v36, %v5740_v36  ;;  %v5756_v42 = vmul.f32 0.0, %v5726_v31  ;;  %v825_v46 = vmul.f32 %v5726_v31, %v5571_v23 }
  0xa1   : > { %695 = vrot.lane.b32.xlu0 %v5619_v41, %s5430_s25  ;;  %v768_v32 = vpack.c.bf16 %v5715_v15, %v762_v12  ;;  %v728_v33 = vpack.c.bf16 %v5720_v17, %v722_v16  ;;  %v5733_v34 = vsel %vm518_vm0, %v5726_v31, %v5722_v19  ;;  %v827_v47 = vmul.f32 %v5722_v19, %v5569_v22  ;;  %v869_v22 = vld [vmem:[%s7630_s4] sm:$0xf] }
  0xa2   : > { %697 = vrot.lane.b32.xlu1 %v5588_v29, %s5430_s25  ;;  %v826_v37 = vmul.f32 %v5733_v34, %v5584_v28  ;;  %v5745_v38 = vmul.f32 0.0, %v5733_v34  ;;  %5301 = vmatprep.mubr.msk.bf16.mxu0 %vm651_vm5, %v5749_v39  ;;  %v5434_v28 = vmov 0   ;;  %vm4557_vm0 = vcmask 1047688  }
  0xa3   : > { %5373 = vset.pattern.permute.xlu1 %v5434_v28  ;;  %5399 = vset.pattern.permute.xlu0 %v5434_v28 }
  0xa5   : > { %672 = vrot.lane.b32.xlu0 %v664_v45, %s5429_s23  ;;  %v832_v45 = vpack.c.bf16 %v5745_v38, %v826_v37 }
  0xa6   : > { %590 = vrot.lane.b32.xlu1 %v5619_v41, %s5427_s21 }
  0xa9   : > { %630 = vrot.lane.b32.xlu0 %v623_v52, %s5428_s22 }
  0xaa   : > { %632 = vrot.lane.b32.xlu1 %v624_v53, %s5428_s22 }
  0xad   : > { %693 = vrot.lane.b32.xlu0 %v5592_v30, %s5430_s25 }
  0xae   : > { %733 = vrot.lane.b32.xlu1 %v727_v59, %s5431_s26 }
  0xb1   : > { %737 = vrot.lane.b32.xlu0 %v729_v0, %s5431_s26 }
  0xb2   : > { %670 = vrot.lane.b32.xlu1 %v663_v4, %s5429_s23 }
  0xb5   : > { %773 = vrot.lane.b32.xlu0 %v767_v11, %s5432_s28 }
  0xb6   : > { %777 = vrot.lane.b32.xlu1 %v769_v13, %s5432_s28 }
  0xb9   : > { %775 = vrot.lane.b32.xlu0 %v768_v32, %s5432_s28 }
  0xba   : > { %735 = vrot.lane.b32.xlu1 %v728_v33, %s5431_s26 }
  0xbd   : > { %802 = vrot.lane.b32.xlu0 %v5588_v29, %s5433_s17  ;;  %v5767_v29 = vmul.f32 %v5722_v19, %v5573_v24 }
  0xbe   : > { %800 = vrot.lane.b32.xlu1 %v5619_v41, %s5433_s17  ;;  %v831_v41 = vpack.c.bf16 %v5756_v42, %v825_v46 }
  0xbf   : > { %v833_v52 = vpack.c.bf16 %v5767_v29, %v827_v47 }
  0xc1   : > { %839 = vrot.lane.b32.xlu0 %v832_v45, %s5435_s20 }
  0xc2   : > { %798 = vrot.lane.b32.xlu1 %v5592_v30, %s5433_s17 }
  0xc5   : > { %837 = vrot.lane.b32.xlu0 %v831_v41, %s5435_s20 }
  0xc6   : > { %841 = vrot.lane.b32.xlu1 %v833_v52, %s5435_s20 }
  0xca   : > { %872 = vperm.xlu1 %5373, %v869_v22  }
 0x10b   : > { %v593_v23 = vpop.permute.xlu0 %592 }
 0x10c   : > { %v589_v53 = vpop.permute.xlu1 %588 }
 0x10f   : > { %v629_v54 = vpop.permute.xlu0 %628 }
 0x110   : > { %v669_v57 = vpop.permute.xlu1 %668 }
 0x113   : > { %v696_v60 = vpop.permute.xlu0 %695 }
 0x114   : > { %v698_v59 = vpop.permute.xlu1 %697 }
 0x115   : > { %v701_v46 = vsel %vm699_vm11, %v696_v60, %v698_v59 }
 0x117   : > { %v673_v30 = vpop.permute.xlu0 %672 }
 0x118   : > { %v591_v0 = vpop.permute.xlu1 %590 }
 0x119   : > { %v596_v2 = vsel %vm594_vm8, %v591_v0, %v593_v23  ;;  %v595_v4 = vsel %vm594_vm8, %v589_v53, %v591_v0 }
 0x11a   : > { %890 = vmatprep.subr.bf16.mxu0 %v596_v2 }
 0x11b   : > { %891 = vmatpush1.bf16.msra.mxu0 %v595_v4  ;;  %v631_v5 = vpop.permute.xlu0 %630 }
 0x11c   : > { %v633_v11 = vpop.permute.xlu1 %632  ;;  %v635_v13 = vsel %vm634_vm9, %v629_v54, %v631_v5 }
 0x11d   : > { %v636_v12 = vsel %vm634_vm9, %v631_v5, %v633_v11 }
 0x11e   : > { %892 = vmatprep.subr.bf16.mxu0 %v636_v12 }
 0x11f   : > { %893 = vmatpush1.bf16.msra.mxu0 %v635_v13  ;;  %v694_v16 = vpop.permute.xlu0 %693 }
 0x120   : > { %v734_v32 = vpop.permute.xlu1 %733  ;;  %v700_v52 = vsel %vm699_vm11, %v694_v16, %v696_v60 }
 0x123   : > { %v738_v33 = vpop.permute.xlu0 %737 }
 0x124   : > { %v671_v37 = vpop.permute.xlu1 %670 }
 0x125   : > { %v676_v28 = vsel %vm674_vm10, %v671_v37, %v673_v30  ;;  %v675_v45 = vsel %vm674_vm10, %v669_v57, %v671_v37 }
 0x126   : > { %894 = vmatprep.subr.bf16.mxu0 %v676_v28 }
 0x127   : > { %895 = vmatpush1.bf16.msra.mxu0 %v675_v45  ;;  %v774_v47 = vpop.permute.xlu0 %773 }
 0x128   : > { %v778_v41 = vpop.permute.xlu1 %777  ;;  %896 = vmatprep.subr.bf16.mxu0 %v701_v46 }
 0x12b   : > { %897 = vmatpush1.bf16.msra.mxu0 %v700_v52  ;;  %v776_v22 = vpop.permute.xlu0 %775 }
 0x12c   : > { %v736_v23 = vpop.permute.xlu1 %735  ;;  %v781_v57 = vsel %vm779_vm13, %v776_v22, %v778_v41  ;;  %v780_v0 = vsel %vm779_vm13, %v774_v47, %v776_v22 }
 0x12d   : > { %v741_v53 = vsel %vm739_vm12, %v736_v23, %v738_v33  ;;  %v740_v54 = vsel %vm739_vm12, %v734_v32, %v736_v23  ;;  %v1259_v32 = vunpack.c.h.bf16 %v5550_v9 }
 0x12e   : > { %898 = vmatprep.subr.bf16.mxu0 %v741_v53 }
 0x12f   : > { %899 = vmatpush1.bf16.msra.mxu0 %v740_v54  ;;  %v803_v30 = vpop.permute.xlu0 %802  ;;  %v1261_v46 = vcombine.high %v1259_v32, %v1259_v32 }
 0x130   : > { %v801_v59 = vpop.permute.xlu1 %800  ;;  %900 = vmatprep.subr.bf16.mxu0 %v781_v57 }
 0x131   : > { %v806_v60 = vsel %vm804_vm14, %v801_v59, %v803_v30  ;;  %v5374_v53 = vpack.i.bf16 %v1261_v46, %v1259_v32 }
 0x133   : > { %901 = vmatpush1.bf16.msra.mxu0 %v780_v0  ;;  %v840_v2 = vpop.permute.xlu0 %839 }
 0x134   : > { %v799_v4 = vpop.permute.xlu1 %798  ;;  %902 = vmatprep.subr.bf16.mxu0 %v806_v60 }
 0x135   : > { %v805_v5 = vsel %vm804_vm14, %v799_v4, %v801_v59 }
 0x137   : > { %903 = vmatpush1.bf16.msra.mxu0 %v805_v5  ;;  %v838_v11 = vpop.permute.xlu0 %837 }
 0x138   : > { %v842_v12 = vpop.permute.xlu1 %841  ;;  %v844_v16 = vsel %vm843_vm15, %v838_v11, %v840_v2 }
 0x139   : > { %v845_v13 = vsel %vm843_vm15, %v840_v2, %v842_v12 }
 0x13a   : > { %904 = vmatprep.subr.bf16.mxu0 %v845_v13 }
 0x13b   : > { %905 = vmatpush1.bf16.msra.mxu0 %v844_v16 }
 0x13e   : > { %921 = vmatmul.mubr.bf16.vlgmr.msra.gmra.mrb[0].mxu0 %v5740_v36 }
 0x13f   : > { %5307 = vmatprep.mubr.msk.bf16.mxu0 %vm651_vm5, %v5749_v39 }
 0x149   : > { %v873_v33 = vpop.permute.xlu1 %872 }
 0x211   : > { %v922_v37 = vpop.f32.mrb[0].mxu0 }
 0x212   : > { %v923_v28 = vadd.f32 %v922_v37, %v873_v33  ;;  %v924_v45 = vpop.f32.mrb[1].mxu0 }
 0x213   : > { %v925_v47 = vadd.f32 %v924_v45, %v873_v33  ;;  %v926_v41 = vpop.f32.mrb[2].mxu0 }
 0x214   : > { %v929_v52 = vmax.f32 %v923_v28, 0.0  ;;  %v927_v22 = vpop.f32.mrb[3].mxu0 }
 0x215   : > { %v930_v23 = vmax.f32 %v925_v47, 0.0 }
 0x216   : > { %933 = vrot.lane.b32.xlu0 %v929_v52, %s5423_s30 }
 0x217   : > { %935 = vrot.lane.b32.xlu1 %v930_v23, %s5423_s30 }
 0x21a   : > { %5375 = vrot.lane.b32.xlu0 %v5374_v53, %s5423_s30 }
 0x288   : > { %v934_v39 = vpop.permute.xlu0 %933 }
 0x289   : > { %941 = vst.msk [vmem:[#allocation2] sm:$0xf] %vm539_vm2, %v934_v39  ;;  %v936_v9 = vpop.permute.xlu1 %935 }
 0x28a   : > { %v937_v54 = vsel %vm534_vm1, %v934_v39, %v936_v9  ;;  %943 = vst.msk [vmem:[#allocation2 + $0x10] sm:$0xf] %vm542_vm3, %v936_v9 }
 0x28b   : > { %942 = vst [vmem:[#allocation2 + $0x8] sm:$0xf] %v937_v54 }
 0x28c   : > { %v5376_v57 = vpop.permute.xlu0 %5375 }
 0x28d   : > { %v5378_v30 = vunpack.i.h.bf16 %v5376_v57  ;;  %v5377_v59 = vunpack.i.l.bf16 %v5376_v57 }
 0x28f   : > { %v1266_v60 = vsel %vm534_vm1, %v5377_v59, %v5378_v30 }
 0x290   : > { %v5805_v0 = vld [vmem:[#allocation2] sm:$0xff] }
 0x291   : > { %v5808_v2 = vld [vmem:[#allocation2 + $0x10] sm:$0xff]  ;;  %1270 = vst.msk [vmem:[#allocation2] sm:$0xf] %vm539_vm2, %v5377_v59  ;;  %v948_v5 = vmul.f32 %v5805_v0, %v5547_v8 }
 0x292   : > { %v5811_v4 = vld [vmem:[#allocation2 + $0x8] sm:$0xff]  ;;  %1272 = vst.msk [vmem:[#allocation2 + $0x10] sm:$0xf] %vm542_vm3, %v5378_v30 }
 0x293   : > { %v949_v11 = vmul.f32 %v5811_v4, %v5555_v14  ;;  %1271 = vst [vmem:[#allocation2 + $0x8] sm:$0xf] %v1266_v60  ;;  %v952_v13 = vpack.c.bf16 %v5603_v35, %v948_v5 }
 0x295   : > { %v953_v12 = vpack.c.bf16 %v5576_v25, %v949_v11 }
 0x297   : > { %1212 = vmatprep.subr.bf16.mxu1 %v953_v12 }
 0x298   : > { %1213 = vmatpush1.bf16.msra.mxu1 %v952_v13  ;;  %v1285_v16 = vld [vmem:[#allocation2] sm:$0xff] }
 0x299   : > { %v1291_v32 = vpack.c.bf16 %v5420_v1, %v1285_v16  ;;  %v1287_v33 = vld [vmem:[#allocation2 + $0x10] sm:$0xff]  ;;  %v1315_v45 = vmul.f32 %v1285_v16, %v5567_v21  ;;  %v1277_v46 = vmul.f32 %v1285_v16, %v5547_v8  ;;  %v1345_v23 = vmul.f32 %v1285_v16, %v5565_v20 }
 0x29a   : > { %v1293_v37 = vpack.c.bf16 %v5573_v24, %v1287_v33  ;;  %v1274_v28 = vld [vmem:[#allocation2 + $0x8] sm:$0xff]  ;;  %v1347_v53 = vmul.f32 %v1287_v33, %v5615_v40  ;;  %v1317_v9 = vmul.f32 %v1287_v33, %v5560_v18  ;;  %v1399_v59 = vmul.f32 %v1285_v16, %v5650_v50 }
 0x29b   : > { %1297 = vrot.lane.b32.xlu1 %v1291_v32, %s5427_s21  ;;  %v1278_v47 = vmul.f32 %v1274_v28, %v5555_v14  ;;  %v1321_v52 = vpack.c.bf16 %v5579_v26, %v1315_v45  ;;  %v1281_v22 = vpack.c.bf16 %v5603_v35, %v1277_v46  ;;  %v1292_v24 = vpack.c.bf16 %v5420_v1, %v1274_v28 }
 0x29c   : > { %1301 = vrot.lane.b32.xlu0 %v1293_v37, %s5427_s21  ;;  %v1351_v39 = vpack.c.bf16 %v5582_v27, %v1345_v23  ;;  %v1353_v54 = vpack.c.bf16 %v5625_v43, %v1347_v53  ;;  %v1316_v57 = vmul.f32 %v1274_v28, %v5633_v44  ;;  %v1323_v30 = vpack.c.bf16 %v5648_v49, %v1317_v9 }
 0x29d   : > { %v1282_v41 = vpack.c.bf16 %v5576_v25, %v1278_v47  ;;  %v1405_v5 = vpack.c.bf16 %v5659_v55, %v1399_v59  ;;  %v1346_v43 = vmul.f32 %v1274_v28, %v5664_v56  ;;  %v1401_v11 = vmul.f32 %v1287_v33, %v5652_v51 }
 0x29e   : > { %v1322_v60 = vpack.c.bf16 %v5644_v48, %v1316_v57  ;;  %v1431_v12 = vmul.f32 %v1287_v33, %v5680_v62  ;;  %v1429_v45 = vmul.f32 %v1285_v16, %v5682_v63  ;;  %v1400_v47 = vmul.f32 %v1274_v28, %v5706_v10 }
 0x29f   : > { %1385 = vrot.lane.b32.xlu1 %v1293_v37, %s5430_s25  ;;  %1545 = vmatprep.subr.bf16.mxu0 %v1282_v41  ;;  %v1352_v49 = vpack.c.bf16 %v5678_v61, %v1346_v43  ;;  %v1407_v13 = vpack.c.bf16 %v5672_v58, %v1401_v11  ;;  %v1485_v23 = vmul.f32 %v1287_v33, %v5722_v19  ;;  %v1526_v33 = vld [vmem:[%s7630_s4] sm:$0xf] }
 0x2a0   : > { %1327 = vrot.lane.b32.xlu0 %v1321_v52, %s5428_s22  ;;  %1546 = vmatpush1.bf16.msra.mxu0 %v1281_v22  ;;  %v1437_v46 = vpack.c.bf16 %v5698_v6, %v1431_v12  ;;  %v1435_v41 = vpack.c.bf16 %v5691_v3, %v1429_v45  ;;  %v1430_v52 = vmul.f32 %v1274_v28, %v5702_v7 }
 0x2a1   : > { %v1406_v58 = vpack.c.bf16 %v5720_v17, %v1400_v47  ;;  %v1484_v6 = vmul.f32 %v1274_v28, %v5733_v34  ;;  %v1491_v9 = vpack.c.bf16 %v5767_v29, %v1485_v23 }
 0x2a2   : > { %v1436_v22 = vpack.c.bf16 %v5715_v15, %v1430_v52 }
 0x2a3   : > { %1299 = vrot.lane.b32.xlu1 %v1292_v24, %s5427_s21  ;;  %v1490_v53 = vpack.c.bf16 %v5745_v38, %v1484_v6 }
 0x2a4   : > { %1383 = vrot.lane.b32.xlu0 %v1292_v24, %s5430_s25 }
 0x2a7   : > { %1357 = vrot.lane.b32.xlu1 %v1351_v39, %s5429_s23  ;;  %v1483_v39 = vmul.f32 %v1285_v16, %v5726_v31 }
 0x2a8   : > { %1361 = vrot.lane.b32.xlu0 %v1353_v54, %s5429_s23 }
 0x2a9   : > { %v1489_v54 = vpack.c.bf16 %v5756_v42, %v1483_v39 }
 0x2ab   : > { %1331 = vrot.lane.b32.xlu1 %v1323_v30, %s5428_s22 }
 0x2ac   : > { %1329 = vrot.lane.b32.xlu0 %v1322_v60, %s5428_s22 }
 0x2af   : > { %1411 = vrot.lane.b32.xlu1 %v1405_v5, %s5431_s26 }
 0x2b0   : > { %1381 = vrot.lane.b32.xlu0 %v1291_v32, %s5430_s25 }
 0x2b3   : > { %1359 = vrot.lane.b32.xlu1 %v1352_v49, %s5429_s23 }
 0x2b4   : > { %1415 = vrot.lane.b32.xlu0 %v1407_v13, %s5431_s26 }
 0x2b7   : > { %1445 = vrot.lane.b32.xlu1 %v1437_v46, %s5432_s28 }
 0x2b8   : > { %1441 = vrot.lane.b32.xlu0 %v1435_v41, %s5432_s28 }
 0x2bb   : > { %1413 = vrot.lane.b32.xlu1 %v1406_v58, %s5431_s26 }
 0x2bc   : > { %1443 = vrot.lane.b32.xlu0 %v1436_v22, %s5432_s28 }
 0x2bf   : > { %1467 = vrot.lane.b32.xlu1 %v1292_v24, %s5433_s17 }
 0x2c0   : > { %1469 = vrot.lane.b32.xlu0 %v1293_v37, %s5433_s17 }
 0x2c3   : > { %1465 = vrot.lane.b32.xlu1 %v1291_v32, %s5433_s17 }
 0x2c4   : > { %1497 = vrot.lane.b32.xlu0 %v1490_v53, %s5435_s20 }
 0x2c7   : > { %1499 = vrot.lane.b32.xlu1 %v1491_v9, %s5435_s20 }
 0x2c8   : > { %1495 = vrot.lane.b32.xlu0 %v1489_v54, %s5435_s20 }
 0x2cb   : > { %1529 = vperm.xlu1 %5373, %v1526_v33  }
 0x30d   : > { %v1298_v37 = vpop.permute.xlu1 %1297 }
 0x30e   : > { %v1302_v28 = vpop.permute.xlu0 %1301 }
 0x311   : > { %v1386_v16 = vpop.permute.xlu1 %1385 }
 0x312   : > { %v1328_v24 = vpop.permute.xlu0 %1327 }
 0x315   : > { %v1300_v32 = vpop.permute.xlu1 %1299 }
 0x316   : > { %v1384_v57 = vpop.permute.xlu0 %1383  ;;  %v1304_v30 = vsel %vm594_vm8, %v1300_v32, %v1302_v28  ;;  %v1303_v29 = vsel %vm594_vm8, %v1298_v37, %v1300_v32 }
 0x317   : > { %1547 = vmatprep.subr.bf16.mxu0 %v1304_v30  ;;  %v1388_v52 = vsel %vm699_vm11, %v1384_v57, %v1386_v16 }
 0x318   : > { %1548 = vmatpush1.bf16.msra.mxu0 %v1303_v29 }
 0x319   : > { %v1358_v59 = vpop.permute.xlu1 %1357 }
 0x31a   : > { %v1362_v60 = vpop.permute.xlu0 %1361 }
 0x31d   : > { %v1332_v5 = vpop.permute.xlu1 %1331 }
 0x31e   : > { %v1330_v43 = vpop.permute.xlu0 %1329 }
 0x31f   : > { %v1334_v11 = vsel %vm634_vm9, %v1330_v43, %v1332_v5  ;;  %v1333_v49 = vsel %vm634_vm9, %v1328_v24, %v1330_v43  ;;  %v5311_v5 = vld [vmem:[%s5545_s27 + $0x8] sm:$0xf]  ;;  %s6055_s27 = scalar_lea.vmem %s7627_s1, %s5343_s24 }
 0x320   : > { %1549 = vmatprep.subr.bf16.mxu0 %v1334_v11  ;;  %v1916_v43 = vunpack.c.l.bf16 %v5311_v5 }
 0x321   : > { %v1412_v12 = vpop.permute.xlu1 %1411  ;;  %1550 = vmatpush1.bf16.msra.mxu0 %v1333_v49 }
 0x322   : > { %v1382_v13 = vpop.permute.xlu0 %1381 }
 0x323   : > { %v1387_v6 = vsel %vm699_vm11, %v1382_v13, %v1384_v57 }
 0x325   : > { %v1360_v45 = vpop.permute.xlu1 %1359 }
 0x326   : > { %v1416_v46 = vpop.permute.xlu0 %1415  ;;  %v1364_v47 = vsel %vm674_vm10, %v1360_v45, %v1362_v60  ;;  %v1363_v41 = vsel %vm674_vm10, %v1358_v59, %v1360_v45  ;;  %v1918_v45 = vcombine.high %v1916_v43, %v1916_v43 }
 0x327   : > { %1551 = vmatprep.subr.bf16.mxu0 %v1364_v47 }
 0x328   : > { %1552 = vmatpush1.bf16.msra.mxu0 %v1363_v41 }
 0x329   : > { %v1446_v58 = vpop.permute.xlu1 %1445  ;;  %1553 = vmatprep.subr.bf16.mxu0 %v1388_v52 }
 0x32a   : > { %v1442_v22 = vpop.permute.xlu0 %1441 }
 0x32c   : > { %1554 = vmatpush1.bf16.msra.mxu0 %v1387_v6 }
 0x32d   : > { %v1414_v23 = vpop.permute.xlu1 %1413 }
 0x32e   : > { %v1444_v53 = vpop.permute.xlu0 %1443  ;;  %v1418_v39 = vsel %vm739_vm12, %v1414_v23, %v1416_v46  ;;  %v1417_v9 = vsel %vm739_vm12, %v1412_v12, %v1414_v23 }
 0x32f   : > { %1555 = vmatprep.subr.bf16.mxu0 %v1418_v39  ;;  %v1448_v54 = vsel %vm779_vm13, %v1444_v53, %v1446_v58  ;;  %v1447_v28 = vsel %vm779_vm13, %v1442_v22, %v1444_v53  ;;  %v5379_v22 = vpack.i.bf16 %v1918_v45, %v1916_v43 }
 0x330   : > { %1556 = vmatpush1.bf16.msra.mxu0 %v1417_v9 }
 0x331   : > { %v1468_v33 = vpop.permute.xlu1 %1467  ;;  %1557 = vmatprep.subr.bf16.mxu0 %v1448_v54 }
 0x332   : > { %v1470_v37 = vpop.permute.xlu0 %1469 }
 0x333   : > { %v1472_v16 = vsel %vm804_vm14, %v1468_v33, %v1470_v37 }
 0x334   : > { %1558 = vmatpush1.bf16.msra.mxu0 %v1447_v28 }
 0x335   : > { %v1466_v24 = vpop.permute.xlu1 %1465  ;;  %1559 = vmatprep.subr.bf16.mxu0 %v1472_v16 }
 0x336   : > { %v1471_v32 = vsel %vm804_vm14, %v1466_v24, %v1468_v33  ;;  %v1498_v57 = vpop.permute.xlu0 %1497 }
 0x338   : > { %1560 = vmatpush1.bf16.msra.mxu0 %v1471_v32 }
 0x339   : > { %v1500_v30 = vpop.permute.xlu1 %1499 }
 0x33a   : > { %v1496_v29 = vpop.permute.xlu0 %1495  ;;  %v1502_v59 = vsel %vm843_vm15, %v1498_v57, %v1500_v30 }
 0x33b   : > { %v1501_v60 = vsel %vm843_vm15, %v1496_v29, %v1498_v57  ;;  %1561 = vmatprep.subr.bf16.mxu0 %v1502_v59  ;;  %v5925_v57 = vld [vmem:[#allocation2 + $0x28] sm:$0xff] }
 0x33c   : > { %1562 = vmatpush1.bf16.msra.mxu0 %v1501_v60 }
 0x33f   : > { %1578 = vmatmul.mubr.bf16.vlgmr.msra.gmra.mrb[4].mxu0 %v5740_v36 }
 0x34a   : > { %v1530_v11 = vpop.permute.xlu1 %1529 }
 0x412   : > { %v1579_v49 = vpop.f32.mrb[4].mxu0 }
 0x413   : > { %v1580_v12 = vadd.f32 %v1579_v49, %v1530_v11  ;;  %v1581_v13 = vpop.f32.mrb[5].mxu0 }
 0x414   : > { %v1582_v46 = vadd.f32 %v1581_v13, %v1530_v11  ;;  %v1583_v47 = vpop.f32.mrb[6].mxu0 }
 0x415   : > { %v1586_v41 = vmax.f32 %v1580_v12, 0.0  ;;  %v1584_v52 = vpop.f32.mrb[7].mxu0 }
 0x416   : > { %v1587_v58 = vmax.f32 %v1582_v46, 0.0  ;;  %v5951_v46 = vmul.f32 %v5925_v57, %v5615_v40 }
 0x417   : > { %1590 = vrot.lane.b32.xlu0 %v1586_v41, %s5423_s30 }
 0x418   : > { %1592 = vrot.lane.b32.xlu1 %v1587_v58, %s5423_s30  ;;  %v5961_v58 = vmul.f32 %v5925_v57, %v5560_v18 }
 0x41b   : > { %5380 = vrot.lane.b32.xlu0 %v5379_v22, %s5423_s30 }
 0x489   : > { %v1591_v36 = vpop.permute.xlu0 %1590 }
 0x48a   : > { %1598 = vst.msk [vmem:[#allocation2] sm:$0xf] %vm539_vm2, %v1591_v36  ;;  %v1593_v6 = vpop.permute.xlu1 %1592 }
 0x48b   : > { %v1594_v23 = vsel %vm534_vm1, %v1591_v36, %v1593_v6  ;;  %1600 = vst.msk [vmem:[#allocation2 + $0x10] sm:$0xf] %vm542_vm3, %v1593_v6 }
 0x48c   : > { %1599 = vst [vmem:[#allocation2 + $0x8] sm:$0xf] %v1594_v23 }
 0x48d   : > { %v5381_v53 = vpop.permute.xlu0 %5380 }
 0x48e   : > { %v5383_v39 = vunpack.i.h.bf16 %v5381_v53  ;;  %v5382_v9 = vunpack.i.l.bf16 %v5381_v53 }
 0x490   : > { %v1923_v33 = vsel %vm534_vm1, %v5382_v9, %v5383_v39 }
 0x491   : > { %v5908_v54 = vld [vmem:[#allocation2] sm:$0xff] }
 0x492   : > { %v5911_v37 = vld [vmem:[#allocation2 + $0x10] sm:$0xff]  ;;  %1927 = vst.msk [vmem:[#allocation2] sm:$0xf] %vm539_vm2, %v5382_v9  ;;  %v5979_v9 = vmul.f32 %v5925_v57, %v5652_v51 }
 0x493   : > { %v5914_v28 = vld [vmem:[#allocation2 + $0x8] sm:$0xff]  ;;  %1929 = vst.msk [vmem:[#allocation2 + $0x10] sm:$0xf] %vm542_vm3, %v5383_v39 }
 0x494   : > { %1928 = vst [vmem:[#allocation2 + $0x8] sm:$0xf] %v1923_v33 }
 0x499   : > { %v5917_v16 = vld [vmem:[#allocation2] sm:$0xff] }
 0x49a   : > { %v5921_v24 = vpack.c.bf16 %v5420_v1, %v5917_v16  ;;  %v5923_v32 = vld [vmem:[#allocation2 + $0x10] sm:$0xff]  ;;  %v1972_v59 = vmul.f32 %v5917_v16, %v5567_v21  ;;  %v1934_v60 = vmul.f32 %v5917_v16, %v5547_v8  ;;  %v2002_v13 = vmul.f32 %v5917_v16, %v5565_v20 }
 0x49b   : > { %v1950_v30 = vpack.c.bf16 %v5925_v57, %v5923_v32  ;;  %v1931_v29 = vld [vmem:[#allocation2 + $0x8] sm:$0xff]  ;;  %v2004_v45 = vmul.f32 %v5923_v32, %v5615_v40  ;;  %v1974_v41 = vmul.f32 %v5923_v32, %v5560_v18  ;;  %v2056_v36 = vmul.f32 %v5917_v16, %v5650_v50 }
 0x49c   : > { %1954 = vrot.lane.b32.xlu1 %v5921_v24, %s5427_s21  ;;  %v1935_v5 = vmul.f32 %v1931_v29, %v5555_v14  ;;  %v1978_v11 = vpack.c.bf16 %v5579_v26, %v1972_v59  ;;  %v1938_v49 = vpack.c.bf16 %v5603_v35, %v1934_v60  ;;  %v1949_v12 = vpack.c.bf16 %v5420_v1, %v1931_v29 }
 0x49d   : > { %1958 = vrot.lane.b32.xlu0 %v1950_v30, %s5427_s21  ;;  %v2008_v47 = vpack.c.bf16 %v5582_v27, %v2002_v13  ;;  %v2010_v1 = vpack.c.bf16 %v5951_v46, %v2004_v45  ;;  %v1973_v52 = vmul.f32 %v1931_v29, %v5633_v44  ;;  %v1980_v22 = vpack.c.bf16 %v5961_v58, %v1974_v41 }
 0x49e   : > { %v1939_v43 = vpack.c.bf16 %v5576_v25, %v1935_v5  ;;  %v2062_v23 = vpack.c.bf16 %v5659_v55, %v2056_v36  ;;  %v2003_v53 = vmul.f32 %v1931_v29, %v5664_v56  ;;  %v2058_v39 = vmul.f32 %v5923_v32, %v5652_v51 }
 0x49f   : > { %v1979_v6 = vpack.c.bf16 %v5644_v48, %v1973_v52  ;;  %v2088_v59 = vmul.f32 %v5923_v32, %v5680_v62  ;;  %v2086_v5 = vmul.f32 %v5917_v16, %v5682_v63  ;;  %v2087_v45 = vmul.f32 %v1931_v29, %v5702_v7 }
 0x4a0   : > { %2042 = vrot.lane.b32.xlu1 %v1950_v30, %s5430_s25  ;;  %2202 = vmatprep.subr.bf16.mxu0 %v1939_v43  ;;  %v2009_v33 = vpack.c.bf16 %v5678_v61, %v2003_v53  ;;  %v2064_v60 = vpack.c.bf16 %v5979_v9, %v2058_v39  ;;  %v5990_v43 = vmul.f32 %v5925_v57, %v5680_v62 }
 0x4a1   : > { %1984 = vrot.lane.b32.xlu0 %v1978_v11, %s5428_s22  ;;  %2203 = vmatpush1.bf16.msra.mxu0 %v1938_v49  ;;  %v2057_v49 = vmul.f32 %v1931_v29, %v5706_v10  ;;  %v2092_v13 = vpack.c.bf16 %v5691_v3, %v2086_v5  ;;  %v2093_v41 = vpack.c.bf16 %v5715_v15, %v2087_v45 }
 0x4a2   : > { %v2094_v11 = vpack.c.bf16 %v5990_v43, %v2088_v59  ;;  %v2142_v36 = vmul.f32 %v5923_v32, %v5722_v19 }
 0x4a4   : > { %1956 = vrot.lane.b32.xlu1 %v1949_v12, %s5427_s21 }
 0x4a5   : > { %2040 = vrot.lane.b32.xlu0 %v1949_v12, %s5430_s25 }
 0x4a8   : > { %2014 = vrot.lane.b32.xlu1 %v2008_v47, %s5429_s23  ;;  %v2063_v47 = vpack.c.bf16 %v5720_v17, %v2057_v49 }
 0x4a9   : > { %2018 = vrot.lane.b32.xlu0 %v2010_v1, %s5429_s23  ;;  %v6006_v1 = vld.sshfl [vmem:[%s7629_s3] sm:$0x33 pattern:$0x76325410] }
 0x4aa   : > { %v2197_v52 = vcombine.high %v6006_v1, %v6006_v1 }
 0x4ac   : > { %1988 = vrot.lane.b32.xlu1 %v1980_v22, %s5428_s22  ;;  %v2141_v22 = vmul.f32 %v1931_v29, %v5733_v34  ;;  %5313 = vmatprep.mubr.msk.bf16.mxu0 %vm651_vm5, %v2197_v52  ;;  %v6023_v29 = vmul.f32 %v5925_v57, %v5722_v19 }
 0x4ad   : > { %1986 = vrot.lane.b32.xlu0 %v1979_v6, %s5428_s22 }
 0x4ae   : > { %v2147_v6 = vpack.c.bf16 %v5745_v38, %v2141_v22 }
 0x4b0   : > { %2068 = vrot.lane.b32.xlu1 %v2062_v23, %s5431_s26  ;;  %v2140_v23 = vmul.f32 %v5917_v16, %v5726_v31  ;;  %v2183_v16 = vld [vmem:[%s7630_s4] sm:$0xf] }
 0x4b1   : > { %2038 = vrot.lane.b32.xlu0 %v5921_v24, %s5430_s25 }
 0x4b4   : > { %2016 = vrot.lane.b32.xlu1 %v2009_v33, %s5429_s23 }
 0x4b5   : > { %2072 = vrot.lane.b32.xlu0 %v2064_v60, %s5431_s26 }
 0x4b8   : > { %2102 = vrot.lane.b32.xlu1 %v2094_v11, %s5432_s28 }
 0x4b9   : > { %2098 = vrot.lane.b32.xlu0 %v2092_v13, %s5432_s28 }
 0x4bc   : > { %2070 = vrot.lane.b32.xlu1 %v2063_v47, %s5431_s26 }
 0x4bd   : > { %2100 = vrot.lane.b32.xlu0 %v2093_v41, %s5432_s28 }
 0x4c0   : > { %2124 = vrot.lane.b32.xlu1 %v1949_v12, %s5433_s17  ;;  %v2148_v12 = vpack.c.bf16 %v6023_v29, %v2142_v36 }
 0x4c1   : > { %2126 = vrot.lane.b32.xlu0 %v1950_v30, %s5433_s17  ;;  %v2146_v30 = vpack.c.bf16 %v5756_v42, %v2140_v23 }
 0x4c4   : > { %2122 = vrot.lane.b32.xlu1 %v5921_v24, %s5433_s17 }
 0x4c5   : > { %2154 = vrot.lane.b32.xlu0 %v2147_v6, %s5435_s20 }
 0x4c8   : > { %2156 = vrot.lane.b32.xlu1 %v2148_v12, %s5435_s20 }
 0x4c9   : > { %2152 = vrot.lane.b32.xlu0 %v2146_v30, %s5435_s20 }
 0x4cc   : > { %2186 = vperm.xlu1 %5373, %v2183_v16  }
 0x50e   : > { %v1955_v24 = vpop.permute.xlu1 %1954 }
 0x50f   : > { %v1959_v32 = vpop.permute.xlu0 %1958 }
 0x512   : > { %v2043_v53 = vpop.permute.xlu1 %2042 }
 0x513   : > { %v1985_v39 = vpop.permute.xlu0 %1984 }
 0x516   : > { %v1957_v33 = vpop.permute.xlu1 %1956 }
 0x517   : > { %v2041_v59 = vpop.permute.xlu0 %2040  ;;  %v1961_v60 = vsel %vm594_vm8, %v1957_v33, %v1959_v32  ;;  %v1960_v5 = vsel %vm594_vm8, %v1955_v24, %v1957_v33 }
 0x518   : > { %2204 = vmatprep.subr.bf16.mxu0 %v1961_v60  ;;  %v2045_v30 = vsel %vm699_vm11, %v2041_v59, %v2043_v53 }
 0x519   : > { %2205 = vmatpush1.bf16.msra.mxu0 %v1960_v5 }
 0x51a   : > { %v2015_v11 = vpop.permute.xlu1 %2014 }
 0x51b   : > { %v2019_v49 = vpop.permute.xlu0 %2018 }
 0x51e   : > { %v1989_v13 = vpop.permute.xlu1 %1988 }
 0x51f   : > { %v1987_v45 = vpop.permute.xlu0 %1986 }
 0x520   : > { %v1991_v47 = vsel %vm634_vm9, %v1987_v45, %v1989_v13  ;;  %v1990_v41 = vsel %vm634_vm9, %v1985_v39, %v1987_v45 }
 0x521   : > { %2206 = vmatprep.subr.bf16.mxu0 %v1991_v47 }
 0x522   : > { %v2069_v52 = vpop.permute.xlu1 %2068  ;;  %2207 = vmatpush1.bf16.msra.mxu0 %v1990_v41 }
 0x523   : > { %v2039_v22 = vpop.permute.xlu0 %2038 }
 0x524   : > { %v2044_v32 = vsel %vm699_vm11, %v2039_v22, %v2041_v59 }
 0x526   : > { %v2017_v36 = vpop.permute.xlu1 %2016 }
 0x527   : > { %v2073_v6 = vpop.permute.xlu0 %2072  ;;  %v2021_v23 = vsel %vm674_vm10, %v2017_v36, %v2019_v49  ;;  %v2020_v12 = vsel %vm674_vm10, %v2015_v11, %v2017_v36 }
 0x528   : > { %2208 = vmatprep.subr.bf16.mxu0 %v2021_v23  ;;  %v6058_v23 = vld [vmem:[%s6055_s27] sm:$0xff]  }
 0x529   : > { %2209 = vmatpush1.bf16.msra.mxu0 %v2020_v12  ;;  %v2574_v12 = vunpack.c.l.bf16 %v6058_v23 }
 0x52a   : > { %v2103_v16 = vpop.permute.xlu1 %2102  ;;  %2210 = vmatprep.subr.bf16.mxu0 %v2045_v30 }
 0x52b   : > { %v2099_v24 = vpop.permute.xlu0 %2098 }
 0x52d   : > { %2211 = vmatpush1.bf16.msra.mxu0 %v2044_v32 }
 0x52e   : > { %v2071_v39 = vpop.permute.xlu1 %2070 }
 0x52f   : > { %v2101_v33 = vpop.permute.xlu0 %2100  ;;  %v2075_v60 = vsel %vm739_vm12, %v2071_v39, %v2073_v6  ;;  %v2074_v5 = vsel %vm739_vm12, %v2069_v52, %v2071_v39  ;;  %v2576_v39 = vcombine.high %v2574_v12, %v2574_v12 }
 0x530   : > { %2212 = vmatprep.subr.bf16.mxu0 %v2075_v60  ;;  %v2105_v49 = vsel %vm779_vm13, %v2101_v33, %v2103_v16  ;;  %v2104_v53 = vsel %vm779_vm13, %v2099_v24, %v2101_v33 }
 0x531   : > { %2213 = vmatpush1.bf16.msra.mxu0 %v2074_v5 }
 0x532   : > { %v2125_v11 = vpop.permute.xlu1 %2124  ;;  %2214 = vmatprep.subr.bf16.mxu0 %v2105_v49 }
 0x533   : > { %v2127_v13 = vpop.permute.xlu0 %2126 }
 0x534   : > { %v2129_v45 = vsel %vm804_vm14, %v2125_v11, %v2127_v13 }
 0x535   : > { %2215 = vmatpush1.bf16.msra.mxu0 %v2104_v53 }
 0x536   : > { %v2123_v59 = vpop.permute.xlu1 %2122  ;;  %2216 = vmatprep.subr.bf16.mxu0 %v2129_v45 }
 0x537   : > { %v2128_v47 = vsel %vm804_vm14, %v2123_v59, %v2125_v11  ;;  %v2155_v41 = vpop.permute.xlu0 %2154  ;;  %v5384_v11 = vpack.i.bf16 %v2576_v39, %v2574_v12 }
 0x539   : > { %2217 = vmatpush1.bf16.msra.mxu0 %v2128_v47 }
 0x53a   : > { %v2157_v52 = vpop.permute.xlu1 %2156 }
 0x53b   : > { %v2153_v22 = vpop.permute.xlu0 %2152  ;;  %v2159_v36 = vsel %vm843_vm15, %v2155_v41, %v2157_v52 }
 0x53c   : > { %v2158_v6 = vsel %vm843_vm15, %v2153_v22, %v2155_v41  ;;  %2218 = vmatprep.subr.bf16.mxu0 %v2159_v36 }
 0x53d   : > { %2219 = vmatpush1.bf16.msra.mxu0 %v2158_v6 }
 0x540   : > { %2235 = vmatmul.mubr.bf16.vlgmr.msra.gmra.mrb[8].mxu0 %v6006_v1 }
 0x54b   : > { %v2187_v30 = vpop.permute.xlu1 %2186 }
 0x613   : > { %v2236_v16 = vpop.f32.mrb[8].mxu0 }
 0x614   : > { %v2237_v24 = vadd.f32 %v2236_v16, %v2187_v30  ;;  %v2238_v32 = vpop.f32.mrb[9].mxu0 }
 0x615   : > { %v2239_v33 = vadd.f32 %v2238_v32, %v2187_v30  ;;  %v2240_v60 = vpop.f32.mrb[10].mxu0  ;;  %v6078_v30 = vld [vmem:[#allocation2 + $0x18] sm:$0xff] }
 0x616   : > { %v2243_v5 = vmax.f32 %v2237_v24, 0.0  ;;  %v2241_v1 = vpop.f32.mrb[11].mxu0 }
 0x617   : > { %v2244_v49 = vmax.f32 %v2239_v33, 0.0 }
 0x618   : > { %2247 = vrot.lane.b32.xlu0 %v2243_v5, %s5423_s30 }
 0x619   : > { %2249 = vrot.lane.b32.xlu1 %v2244_v49, %s5423_s30 }
 0x61c   : > { %5385 = vrot.lane.b32.xlu0 %v5384_v11, %s5423_s30 }
 0x68a   : > { %v2248_v13 = vpop.permute.xlu0 %2247 }
 0x68b   : > { %2255 = vst.msk [vmem:[#allocation2] sm:$0xf] %vm539_vm2, %v2248_v13  ;;  %v2250_v53 = vpop.permute.xlu1 %2249 }
 0x68c   : > { %v2251_v45 = vsel %vm534_vm1, %v2248_v13, %v2250_v53  ;;  %2257 = vst.msk [vmem:[#allocation2 + $0x10] sm:$0xf] %vm542_vm3, %v2250_v53 }
 0x68d   : > { %2256 = vst [vmem:[#allocation2 + $0x8] sm:$0xf] %v2251_v45 }
 0x68e   : > { %v5386_v59 = vpop.permute.xlu0 %5385 }
 0x68f   : > { %v5388_v47 = vunpack.i.h.bf16 %v5386_v59  ;;  %v5387_v41 = vunpack.i.l.bf16 %v5386_v59 }
 0x691   : > { %v2581_v22 = vsel %vm534_vm1, %v5387_v41, %v5388_v47 }
 0x692   : > { %v6067_v52 = vld [vmem:[#allocation2] sm:$0xff] }
 0x693   : > { %v6070_v36 = vld [vmem:[#allocation2 + $0x10] sm:$0xff]  ;;  %2585 = vst.msk [vmem:[#allocation2] sm:$0xf] %vm539_vm2, %v5387_v41 }
 0x694   : > { %v6073_v6 = vld [vmem:[#allocation2 + $0x8] sm:$0xff]  ;;  %2587 = vst.msk [vmem:[#allocation2 + $0x10] sm:$0xf] %vm542_vm3, %v5388_v47 }
 0x695   : > { %2586 = vst [vmem:[#allocation2 + $0x8] sm:$0xf] %v2581_v22 }
 0x69a   : > { %v6076_v12 = vld [vmem:[#allocation2] sm:$0xff] }
 0x69b   : > { %v2606_v16 = vpack.c.bf16 %v6078_v30, %v6076_v12  ;;  %v2602_v24 = vld [vmem:[#allocation2 + $0x10] sm:$0xff]  ;;  %v2630_v33 = vmul.f32 %v6076_v12, %v5567_v21  ;;  %v2592_v60 = vmul.f32 %v6076_v12, %v5547_v8  ;;  %v2660_v53 = vmul.f32 %v6076_v12, %v5565_v20 }
 0x69c   : > { %v2608_v32 = vpack.c.bf16 %v5925_v57, %v2602_v24  ;;  %v2589_v39 = vld [vmem:[#allocation2 + $0x8] sm:$0xff]  ;;  %v2662_v45 = vmul.f32 %v2602_v24, %v5615_v40  ;;  %v2632_v59 = vmul.f32 %v2602_v24, %v5560_v18 }
 0x69d   : > { %2612 = vrot.lane.b32.xlu1 %v2606_v16, %s5427_s21  ;;  %v2593_v5 = vmul.f32 %v2589_v39, %v5555_v14  ;;  %v2636_v49 = vpack.c.bf16 %v5579_v26, %v2630_v33  ;;  %v2596_v11 = vpack.c.bf16 %v5603_v35, %v2592_v60  ;;  %v2607_v13 = vpack.c.bf16 %v6078_v30, %v2589_v39 }
 0x69e   : > { %2616 = vrot.lane.b32.xlu0 %v2608_v32, %s5427_s21  ;;  %v2666_v26 = vpack.c.bf16 %v5582_v27, %v2660_v53  ;;  %v2668_v47 = vpack.c.bf16 %v5951_v46, %v2662_v45  ;;  %v2631_v41 = vmul.f32 %v2589_v39, %v5633_v44  ;;  %v2638_v22 = vpack.c.bf16 %v5961_v58, %v2632_v59 }
 0x69f   : > { %v2597_v1 = vpack.c.bf16 %v5576_v25, %v2593_v5  ;;  %v2714_v33 = vmul.f32 %v6076_v12, %v5650_v50  ;;  %v2661_v46 = vmul.f32 %v2589_v39, %v5664_v56  ;;  %v2716_v5 = vmul.f32 %v2602_v24, %v5652_v51 }
 0x6a0   : > { %v2637_v60 = vpack.c.bf16 %v5644_v48, %v2631_v41  ;;  %v2745_v45 = vmul.f32 %v2589_v39, %v5702_v7  ;;  %v2798_v59 = vmul.f32 %v6076_v12, %v5726_v31 }
 0x6a1   : > { %2700 = vrot.lane.b32.xlu1 %v2608_v32, %s5430_s25  ;;  %2860 = vmatprep.subr.bf16.mxu0 %v2597_v1  ;;  %v2720_v27 = vpack.c.bf16 %v5659_v55, %v2714_v33  ;;  %v2667_v58 = vpack.c.bf16 %v5678_v61, %v2661_v46  ;;  %v2746_v1 = vmul.f32 %v2602_v24, %v5680_v62 }
 0x6a2   : > { %2642 = vrot.lane.b32.xlu0 %v2636_v49, %s5428_s22  ;;  %2861 = vmatpush1.bf16.msra.mxu0 %v2596_v11  ;;  %v2722_v48 = vpack.c.bf16 %v5979_v9, %v2716_v5  ;;  %v2744_v49 = vmul.f32 %v6076_v12, %v5682_v63  ;;  %v2715_v11 = vmul.f32 %v2589_v39, %v5706_v10 }
 0x6a3   : > { %v2752_v55 = vpack.c.bf16 %v5990_v43, %v2746_v1  ;;  %v2751_v9 = vpack.c.bf16 %v5715_v15, %v2745_v45  ;;  %v6138_v43 = vld.sshfl [vmem:[%s7633_s7] sm:$0x33 pattern:$0x76325410]  ;;  %v2800_v15 = vmul.f32 %v2602_v24, %v5722_v19 }
 0x6a4   : > { %v2750_v53 = vpack.c.bf16 %v5691_v3, %v2744_v49  ;;  %v2721_v61 = vpack.c.bf16 %v5720_v17, %v2715_v11  ;;  %v6142_v3 = vcombine.high %v6138_v43, %v6138_v43  ;;  %v2841_v24 = vld [vmem:[%s7634_s8] sm:$0xf] }
 0x6a5   : > { %2614 = vrot.lane.b32.xlu1 %v2607_v13, %s5427_s21 }
 0x6a6   : > { %2698 = vrot.lane.b32.xlu0 %v2607_v13, %s5430_s25  ;;  %5318 = vmatprep.mubr.msk.bf16.mxu0 %vm651_vm5, %v6142_v3 }
 0x6a9   : > { %2672 = vrot.lane.b32.xlu1 %v2666_v26, %s5429_s23  ;;  %v2799_v26 = vmul.f32 %v2589_v39, %v5733_v34  ;;  %v2806_v39 = vpack.c.bf16 %v6023_v29, %v2800_v15 }
 0x6aa   : > { %2676 = vrot.lane.b32.xlu0 %v2668_v47, %s5429_s23 }
 0x6ab   : > { %v2805_v17 = vpack.c.bf16 %v5745_v38, %v2799_v26 }
 0x6ad   : > { %2646 = vrot.lane.b32.xlu1 %v2638_v22, %s5428_s22 }
 0x6ae   : > { %2644 = vrot.lane.b32.xlu0 %v2637_v60, %s5428_s22 }
 0x6b1   : > { %2726 = vrot.lane.b32.xlu1 %v2720_v27, %s5431_s26 }
 0x6b2   : > { %2696 = vrot.lane.b32.xlu0 %v2606_v16, %s5430_s25 }
 0x6b5   : > { %2674 = vrot.lane.b32.xlu1 %v2667_v58, %s5429_s23 }
 0x6b6   : > { %2730 = vrot.lane.b32.xlu0 %v2722_v48, %s5431_s26 }
 0x6b9   : > { %2760 = vrot.lane.b32.xlu1 %v2752_v55, %s5432_s28 }
 0x6ba   : > { %2756 = vrot.lane.b32.xlu0 %v2750_v53, %s5432_s28 }
 0x6bd   : > { %2728 = vrot.lane.b32.xlu1 %v2721_v61, %s5431_s26 }
 0x6be   : > { %2758 = vrot.lane.b32.xlu0 %v2751_v9, %s5432_s28 }
 0x6c1   : > { %2782 = vrot.lane.b32.xlu1 %v2607_v13, %s5433_s17  ;;  %v2804_v13 = vpack.c.bf16 %v5756_v42, %v2798_v59 }
 0x6c2   : > { %2784 = vrot.lane.b32.xlu0 %v2608_v32, %s5433_s17 }
 0x6c5   : > { %2780 = vrot.lane.b32.xlu1 %v2606_v16, %s5433_s17 }
 0x6c6   : > { %2812 = vrot.lane.b32.xlu0 %v2805_v17, %s5435_s20 }
 0x6c9   : > { %2814 = vrot.lane.b32.xlu1 %v2806_v39, %s5435_s20 }
 0x6ca   : > { %2810 = vrot.lane.b32.xlu0 %v2804_v13, %s5435_s20 }
 0x6cd   : > { %2844 = vperm.xlu1 %5373, %v2841_v24  }
 0x70f   : > { %v2613_v38 = vpop.permute.xlu1 %2612 }
 0x710   : > { %v2617_v32 = vpop.permute.xlu0 %2616 }
 0x713   : > { %v2701_v12 = vpop.permute.xlu1 %2700 }
 0x714   : > { %v2643_v47 = vpop.permute.xlu0 %2642 }
 0x717   : > { %v2615_v16 = vpop.permute.xlu1 %2614 }
 0x718   : > { %v2699_v41 = vpop.permute.xlu0 %2698  ;;  %v2619_v22 = vsel %vm594_vm8, %v2615_v16, %v2617_v32  ;;  %v2618_v29 = vsel %vm594_vm8, %v2613_v38, %v2615_v16 }
 0x719   : > { %2862 = vmatprep.subr.bf16.mxu0 %v2619_v22  ;;  %v2703_v53 = vsel %vm699_vm11, %v2699_v41, %v2701_v12 }
 0x71a   : > { %2863 = vmatpush1.bf16.msra.mxu0 %v2618_v29 }
 0x71b   : > { %v2673_v42 = vpop.permute.xlu1 %2672 }
 0x71c   : > { %v2677_v33 = vpop.permute.xlu0 %2676 }
 0x71f   : > { %v2647_v60 = vpop.permute.xlu1 %2646 }
 0x720   : > { %v2645_v27 = vpop.permute.xlu0 %2644 }
 0x721   : > { %v2649_v46 = vsel %vm634_vm9, %v2645_v27, %v2647_v60  ;;  %v2648_v5 = vsel %vm634_vm9, %v2643_v47, %v2645_v27 }
 0x722   : > { %2864 = vmatprep.subr.bf16.mxu0 %v2649_v46 }
 0x723   : > { %v2727_v58 = vpop.permute.xlu1 %2726  ;;  %2865 = vmatpush1.bf16.msra.mxu0 %v2648_v5 }
 0x724   : > { %v2697_v1 = vpop.permute.xlu0 %2696 }
 0x725   : > { %v2702_v9 = vsel %vm699_vm11, %v2697_v1, %v2699_v41 }
 0x727   : > { %v2675_v48 = vpop.permute.xlu1 %2674 }
 0x728   : > { %v2731_v49 = vpop.permute.xlu0 %2730  ;;  %v2679_v55 = vsel %vm674_vm10, %v2675_v48, %v2677_v33  ;;  %v2678_v11 = vsel %vm674_vm10, %v2673_v42, %v2675_v48  ;;  %v3231_v33 = vunpack.c.h.bf16 %v6058_v23 }
 0x729   : > { %2866 = vmatprep.subr.bf16.mxu0 %v2679_v55 }
 0x72a   : > { %2867 = vmatpush1.bf16.msra.mxu0 %v2678_v11 }
 0x72b   : > { %v2761_v45 = vpop.permute.xlu1 %2760  ;;  %2868 = vmatprep.subr.bf16.mxu0 %v2703_v53 }
 0x72c   : > { %v2757_v61 = vpop.permute.xlu0 %2756 }
 0x72e   : > { %2869 = vmatpush1.bf16.msra.mxu0 %v2702_v9 }
 0x72f   : > { %v2729_v26 = vpop.permute.xlu1 %2728 }
 0x730   : > { %v2759_v15 = vpop.permute.xlu0 %2758  ;;  %v2733_v17 = vsel %vm739_vm12, %v2729_v26, %v2731_v49  ;;  %v2732_v59 = vsel %vm739_vm12, %v2727_v58, %v2729_v26  ;;  %v3233_v58 = vcombine.high %v3231_v33, %v3231_v33 }
 0x731   : > { %2870 = vmatprep.subr.bf16.mxu0 %v2733_v17  ;;  %v2763_v39 = vsel %vm779_vm13, %v2759_v15, %v2761_v45  ;;  %v2762_v38 = vsel %vm779_vm13, %v2757_v61, %v2759_v15 }
 0x732   : > { %2871 = vmatpush1.bf16.msra.mxu0 %v2732_v59  ;;  %v5389_v53 = vpack.i.bf16 %v3233_v58, %v3231_v33 }
 0x733   : > { %v2783_v13 = vpop.permute.xlu1 %2782  ;;  %2872 = vmatprep.subr.bf16.mxu0 %v2763_v39 }
 0x734   : > { %v2785_v24 = vpop.permute.xlu0 %2784 }
 0x735   : > { %v2787_v32 = vsel %vm804_vm14, %v2783_v13, %v2785_v24 }
 0x736   : > { %2873 = vmatpush1.bf16.msra.mxu0 %v2762_v38 }
 0x737   : > { %v2781_v12 = vpop.permute.xlu1 %2780  ;;  %2874 = vmatprep.subr.bf16.mxu0 %v2787_v32 }
 0x738   : > { %v2786_v47 = vsel %vm804_vm14, %v2781_v12, %v2783_v13  ;;  %v2813_v16 = vpop.permute.xlu0 %2812 }
 0x73a   : > { %2875 = vmatpush1.bf16.msra.mxu0 %v2786_v47 }
 0x73b   : > { %v2815_v41 = vpop.permute.xlu1 %2814 }
 0x73c   : > { %v2811_v22 = vpop.permute.xlu0 %2810  ;;  %v2817_v29 = vsel %vm843_vm15, %v2813_v16, %v2815_v41 }
 0x73d   : > { %v2816_v42 = vsel %vm843_vm15, %v2811_v22, %v2813_v16  ;;  %2876 = vmatprep.subr.bf16.mxu0 %v2817_v29  ;;  %v6218_v22 = vld [vmem:[#allocation2 + $0x28] sm:$0xff] }
 0x73e   : > { %2877 = vmatpush1.bf16.msra.mxu0 %v2816_v42 }
 0x741   : > { %2893 = vmatmul.mubr.bf16.vlgmr.msra.gmra.mrb[12].mxu0 %v6138_v43 }
 0x742   : > { %5324 = vmatprep.mubr.msk.bf16.mxu0 %vm651_vm5, %v6142_v3 }
 0x74c   : > { %v2845_v60 = vpop.permute.xlu1 %2844 }
 0x814   : > { %v2894_v27 = vpop.f32.mrb[12].mxu0 }
 0x815   : > { %v2895_v46 = vadd.f32 %v2894_v27, %v2845_v60  ;;  %v2896_v5 = vpop.f32.mrb[13].mxu0 }
 0x816   : > { %v2897_v1 = vadd.f32 %v2896_v5, %v2845_v60  ;;  %v2898_v48 = vpop.f32.mrb[14].mxu0 }
 0x817   : > { %v2901_v49 = vmax.f32 %v2895_v46, 0.0  ;;  %v2899_v55 = vpop.f32.mrb[15].mxu0 }
 0x818   : > { %v2902_v11 = vmax.f32 %v2897_v1, 0.0  ;;  %v6256_v55 = vmul.f32 %v6218_v22, %v5560_v18 }
 0x819   : > { %2905 = vrot.lane.b32.xlu0 %v2901_v49, %s5423_s30 }
 0x81a   : > { %2907 = vrot.lane.b32.xlu1 %v2902_v11, %s5423_s30  ;;  %v6261_v11 = vmul.f32 %v6078_v30, %v5633_v44 }
 0x81d   : > { %5390 = vrot.lane.b32.xlu0 %v5389_v53, %s5423_s30 }
 0x88b   : > { %v2906_v3 = vpop.permute.xlu0 %2905 }
 0x88c   : > { %2913 = vst.msk [vmem:[#allocation2] sm:$0xf] %vm539_vm2, %v2906_v3  ;;  %v2908_v23 = vpop.permute.xlu1 %2907 }
 0x88d   : > { %v2909_v45 = vsel %vm534_vm1, %v2906_v3, %v2908_v23  ;;  %2915 = vst.msk [vmem:[#allocation2 + $0x10] sm:$0xf] %vm542_vm3, %v2908_v23 }
 0x88e   : > { %2914 = vst [vmem:[#allocation2 + $0x8] sm:$0xf] %v2909_v45  ;;  %v6270_v45 = vmul.f32 %v6078_v30, %v5650_v50 }
 0x88f   : > { %v5391_v61 = vpop.permute.xlu0 %5390 }
 0x890   : > { %v5393_v9 = vunpack.i.h.bf16 %v5391_v61  ;;  %v5392_v26 = vunpack.i.l.bf16 %v5391_v61 }
 0x892   : > { %v3238_v17 = vsel %vm534_vm1, %v5392_v26, %v5393_v9 }
 0x893   : > { %v6188_v15 = vld [vmem:[#allocation2] sm:$0xff] }
 0x894   : > { %7643 = vst [vmem:[#allocation4_spill] sm:$0xff] %v6188_v15  ;;  %v6191_v59 = vld [vmem:[#allocation2 + $0x10] sm:$0xff]  ;;  %3242 = vst.msk [vmem:[#allocation2] sm:$0xf] %vm539_vm2, %v5392_v26 }
 0x895   : > { %v6194_v39 = vld [vmem:[#allocation2 + $0x8] sm:$0xff]  ;;  %3244 = vst.msk [vmem:[#allocation2 + $0x10] sm:$0xf] %vm542_vm3, %v5393_v9 }
 0x896   : > { %3243 = vst [vmem:[#allocation2 + $0x8] sm:$0xf] %v3238_v17  ;;  %v6281_v17 = vmul.f32 %v6078_v30, %v5664_v56 }
 0x89b   : > { %v6197_v13 = vld [vmem:[#allocation2] sm:$0xff] }
 0x89c   : > { %v6201_v24 = vpack.c.bf16 %v6078_v30, %v6197_v13  ;;  %v6203_v38 = vld [vmem:[#allocation2 + $0x10] sm:$0xff]  ;;  %v3287_v47 = vmul.f32 %v6197_v13, %v5567_v21  ;;  %v3249_v16 = vmul.f32 %v6197_v13, %v5547_v8  ;;  %v3317_v46 = vmul.f32 %v6197_v13, %v5565_v20 }
 0x89d   : > { %v3265_v32 = vpack.c.bf16 %v5925_v57, %v6203_v38  ;;  %v6207_v12 = vld [vmem:[#allocation2 + $0x8] sm:$0xff]  ;;  %v6222_v57 = vmul.f32 %v6078_v30, %v5567_v21  ;;  %v3349_v29 = vpack.c.bf16 %v6218_v22, %v6203_v38  ;;  %v3319_v5 = vmul.f32 %v6203_v38, %v5615_v40 }
 0x89e   : > { %3269 = vrot.lane.b32.xlu1 %v6201_v24, %s5427_s21  ;;  %v3250_v41 = vmul.f32 %v6207_v12, %v5555_v14  ;;  %v3253_v60 = vpack.c.bf16 %v5603_v35, %v3249_v16  ;;  %v3264_v27 = vpack.c.bf16 %v6078_v30, %v6207_v12  ;;  %v6245_v35 = vmul.f32 %v6218_v22, %v5615_v40 }
 0x89f   : > { %3273 = vrot.lane.b32.xlu0 %v3265_v32, %s5427_s21  ;;  %v3293_v33 = vpack.c.bf16 %v6222_v57, %v3287_v47  ;;  %v3289_v1 = vmul.f32 %v6203_v38, %v5560_v18  ;;  %v3288_v49 = vmul.f32 %v6207_v12, %v5633_v44  ;;  %v3371_v3 = vmul.f32 %v6197_v13, %v5650_v50 }
 0x8a0   : > { %v3254_v42 = vpack.c.bf16 %v5576_v25, %v3250_v41  ;;  %v6240_v25 = vmul.f32 %v6078_v30, %v5565_v20  ;;  %v3325_v48 = vpack.c.bf16 %v6245_v35, %v3319_v5  ;;  %v3318_v9 = vmul.f32 %v6207_v12, %v5664_v56 }
 0x8a1   : > { %v3295_v53 = vpack.c.bf16 %v6256_v55, %v3289_v1  ;;  %v3294_v23 = vpack.c.bf16 %v6261_v11, %v3288_v49  ;;  %v3377_v61 = vpack.c.bf16 %v6270_v45, %v3371_v3  ;;  %v3373_v26 = vmul.f32 %v6203_v38, %v5652_v51 }
 0x8a2   : > { %3357 = vrot.lane.b32.xlu1 %v3349_v29, %s5430_s25  ;;  %3517 = vmatprep.subr.bf16.mxu0 %v3254_v42  ;;  %v3323_v58 = vpack.c.bf16 %v6240_v25, %v3317_v46  ;;  %v6287_v32 = vmul.f32 %v6218_v22, %v5652_v51  ;;  %v3324_v47 = vpack.c.bf16 %v6281_v17, %v3318_v9 }
 0x8a3   : > { %3299 = vrot.lane.b32.xlu0 %v3293_v33, %s5428_s22  ;;  %3518 = vmatpush1.bf16.msra.mxu0 %v3253_v60  ;;  %v3403_v16 = vmul.f32 %v6203_v38, %v5680_v62  ;;  %v3401_v42 = vmul.f32 %v6197_v13, %v5682_v63  ;;  %v6298_v33 = vmul.f32 %v6218_v22, %v5680_v62 }
 0x8a4   : > { %v3379_v41 = vpack.c.bf16 %v6287_v32, %v3373_v26  ;;  %v6303_v60 = vmul.f32 %v6078_v30, %v5682_v63  ;;  %v3372_v5 = vmul.f32 %v6207_v12, %v5706_v10  ;;  %v3402_v1 = vmul.f32 %v6207_v12, %v5702_v7 }
 0x8a5   : > { %v3409_v46 = vpack.c.bf16 %v6298_v33, %v3403_v16  ;;  %v6319_v49 = vmul.f32 %v6078_v30, %v5702_v7  ;;  %v3457_v9 = vmul.f32 %v6203_v38, %v5722_v19 }
 0x8a6   : > { %3271 = vrot.lane.b32.xlu1 %v3264_v27, %s5427_s21 }
 0x8a7   : > { %3355 = vrot.lane.b32.xlu0 %v3264_v27, %s5430_s25  ;;  %v3408_v3 = vpack.c.bf16 %v6319_v49, %v3402_v1 }
 0x8aa   : > { %3329 = vrot.lane.b32.xlu1 %v3323_v58, %s5429_s23  ;;  %v3407_v58 = vpack.c.bf16 %v6303_v60, %v3401_v42 }
 0x8ab   : > { %3333 = vrot.lane.b32.xlu0 %v3325_v48, %s5429_s23  ;;  %v6314_v48 = vmul.f32 %v6078_v30, %v5706_v10 }
 0x8ae   : > { %3303 = vrot.lane.b32.xlu1 %v3295_v53, %s5428_s22  ;;  %v3378_v53 = vpack.c.bf16 %v6314_v48, %v3372_v5 }
 0x8af   : > { %3301 = vrot.lane.b32.xlu0 %v3294_v23, %s5428_s22  ;;  %v3456_v23 = vmul.f32 %v6207_v12, %v5733_v34  ;;  %v6342_v12 = vmul.f32 %v6218_v22, %v5722_v19 }
 0x8b1   : > { %v3463_v38 = vpack.c.bf16 %v6342_v12, %v3457_v9 }
 0x8b2   : > { %3383 = vrot.lane.b32.xlu1 %v3377_v61, %s5431_s26  ;;  %v6331_v61 = vmul.f32 %v6078_v30, %v5733_v34 }
 0x8b3   : > { %3353 = vrot.lane.b32.xlu0 %v6201_v24, %s5430_s25 }
 0x8b4   : > { %v3462_v26 = vpack.c.bf16 %v6331_v61, %v3456_v23 }
 0x8b6   : > { %3331 = vrot.lane.b32.xlu1 %v3324_v47, %s5429_s23  ;;  %v3455_v47 = vmul.f32 %v6197_v13, %v5726_v31  ;;  %v3498_v13 = vld [vmem:[%s7634_s8] sm:$0xf] }
 0x8b7   : > { %3387 = vrot.lane.b32.xlu0 %v3379_v41, %s5431_s26 }
 0x8ba   : > { %3417 = vrot.lane.b32.xlu1 %v3409_v46, %s5432_s28 }
 0x8bb   : > { %3413 = vrot.lane.b32.xlu0 %v3407_v58, %s5432_s28 }
 0x8be   : > { %3385 = vrot.lane.b32.xlu1 %v3378_v53, %s5431_s26 }
 0x8bf   : > { %3415 = vrot.lane.b32.xlu0 %v3408_v3, %s5432_s28 }
 0x8c2   : > { %3439 = vrot.lane.b32.xlu1 %v3264_v27, %s5433_s17 }
 0x8c3   : > { %3441 = vrot.lane.b32.xlu0 %v3349_v29, %s5433_s17  ;;  %v6347_v29 = vmul.f32 %v6078_v30, %v5726_v31 }
 0x8c5   : > { %v3461_v27 = vpack.c.bf16 %v6347_v29, %v3455_v47 }
 0x8c6   : > { %3437 = vrot.lane.b32.xlu1 %v6201_v24, %s5433_s17 }
 0x8c7   : > { %3469 = vrot.lane.b32.xlu0 %v3462_v26, %s5435_s20 }
 0x8ca   : > { %3471 = vrot.lane.b32.xlu1 %v3463_v38, %s5435_s20 }
 0x8cb   : > { %3467 = vrot.lane.b32.xlu0 %v3461_v27, %s5435_s20 }
 0x8ce   : > { %3501 = vperm.xlu1 %5373, %v3498_v13  }
 0x910   : > { %v3270_v24 = vpop.permute.xlu1 %3269 }
 0x911   : > { %v3274_v16 = vpop.permute.xlu0 %3273 }
 0x914   : > { %v3358_v41 = vpop.permute.xlu1 %3357 }
 0x915   : > { %v3300_v42 = vpop.permute.xlu0 %3299 }
 0x918   : > { %v3272_v46 = vpop.permute.xlu1 %3271 }
 0x919   : > { %v3356_v5 = vpop.permute.xlu0 %3355  ;;  %v3276_v58 = vsel %vm594_vm8, %v3272_v46, %v3274_v16  ;;  %v3275_v1 = vsel %vm594_vm8, %v3270_v24, %v3272_v46 }
 0x91a   : > { %3519 = vmatprep.subr.bf16.mxu0 %v3276_v58  ;;  %v3360_v46 = vsel %vm699_vm11, %v3356_v5, %v3358_v41 }
 0x91b   : > { %3520 = vmatpush1.bf16.msra.mxu0 %v3275_v1 }
 0x91c   : > { %v3330_v53 = vpop.permute.xlu1 %3329 }
 0x91d   : > { %v3334_v3 = vpop.permute.xlu0 %3333 }
 0x920   : > { %v3304_v23 = vpop.permute.xlu1 %3303 }
 0x921   : > { %v3302_v9 = vpop.permute.xlu0 %3301 }
 0x922   : > { %v3306_v26 = vsel %vm634_vm9, %v3302_v9, %v3304_v23  ;;  %v3305_v47 = vsel %vm634_vm9, %v3300_v42, %v3302_v9 }
 0x923   : > { %3521 = vmatprep.subr.bf16.mxu0 %v3306_v26 }
 0x924   : > { %v3384_v38 = vpop.permute.xlu1 %3383  ;;  %3522 = vmatpush1.bf16.msra.mxu0 %v3305_v47 }
 0x925   : > { %v3354_v27 = vpop.permute.xlu0 %3353 }
 0x926   : > { %v3359_v23 = vsel %vm699_vm11, %v3354_v27, %v3356_v5 }
 0x928   : > { %v3332_v13 = vpop.permute.xlu1 %3331 }
 0x929   : > { %v3388_v15 = vpop.permute.xlu0 %3387  ;;  %v3336_v16 = vsel %vm674_vm10, %v3332_v13, %v3334_v3  ;;  %v3335_v24 = vsel %vm674_vm10, %v3330_v53, %v3332_v13 }
 0x92a   : > { %3523 = vmatprep.subr.bf16.mxu0 %v3336_v16 }
 0x92b   : > { %3524 = vmatpush1.bf16.msra.mxu0 %v3335_v24 }
 0x92c   : > { %v3418_v58 = vpop.permute.xlu1 %3417  ;;  %3525 = vmatprep.subr.bf16.mxu0 %v3360_v46 }
 0x92d   : > { %v3414_v1 = vpop.permute.xlu0 %3413 }
 0x92f   : > { %3526 = vmatpush1.bf16.msra.mxu0 %v3359_v23 }
 0x930   : > { %v3386_v42 = vpop.permute.xlu1 %3385 }
 0x931   : > { %v3416_v9 = vpop.permute.xlu0 %3415  ;;  %v3390_v26 = vsel %vm739_vm12, %v3386_v42, %v3388_v15  ;;  %v3389_v47 = vsel %vm739_vm12, %v3384_v38, %v3386_v42 }
 0x932   : > { %3527 = vmatprep.subr.bf16.mxu0 %v3390_v26  ;;  %v3420_v3 = vsel %vm779_vm13, %v3416_v9, %v3418_v58  ;;  %v3419_v41 = vsel %vm779_vm13, %v3414_v1, %v3416_v9  ;;  %v5328_v1 = vld [vmem:[%s6055_s27 + $0x8] sm:$0xf] }
 0x933   : > { %3528 = vmatpush1.bf16.msra.mxu0 %v3389_v47  ;;  %v3888_v23 = vunpack.c.l.bf16 %v5328_v1 }
 0x934   : > { %v3440_v53 = vpop.permute.xlu1 %3439  ;;  %3529 = vmatprep.subr.bf16.mxu0 %v3420_v3 }
 0x935   : > { %v3442_v13 = vpop.permute.xlu0 %3441  ;;  %v3890_v3 = vcombine.high %v3888_v23, %v3888_v23 }
 0x936   : > { %v3444_v16 = vsel %vm804_vm14, %v3440_v53, %v3442_v13 }
 0x937   : > { %3530 = vmatpush1.bf16.msra.mxu0 %v3419_v41 }
 0x938   : > { %v3438_v5 = vpop.permute.xlu1 %3437  ;;  %3531 = vmatprep.subr.bf16.mxu0 %v3444_v16 }
 0x939   : > { %v3443_v27 = vsel %vm804_vm14, %v3438_v5, %v3440_v53  ;;  %v3470_v15 = vpop.permute.xlu0 %3469 }
 0x93b   : > { %3532 = vmatpush1.bf16.msra.mxu0 %v3443_v27  ;;  %v5394_v27 = vpack.i.bf16 %v3890_v3, %v3888_v23 }
 0x93c   : > { %v3472_v38 = vpop.permute.xlu1 %3471 }
 0x93d   : > { %v3468_v24 = vpop.permute.xlu0 %3467  ;;  %v3474_v46 = vsel %vm843_vm15, %v3470_v15, %v3472_v38 }
 0x93e   : > { %v3473_v58 = vsel %vm843_vm15, %v3468_v24, %v3470_v15  ;;  %3533 = vmatprep.subr.bf16.mxu0 %v3474_v46 }
 0x93f   : > { %3534 = vmatpush1.bf16.msra.mxu0 %v3473_v58 }
 0x942   : > { %3550 = vmatmul.mubr.bf16.vlgmr.msra.gmra.mrb[16].mxu0 %v6138_v43 }
 0x94d   : > { %v3502_v42 = vpop.permute.xlu1 %3501 }
 0xa15   : > { %v3551_v9 = vpop.f32.mrb[16].mxu0 }
 0xa16   : > { %v3552_v26 = vadd.f32 %v3551_v9, %v3502_v42  ;;  %v3553_v47 = vpop.f32.mrb[17].mxu0 }
 0xa17   : > { %v3554_v53 = vadd.f32 %v3553_v47, %v3502_v42  ;;  %v3555_v13 = vpop.f32.mrb[18].mxu0 }
 0xa18   : > { %v3558_v41 = vmax.f32 %v3552_v26, 0.0  ;;  %v3556_v16 = vpop.f32.mrb[19].mxu0 }
 0xa19   : > { %v3559_v5 = vmax.f32 %v3554_v53, 0.0  ;;  %v3909_v53 = vmul.f32 %v6078_v30, %v5555_v14 }
 0xa1a   : > { %3562 = vrot.lane.b32.xlu0 %v3558_v41, %s5423_s30 }
 0xa1b   : > { %3564 = vrot.lane.b32.xlu1 %v3559_v5, %s5423_s30 }
 0xa1e   : > { %5395 = vrot.lane.b32.xlu0 %v5394_v27, %s5423_s30  ;;  %v3908_v27 = vmul.f32 %v6078_v30, %v5547_v8 }
 0xa8c   : > { %v3563_v43 = vpop.permute.xlu0 %3562 }
 0xa8d   : > { %3570 = vst.msk [vmem:[#allocation2] sm:$0xf] %vm539_vm2, %v3563_v43  ;;  %v3565_v15 = vpop.permute.xlu1 %3564 }
 0xa8e   : > { %v3566_v38 = vsel %vm534_vm1, %v3563_v43, %v3565_v15  ;;  %3572 = vst.msk [vmem:[#allocation2 + $0x10] sm:$0xf] %vm542_vm3, %v3565_v15 }
 0xa8f   : > { %3571 = vst [vmem:[#allocation2 + $0x8] sm:$0xf] %v3566_v38 }
 0xa90   : > { %v5396_v24 = vpop.permute.xlu0 %5395 }
 0xa91   : > { %v5398_v46 = vunpack.i.h.bf16 %v5396_v24  ;;  %v5397_v58 = vunpack.i.l.bf16 %v5396_v24 }
 0xa93   : > { %v3895_v23 = vsel %vm534_vm1, %v5397_v58, %v5398_v46 }
 0xa94   : > { %v6380_v1 = vld [vmem:[#allocation2] sm:$0xff] }
 0xa95   : > { %v6383_v42 = vld [vmem:[#allocation2 + $0x10] sm:$0xff]  ;;  %3899 = vst.msk [vmem:[#allocation2] sm:$0xf] %vm539_vm2, %v5397_v58 }
 0xa96   : > { %v6386_v9 = vld [vmem:[#allocation2 + $0x8] sm:$0xff]  ;;  %3901 = vst.msk [vmem:[#allocation2 + $0x10] sm:$0xf] %vm542_vm3, %v5398_v46 }
 0xa97   : > { %3900 = vst [vmem:[#allocation2 + $0x8] sm:$0xf] %v3895_v23 }
 0xa9c   : > { %v6389_v26 = vld [vmem:[#allocation2] sm:$0xff] }
 0xa9d   : > { %v6393_v47 = vpack.c.bf16 %v6078_v30, %v6389_v26  ;;  %v3916_v3 = vld [vmem:[#allocation2 + $0x10] sm:$0xff]  ;;  %v3944_v16 = vmul.f32 %v6389_v26, %v5567_v21  ;;  %v3906_v5 = vmul.f32 %v6389_v26, %v5547_v8  ;;  %v3974_v58 = vmul.f32 %v6389_v26, %v5565_v20 }
 0xa9e   : > { %v3922_v13 = vpack.c.bf16 %v6218_v22, %v3916_v3  ;;  %v3903_v41 = vld [vmem:[#allocation2 + $0x8] sm:$0xff]  ;;  %v3976_v23 = vmul.f32 %v3916_v3, %v5615_v40 }
 0xa9f   : > { %3926 = vrot.lane.b32.xlu1 %v6393_v47, %s5427_s21  ;;  %v3907_v43 = vmul.f32 %v3903_v41, %v5555_v14  ;;  %v3950_v38 = vpack.c.bf16 %v6222_v57, %v3944_v16  ;;  %v3910_v24 = vpack.c.bf16 %v3908_v27, %v3906_v5  ;;  %v3921_v46 = vpack.c.bf16 %v6078_v30, %v3903_v41 }
 0xaa0   : > { %3930 = vrot.lane.b32.xlu0 %v3922_v13, %s5427_s21  ;;  %v3946_v16 = vmul.f32 %v3916_v3, %v5560_v18  ;;  %v3982_v5 = vpack.c.bf16 %v6245_v35, %v3976_v23  ;;  %v3945_v27 = vmul.f32 %v3903_v41, %v5633_v44  ;;  %v4030_v23 = vmul.f32 %v3916_v3, %v5652_v51 }
 0xaa1   : > { %v3911_v15 = vpack.c.bf16 %v3909_v53, %v3907_v43  ;;  %v3980_v53 = vpack.c.bf16 %v6240_v25, %v3974_v58  ;;  %v3975_v58 = vmul.f32 %v3903_v41, %v5664_v56 }
 0xaa2   : > { %v3952_v43 = vpack.c.bf16 %v6256_v55, %v3946_v16  ;;  %v4060_v16 = vmul.f32 %v3916_v3, %v5680_v62 }
 0xaa3   : > { %4014 = vrot.lane.b32.xlu1 %v3922_v13, %s5430_s25  ;;  %4174 = vmatprep.subr.bf16.mxu0 %v3911_v15  ;;  %v4028_v15 = vmul.f32 %v6389_v26, %v5650_v50 }
 0xaa4   : > { %3956 = vrot.lane.b32.xlu0 %v3950_v38, %s5428_s22  ;;  %4175 = vmatpush1.bf16.msra.mxu0 %v3910_v24  ;;  %v3951_v38 = vpack.c.bf16 %v6261_v11, %v3945_v27  ;;  %v4058_v27 = vmul.f32 %v6389_v26, %v5682_v63 }
 0xaa5   : > { %v4034_v24 = vpack.c.bf16 %v6270_v45, %v4028_v15  ;;  %v4029_v15 = vmul.f32 %v3903_v41, %v5706_v10 }
 0xaa7   : > { %3928 = vrot.lane.b32.xlu1 %v3921_v46, %s5427_s21 }
 0xaa8   : > { %4012 = vrot.lane.b32.xlu0 %v3921_v46, %s5430_s25 }
 0xaab   : > { %3986 = vrot.lane.b32.xlu1 %v3980_v53, %s5429_s23  ;;  %v3981_v53 = vpack.c.bf16 %v6281_v17, %v3975_v58  ;;  %v4035_v58 = vpack.c.bf16 %v6314_v48, %v4029_v15  ;;  %v4112_v15 = vmul.f32 %v6389_v26, %v5726_v31  ;;  %v987_v26 = vmul.f32 %v5811_v4, %v5633_v44 }
 0xaac   : > { %3990 = vrot.lane.b32.xlu0 %v3982_v5, %s5429_s23  ;;  %v4036_v5 = vpack.c.bf16 %v6287_v32, %v4030_v23 }
 0xaaf   : > { %3960 = vrot.lane.b32.xlu1 %v3952_v43, %s5428_s22  ;;  %v4066_v43 = vpack.c.bf16 %v6298_v33, %v4060_v16  ;;  %v4113_v16 = vmul.f32 %v3903_v41, %v5733_v34 }
 0xab0   : > { %3958 = vrot.lane.b32.xlu0 %v3951_v38, %s5428_s22  ;;  %v4064_v38 = vpack.c.bf16 %v6303_v60, %v4058_v27  ;;  %v4114_v27 = vmul.f32 %v3916_v3, %v5722_v19  ;;  %v963_v3 = vpack.c.bf16 %v6078_v30, %v5811_v4 }
 0xab3   : > { %4040 = vrot.lane.b32.xlu1 %v4034_v24, %s5431_s26  ;;  %v4059_v24 = vmul.f32 %v3903_v41, %v5702_v7  ;;  %v4120_v41 = vpack.c.bf16 %v6342_v12, %v4114_v27  ;;  %v1018_v27 = vmul.f32 %v5808_v2, %v5615_v40 }
 0xab4   : > { %4010 = vrot.lane.b32.xlu0 %v6393_v47, %s5430_s25 }
 0xab5   : > { %v4065_v23 = vpack.c.bf16 %v6319_v49, %v4059_v24  ;;  %v993_v24 = vpack.c.bf16 %v6261_v11, %v987_v26  ;;  %v1071_v26 = vmul.f32 %v5811_v4, %v5706_v10 }
 0xab7   : > { %3988 = vrot.lane.b32.xlu1 %v3981_v53, %s5429_s23  ;;  %v6455_v53 = vld.sshfl [vmem:[%s7633_s7] sm:$0x33 pattern:$0x76325410] }
 0xab8   : > { %4044 = vrot.lane.b32.xlu0 %v4036_v5, %s5431_s26  ;;  %v4169_v5 = vcombine.high %v6455_v53, %v6455_v53 }
 0xaba   : > { %5330 = vmatprep.mubr.msk.bf16.mxu0 %vm651_vm5, %v4169_v5 }
 0xabb   : > { %4074 = vrot.lane.b32.xlu1 %v4066_v43, %s5432_s28  ;;  %v4119_v43 = vpack.c.bf16 %v6331_v61, %v4113_v16  ;;  %v1017_v16 = vmul.f32 %v5811_v4, %v5664_v56 }
 0xabc   : > { %4070 = vrot.lane.b32.xlu0 %v4064_v38, %s5432_s28  ;;  %v988_v38 = vmul.f32 %v5808_v2, %v5560_v18 }
 0xabf   : > { %4042 = vrot.lane.b32.xlu1 %v4035_v58, %s5431_s26  ;;  %v986_v58 = vmul.f32 %v5805_v0, %v5567_v21 }
 0xac0   : > { %4072 = vrot.lane.b32.xlu0 %v4065_v23, %s5432_s28  ;;  %v994_v23 = vpack.c.bf16 %v6256_v55, %v988_v38  ;;  %v1072_v38 = vmul.f32 %v5808_v2, %v5652_v51 }
 0xac1   : > { %v992_v5 = vpack.c.bf16 %v6222_v57, %v986_v58 }
 0xac2   : > { %v1078_v58 = vpack.c.bf16 %v6287_v32, %v1072_v38  ;;  %v1154_v38 = vmul.f32 %v5805_v0, %v5726_v31 }
 0xac3   : > { %4096 = vrot.lane.b32.xlu1 %v3921_v46, %s5433_s17  ;;  %v4118_v46 = vpack.c.bf16 %v6347_v29, %v4112_v15  ;;  %v1016_v15 = vmul.f32 %v5805_v0, %v5565_v20 }
 0xac4   : > { %4098 = vrot.lane.b32.xlu0 %v3922_v13, %s5433_s17  ;;  %v964_v13 = vpack.c.bf16 %v6218_v22, %v5808_v2 }
 0xac7   : > { %4094 = vrot.lane.b32.xlu1 %v6393_v47, %s5433_s17  ;;  %v962_v47 = vpack.c.bf16 %v6078_v30, %v5805_v0 }
 0xac8   : > { %4126 = vrot.lane.b32.xlu0 %v4119_v43, %s5435_s20  ;;  %v1023_v43 = vpack.c.bf16 %v6281_v17, %v1017_v16 }
 0xacb   : > { %4128 = vrot.lane.b32.xlu1 %v4120_v41, %s5435_s20  ;;  %v1024_v41 = vpack.c.bf16 %v6245_v35, %v1018_v27  ;;  %v1077_v35 = vpack.c.bf16 %v6314_v48, %v1071_v26 }
 0xacc   : > { %4124 = vrot.lane.b32.xlu0 %v4118_v46, %s5435_s20  ;;  %v1022_v46 = vpack.c.bf16 %v6240_v25, %v1016_v15 }
 0xacf   : > { %970 = vrot.lane.b32.xlu1 %v963_v3, %s5427_s21 }
 0xad0   : > { %972 = vrot.lane.b32.xlu0 %v964_v13, %s5427_s21 }
 0xad3   : > { %968 = vrot.lane.b32.xlu1 %v962_v47, %s5427_s21 }
 0xad4   : > { %1000 = vrot.lane.b32.xlu0 %v993_v24, %s5428_s22  ;;  %v1070_v24 = vmul.f32 %v5805_v0, %v5650_v50 }
 0xad6   : > { %v1076_v16 = vpack.c.bf16 %v6270_v45, %v1070_v24 }
 0xad7   : > { %1002 = vrot.lane.b32.xlu1 %v994_v23, %s5428_s22  ;;  %v1101_v23 = vmul.f32 %v5811_v4, %v5702_v7 }
 0xad8   : > { %998 = vrot.lane.b32.xlu0 %v992_v5, %s5428_s22  ;;  %v1102_v5 = vmul.f32 %v5808_v2, %v5680_v62 }
 0xad9   : > { %v1107_v27 = vpack.c.bf16 %v6319_v49, %v1101_v23 }
 0xada   : > { %v1108_v32 = vpack.c.bf16 %v6298_v33, %v1102_v5  ;;  %v1156_v33 = vmul.f32 %v5808_v2, %v5722_v19  ;;  %v6562_v2 = vpack.c.bf16 %v6078_v30, %v5914_v28 }
 0xadb   : > { %1030 = vrot.lane.b32.xlu1 %v1023_v43, %s5429_s23  ;;  %v1100_v43 = vmul.f32 %v5805_v0, %v5682_v63  ;;  %v1644_v0 = vmul.f32 %v5914_v28, %v5633_v44 }
 0xadc   : > { %1032 = vrot.lane.b32.xlu0 %v1024_v41, %s5429_s23  ;;  %v1155_v41 = vmul.f32 %v5811_v4, %v5733_v34 }
 0xadd   : > { %v1106_v15 = vpack.c.bf16 %v6303_v60, %v1100_v43  ;;  %v1650_v24 = vpack.c.bf16 %v6261_v11, %v1644_v0  ;;  %v4155_v11 = vld [vmem:[%s7634_s8] sm:$0xf] }
 0xade   : > { %v1161_v4 = vpack.c.bf16 %v6331_v61, %v1155_v41 }
 0xadf   : > { %1028 = vrot.lane.b32.xlu1 %v1022_v46, %s5429_s23  ;;  %v6539_v46 = vld [vmem:[%s7631_s5] sm:$0xff] }
 0xae0   : > { %1054 = vrot.lane.b32.xlu0 %v963_v3, %s5430_s25  ;;  %v6544_v26 = vcombine.high %v6539_v46, %v6539_v46 }
 0xae2   : > { %5304 = vmatprep.mubr.msk.bf16.mxu1 %vm651_vm5, %v6544_v26 }
 0xae3   : > { %1056 = vrot.lane.b32.xlu1 %v964_v13, %s5430_s25 }
 0xae4   : > { %1052 = vrot.lane.b32.xlu0 %v962_v47, %s5430_s25 }
 0xae7   : > { %1084 = vrot.lane.b32.xlu1 %v1077_v35, %s5431_s26  ;;  %v1160_v35 = vpack.c.bf16 %v6347_v29, %v1154_v38 }
 0xae8   : > { %1086 = vrot.lane.b32.xlu0 %v1078_v58, %s5431_s26 }
 0xaeb   : > { %1082 = vrot.lane.b32.xlu1 %v1076_v16, %s5431_s26  ;;  %v1675_v16 = vmul.f32 %v5911_v37, %v5615_v40 }
 0xaec   : > { %1114 = vrot.lane.b32.xlu0 %v1107_v27, %s5432_s28  ;;  %v6595_v27 = vld [vmem:[#allocation2 + $0x28] sm:$0xff] }
 0xaed   : > { %v1705_v41 = vpack.c.bf16 %v6595_v27, %v5911_v37 }
 0xaef   : > { %1116 = vrot.lane.b32.xlu1 %v1108_v32, %s5432_s28 }
 0xaf0   : > { %1112 = vrot.lane.b32.xlu0 %v1106_v15, %s5432_s28 }
 0xaf3   : > { %1138 = vrot.lane.b32.xlu1 %v963_v3, %s5433_s17  ;;  %v1162_v3 = vpack.c.bf16 %v6342_v12, %v1156_v33  ;;  %v6573_v12 = vpack.c.bf16 %v6078_v30, %v5908_v54  ;;  %v1674_v30 = vmul.f32 %v5914_v28, %v5664_v56  ;;  %v1728_v33 = vmul.f32 %v5914_v28, %v5706_v10 }
 0xaf4   : > { %1140 = vrot.lane.b32.xlu0 %v964_v13, %s5433_s17  ;;  %v1621_v13 = vpack.c.bf16 %v6218_v22, %v5911_v37  ;;  %v1643_v22 = vmul.f32 %v5908_v54, %v5567_v21 }
 0xaf5   : > { %v1680_v5 = vpack.c.bf16 %v6281_v17, %v1674_v30  ;;  %v1759_v30 = vmul.f32 %v5911_v37, %v5680_v62 }
 0xaf6   : > { %v1649_v23 = vpack.c.bf16 %v6222_v57, %v1643_v22  ;;  %v1673_v57 = vmul.f32 %v5908_v54, %v5565_v20 }
 0xaf7   : > { %1136 = vrot.lane.b32.xlu1 %v962_v47, %s5433_s17  ;;  %v1645_v47 = vmul.f32 %v5911_v37, %v5560_v18 }
 0xaf8   : > { %1168 = vrot.lane.b32.xlu0 %v1161_v4, %s5435_s20  ;;  %v1679_v32 = vpack.c.bf16 %v6240_v25, %v1673_v57  ;;  %v1729_v25 = vmul.f32 %v5911_v37, %v5652_v51 }
 0xaf9   : > { %v1651_v58 = vpack.c.bf16 %v6256_v55, %v1645_v47  ;;  %v6601_v55 = vmul.f32 %v6595_v27, %v5615_v40 }
 0xafb   : > { %1170 = vrot.lane.b32.xlu1 %v1162_v3, %s5435_s20  ;;  %v1681_v43 = vpack.c.bf16 %v6601_v55, %v1675_v16  ;;  %v1734_v3 = vpack.c.bf16 %v6314_v48, %v1728_v33 }
 0xafc   : > { %1166 = vrot.lane.b32.xlu0 %v1160_v35, %s5435_s20  ;;  %v1727_v35 = vmul.f32 %v5908_v54, %v5650_v50 }
 0xaff   : > { %1627 = vrot.lane.b32.xlu1 %v6562_v2, %s5427_s21 }
 0xb00   : > { %1629 = vrot.lane.b32.xlu0 %v1621_v13, %s5427_s21  ;;  %v6624_v13 = vmul.f32 %v6595_v27, %v5652_v51 }
 0xb02   : > { %v1735_v47 = vpack.c.bf16 %v6624_v13, %v1729_v25 }
 0xb03   : > { %1625 = vrot.lane.b32.xlu1 %v6573_v12, %s5427_s21 }
 0xb04   : > { %1657 = vrot.lane.b32.xlu0 %v1650_v24, %s5428_s22  ;;  %v1758_v24 = vmul.f32 %v5914_v28, %v5702_v7 }
 0xb07   : > { %1659 = vrot.lane.b32.xlu1 %v1651_v58, %s5428_s22  ;;  %v1733_v58 = vpack.c.bf16 %v6270_v45, %v1727_v35  ;;  %v1757_v45 = vmul.f32 %v5908_v54, %v5682_v63 }
 0xb08   : > { %1655 = vrot.lane.b32.xlu0 %v1649_v23, %s5428_s22 }
 0xb0b   : > { %4158 = vperm.xlu1 %5373, %v4155_v11   ;;  %v6639_v11 = vmul.f32 %v6595_v27, %v5680_v62 }
 0xb0c   : > { %1687 = vrot.lane.b32.xlu0 %v1680_v5, %s5429_s23  ;;  %v1764_v5 = vpack.c.bf16 %v6319_v49, %v1758_v24 }
 0xb0f   : > { %1689 = vrot.lane.b32.xlu1 %v1681_v43, %s5429_s23  ;;  %v1765_v43 = vpack.c.bf16 %v6639_v11, %v1759_v30  ;;  %v6674_v30 = vld [vmem:[#allocation2 + $0x18] sm:$0xff] }
 0xb10   : > { %1685 = vrot.lane.b32.xlu0 %v1679_v32, %s5429_s23 }
 0xb11   : > { %v3927_v17 = vpop.permute.xlu1 %3926 }
 0xb12   : > { %v3931_v15 = vpop.permute.xlu0 %3930 }
 0xb13   : > { %1711 = vrot.lane.b32.xlu1 %v6562_v2, %s5430_s25 }
 0xb14   : > { %1713 = vrot.lane.b32.xlu0 %v1705_v41, %s5430_s25 }
 0xb15   : > { %v4015_v4 = vpop.permute.xlu1 %4014 }
 0xb16   : > { %v3957_v38 = vpop.permute.xlu0 %3956 }
 0xb17   : > { %1709 = vrot.lane.b32.xlu1 %v6573_v12, %s5430_s25 }
 0xb18   : > { %1741 = vrot.lane.b32.xlu0 %v1734_v3, %s5431_s26  ;;  %v1812_v3 = vmul.f32 %v5914_v28, %v5733_v34 }
 0xb19   : > { %v3929_v0 = vpop.permute.xlu1 %3928 }
 0xb1a   : > { %v4013_v22 = vpop.permute.xlu0 %4012  ;;  %v3933_v48 = vsel %vm594_vm8, %v3929_v0, %v3931_v15  ;;  %v3932_v23 = vsel %vm594_vm8, %v3927_v17, %v3929_v0  ;;  %v1763_v17 = vpack.c.bf16 %v6303_v60, %v1757_v45  ;;  %v1813_v60 = vmul.f32 %v5911_v37, %v5722_v19 }
 0xb1b   : > { %1743 = vrot.lane.b32.xlu1 %v1735_v47, %s5431_s26  ;;  %4176 = vmatprep.subr.bf16.mxu0 %v3933_v48  ;;  %v1818_v0 = vpack.c.bf16 %v6331_v61, %v1812_v3  ;;  %v1811_v47 = vmul.f32 %v5908_v54, %v5726_v31  ;;  %v6686_v45 = vpack.c.bf16 %v6595_v27, %v6070_v36 }
 0xb1c   : > { %1739 = vrot.lane.b32.xlu0 %v1733_v58, %s5431_s26  ;;  %4177 = vmatpush1.bf16.msra.mxu0 %v3932_v23 }
 0xb1d   : > { %v3987_v16 = vpop.permute.xlu1 %3986  ;;  %v1817_v61 = vpack.c.bf16 %v6347_v29, %v1811_v47  ;;  %v2301_v29 = vmul.f32 %v6073_v6, %v5633_v44 }
 0xb1e   : > { %v3991_v57 = vpop.permute.xlu0 %3990 }
 0xb1f   : > { %1771 = vrot.lane.b32.xlu1 %v1764_v5, %s5432_s28  ;;  %v6678_v5 = vpack.c.bf16 %v6674_v30, %v6073_v6 }
 0xb20   : > { %1773 = vrot.lane.b32.xlu0 %v1765_v43, %s5432_s28 }
 0xb21   : > { %v3961_v32 = vpop.permute.xlu1 %3960 }
 0xb22   : > { %v3959_v15 = vpop.permute.xlu0 %3958 }
 0xb23   : > { %1769 = vrot.lane.b32.xlu1 %v1763_v17, %s5432_s28  ;;  %v3963_v33 = vsel %vm634_vm9, %v3959_v15, %v3961_v32  ;;  %v3962_v49 = vsel %vm634_vm9, %v3957_v38, %v3959_v15  ;;  %v6662_v38 = vmul.f32 %v6595_v27, %v5722_v19  ;;  %v2302_v17 = vmul.f32 %v6070_v36, %v5560_v18 }
 0xb24   : > { %1795 = vrot.lane.b32.xlu0 %v6562_v2, %s5433_s17  ;;  %4178 = vmatprep.subr.bf16.mxu0 %v3963_v33  ;;  %v6703_v33 = vmul.f32 %v6674_v30, %v5633_v44 }
 0xb25   : > { %v4041_v25 = vpop.permute.xlu1 %4040  ;;  %4179 = vmatpush1.bf16.msra.mxu0 %v3962_v49  ;;  %v1819_v37 = vpack.c.bf16 %v6662_v38, %v1813_v60  ;;  %v6709_v49 = vmul.f32 %v6595_v27, %v5560_v18 }
 0xb26   : > { %v4011_v35 = vpop.permute.xlu0 %4010  ;;  %v2307_v3 = vpack.c.bf16 %v6703_v33, %v2301_v29  ;;  %v6740_v29 = vmul.f32 %v6674_v30, %v5565_v20 }
 0xb27   : > { %1797 = vrot.lane.b32.xlu1 %v1705_v41, %s5433_s17 }
 0xb28   : > { %1793 = vrot.lane.b32.xlu0 %v6573_v12, %s5433_s17  ;;  %v4017_v12 = vsel %vm699_vm11, %v4013_v22, %v4015_v4 }
 0xb29   : > { %v3989_v2 = vpop.permute.xlu1 %3988 }
 0xb2a   : > { %v4045_v24 = vpop.permute.xlu0 %4044  ;;  %v3993_v48 = vsel %vm674_vm10, %v3989_v2, %v3991_v57  ;;  %v3992_v41 = vsel %vm674_vm10, %v3987_v16, %v3989_v2  ;;  %v4016_v16 = vsel %vm699_vm11, %v4011_v35, %v4013_v22  ;;  %v6693_v22 = vpack.c.bf16 %v6674_v30, %v6067_v52 }
 0xb2b   : > { %1825 = vrot.lane.b32.xlu1 %v1818_v0, %s5435_s20  ;;  %4180 = vmatprep.subr.bf16.mxu0 %v3993_v48  ;;  %v2300_v35 = vmul.f32 %v6067_v52, %v5567_v21  ;;  %v2308_v2 = vpack.c.bf16 %v6709_v49, %v2302_v17  ;;  %v2331_v0 = vmul.f32 %v6073_v6, %v5664_v56 }
 0xb2c   : > { %1827 = vrot.lane.b32.xlu0 %v1819_v37, %s5435_s20  ;;  %4181 = vmatpush1.bf16.msra.mxu0 %v3992_v41  ;;  %v6722_v48 = vmul.f32 %v6674_v30, %v5567_v21  ;;  %v6727_v37 = vmul.f32 %v6674_v30, %v5664_v56 }
 0xb2d   : > { %v4075_v58 = vpop.permute.xlu1 %4074  ;;  %4182 = vmatprep.subr.bf16.mxu0 %v4017_v12 }
 0xb2e   : > { %v4071_v23 = vpop.permute.xlu0 %4070  ;;  %v2306_v12 = vpack.c.bf16 %v6722_v48, %v2300_v35 }
 0xb2f   : > { %1823 = vrot.lane.b32.xlu1 %v1817_v61, %s5435_s20 }
 0xb30   : > { %2284 = vrot.lane.b32.xlu0 %v6678_v5, %s5427_s21  ;;  %4183 = vmatpush1.bf16.msra.mxu0 %v4016_v16  ;;  %v2337_v16 = vpack.c.bf16 %v6727_v37, %v2331_v0  ;;  %v6758_v0 = vmul.f32 %v6674_v30, %v5706_v10 }
 0xb31   : > { %v4043_v4 = vpop.permute.xlu1 %4042 }
 0xb32   : > { %v4073_v57 = vpop.permute.xlu0 %4072  ;;  %v4047_v43 = vsel %vm739_vm12, %v4043_v4, %v4045_v24  ;;  %v4046_v32 = vsel %vm739_vm12, %v4041_v25, %v4043_v4  ;;  %v2330_v4 = vmul.f32 %v6067_v52, %v5565_v20 }
 0xb33   : > { %2286 = vrot.lane.b32.xlu1 %v6686_v45, %s5427_s21  ;;  %4184 = vmatprep.subr.bf16.mxu0 %v4047_v43  ;;  %v4077_v15 = vsel %vm779_vm13, %v4073_v57, %v4075_v58  ;;  %v4076_v47 = vsel %vm779_vm13, %v4071_v23, %v4073_v57  ;;  %v2332_v58 = vmul.f32 %v6070_v36, %v5615_v40 }
 0xb34   : > { %2282 = vrot.lane.b32.xlu0 %v6693_v22, %s5427_s21  ;;  %4185 = vmatpush1.bf16.msra.mxu0 %v4046_v32 }
 0xb35   : > { %v4097_v25 = vpop.permute.xlu1 %4096  ;;  %4186 = vmatprep.subr.bf16.mxu0 %v4077_v15  ;;  %v2338_v43 = vpack.c.bf16 %v6601_v55, %v2332_v58  ;;  %v2336_v15 = vpack.c.bf16 %v6740_v29, %v2330_v4  ;;  %v2415_v4 = vmul.f32 %v6073_v6, %v5702_v7 }
 0xb36   : > { %v4099_v60 = vpop.permute.xlu0 %4098 }
 0xb37   : > { %2314 = vrot.lane.b32.xlu1 %v2307_v3, %s5428_s22  ;;  %v4101_v24 = vsel %vm804_vm14, %v4097_v25, %v4099_v60  ;;  %v2385_v60 = vmul.f32 %v6073_v6, %v5706_v10 }
 0xb38   : > { %2316 = vrot.lane.b32.xlu0 %v2308_v2, %s5428_s22  ;;  %4187 = vmatpush1.bf16.msra.mxu0 %v4076_v47 }
 0xb39   : > { %v4095_v41 = vpop.permute.xlu1 %4094  ;;  %4188 = vmatprep.subr.bf16.mxu0 %v4101_v24  ;;  %v2386_v24 = vmul.f32 %v6070_v36, %v5652_v51  ;;  %v2391_v58 = vpack.c.bf16 %v6758_v0, %v2385_v60  ;;  %v2414_v60 = vmul.f32 %v6067_v52, %v5682_v63 }
 0xb3a   : > { %v4100_v61 = vsel %vm804_vm14, %v4095_v41, %v4097_v25  ;;  %v4127_v23 = vpop.permute.xlu0 %4126 }
 0xb3b   : > { %2312 = vrot.lane.b32.xlu1 %v2306_v12, %s5428_s22 }
 0xb3c   : > { %2344 = vrot.lane.b32.xlu0 %v2337_v16, %s5429_s23  ;;  %4189 = vmatpush1.bf16.msra.mxu0 %v4100_v61  ;;  %v6771_v61 = vmul.f32 %v6674_v30, %v5650_v50  ;;  %v2392_v16 = vpack.c.bf16 %v6624_v13, %v2386_v24 }
 0xb3d   : > { %v4129_v57 = vpop.permute.xlu1 %4128 }
 0xb3e   : > { %v4125_v32 = vpop.permute.xlu0 %4124  ;;  %v4131_v17 = vsel %vm843_vm15, %v4127_v23, %v4129_v57 }
 0xb3f   : > { %v4130_v25 = vsel %vm843_vm15, %v4125_v32, %v4127_v23  ;;  %2346 = vrot.lane.b32.xlu1 %v2338_v43, %s5429_s23  ;;  %4190 = vmatprep.subr.bf16.mxu0 %v4131_v17  ;;  %v2416_v17 = vmul.f32 %v6070_v36, %v5680_v62 }
 0xb40   : > { %2342 = vrot.lane.b32.xlu0 %v2336_v15, %s5429_s23  ;;  %4191 = vmatpush1.bf16.msra.mxu0 %v4130_v25  ;;  %v6784_v25 = vmul.f32 %v6674_v30, %v5702_v7 }
 0xb41   : > { %v971_v3 = vpop.permute.xlu1 %970 }
 0xb42   : > { %v973_v35 = vpop.permute.xlu0 %972 }
 0xb43   : > { %2368 = vrot.lane.b32.xlu1 %v6678_v5, %s5430_s25  ;;  %4207 = vmatmul.mubr.bf16.vlgmr.msra.gmra.mrb[20].mxu0 %v6455_v53  ;;  %v975_v2 = vsel %vm594_vm8, %v971_v3, %v973_v35  ;;  %v2384_v53 = vmul.f32 %v6067_v52, %v5650_v50  ;;  %v2421_v35 = vpack.c.bf16 %v6784_v25, %v2415_v4 }
 0xb44   : > { %2370 = vrot.lane.b32.xlu0 %v6686_v45, %s5430_s25  ;;  %1214 = vmatprep.subr.bf16.mxu1 %v975_v2  ;;  %v2469_v4 = vmul.f32 %v6073_v6, %v5733_v34 }
 0xb45   : > { %v969_v47 = vpop.permute.xlu1 %968  ;;  %v2390_v32 = vpack.c.bf16 %v6771_v61, %v2384_v53 }
 0xb46   : > { %v1001_v41 = vpop.permute.xlu0 %1000  ;;  %v974_v12 = vsel %vm594_vm8, %v969_v47, %v971_v3  ;;  %v2422_v47 = vpack.c.bf16 %v6639_v11, %v2416_v17 }
 0xb47   : > { %2366 = vrot.lane.b32.xlu1 %v6693_v22, %s5430_s25  ;;  %1215 = vmatpush1.bf16.msra.mxu1 %v974_v12 }
 0xb48   : > { %2398 = vrot.lane.b32.xlu0 %v2391_v58, %s5431_s26 }
 0xb49   : > { %v1003_v23 = vpop.permute.xlu1 %1002 }
 0xb4a   : > { %v999_v57 = vpop.permute.xlu0 %998  ;;  %v1005_v43 = vsel %vm634_vm9, %v1001_v41, %v1003_v23 }
 0xb4b   : > { %2400 = vrot.lane.b32.xlu1 %v2392_v16, %s5431_s26  ;;  %1216 = vmatprep.subr.bf16.mxu1 %v1005_v43  ;;  %v1004_v15 = vsel %vm634_vm9, %v999_v57, %v1001_v41  ;;  %v6795_v41 = vmul.f32 %v6674_v30, %v5682_v63 }
 0xb4c   : > { %2396 = vrot.lane.b32.xlu0 %v2390_v32, %s5431_s26  ;;  %1217 = vmatpush1.bf16.msra.mxu1 %v1004_v15  ;;  %v2470_v32 = vmul.f32 %v6070_v36, %v5722_v19  ;;  %v6813_v15 = vmul.f32 %v6674_v30, %v5733_v34  ;;  %v2468_v36 = vmul.f32 %v6067_v52, %v5726_v31 }
 0xb4d   : > { %v1031_v3 = vpop.permute.xlu1 %1030  ;;  %v2420_v58 = vpack.c.bf16 %v6795_v41, %v2414_v60 }
 0xb4e   : > { %v1033_v2 = vpop.permute.xlu0 %1032 }
 0xb4f   : > { %2428 = vrot.lane.b32.xlu1 %v2421_v35, %s5432_s28  ;;  %v1035_v24 = vsel %vm674_vm10, %v1031_v3, %v1033_v2  ;;  %v6825_v2 = vmul.f32 %v6674_v30, %v5726_v31 }
 0xb50   : > { %2430 = vrot.lane.b32.xlu0 %v2422_v47, %s5432_s28  ;;  %1218 = vmatprep.subr.bf16.mxu1 %v1035_v24 }
 0xb51   : > { %v1029_v12 = vpop.permute.xlu1 %1028  ;;  %v2474_v47 = vpack.c.bf16 %v6825_v2, %v2468_v36 }
 0xb52   : > { %v1055_v53 = vpop.permute.xlu0 %1054  ;;  %v1034_v23 = vsel %vm674_vm10, %v1029_v12, %v1031_v3  ;;  %v2475_v3 = vpack.c.bf16 %v6813_v15, %v2469_v4 }
 0xb53   : > { %2426 = vrot.lane.b32.xlu1 %v2420_v58, %s5432_s28  ;;  %1219 = vmatpush1.bf16.msra.mxu1 %v1034_v23  ;;  %v2959_v23 = vmul.f32 %v6194_v39, %v5633_v44 }
 0xb54   : > { %2452 = vrot.lane.b32.xlu0 %v6678_v5, %s5433_s17 }
 0xb55   : > { %v1057_v16 = vpop.permute.xlu1 %1056 }
 0xb56   : > { %v1053_v57 = vpop.permute.xlu0 %1052  ;;  %v1059_v43 = vsel %vm699_vm11, %v1055_v53, %v1057_v16 }
 0xb57   : > { %2454 = vrot.lane.b32.xlu1 %v6686_v45, %s5433_s17  ;;  %1220 = vmatprep.subr.bf16.mxu1 %v1059_v43  ;;  %v1058_v17 = vsel %vm699_vm11, %v1053_v57, %v1055_v53  ;;  %v2476_v45 = vpack.c.bf16 %v6662_v38, %v2470_v32  ;;  %v6832_v38 = vpack.c.bf16 %v6674_v30, %v6194_v39  ;;  %v7644_v57 = vld [vmem:[#allocation4_spill] sm:$0xff] }
 0xb58   : > { %2450 = vrot.lane.b32.xlu0 %v6693_v22, %s5433_s17  ;;  %1221 = vmatpush1.bf16.msra.mxu1 %v1058_v17  ;;  %v6839_v53 = vpack.c.bf16 %v6595_v27, %v6191_v59  ;;  %v6846_v43 = vpack.c.bf16 %v6674_v30, %v7644_v57  ;;  %v2960_v32 = vmul.f32 %v6191_v59, %v5560_v18 }
 0xb59   : > { %v1085_v5 = vpop.permute.xlu1 %1084 }
 0xb5a   : > { %v1087_v35 = vpop.permute.xlu0 %1086 }
 0xb5b   : > { %2482 = vrot.lane.b32.xlu1 %v2475_v3, %s5435_s20  ;;  %v1089_v60 = vsel %vm739_vm12, %v1085_v5, %v1087_v35  ;;  %v2958_v3 = vmul.f32 %v7644_v57, %v5567_v21  ;;  %v2966_v35 = vpack.c.bf16 %v6709_v49, %v2960_v32 }
 0xb5c   : > { %2484 = vrot.lane.b32.xlu0 %v2476_v45, %s5435_s20  ;;  %1222 = vmatprep.subr.bf16.mxu1 %v1089_v60  ;;  %v2989_v45 = vmul.f32 %v6194_v39, %v5664_v56 }
 0xb5d   : > { %v1083_v22 = vpop.permute.xlu1 %1082 }
 0xb5e   : > { %v1115_v24 = vpop.permute.xlu0 %1114  ;;  %v1088_v12 = vsel %vm739_vm12, %v1083_v22, %v1085_v5  ;;  %v2965_v5 = vpack.c.bf16 %v6703_v33, %v2959_v23  ;;  %v2995_v49 = vpack.c.bf16 %v6727_v37, %v2989_v45  ;;  %v2988_v23 = vmul.f32 %v7644_v57, %v5565_v20 }
 0xb5f   : > { %2480 = vrot.lane.b32.xlu1 %v2474_v47, %s5435_s20  ;;  %1223 = vmatpush1.bf16.msra.mxu1 %v1088_v12  ;;  %v2964_v47 = vpack.c.bf16 %v6722_v48, %v2958_v3 }
 0xb60   : > { %2942 = vrot.lane.b32.xlu0 %v6832_v38, %s5427_s21  ;;  %v2994_v3 = vpack.c.bf16 %v6740_v29, %v2988_v23 }
 0xb61   : > { %v1117_v58 = vpop.permute.xlu1 %1116 }
 0xb62   : > { %v1113_v16 = vpop.permute.xlu0 %1112  ;;  %v1119_v4 = vsel %vm779_vm13, %v1115_v24, %v1117_v58 }
 0xb63   : > { %2944 = vrot.lane.b32.xlu1 %v6839_v53, %s5427_s21  ;;  %1224 = vmatprep.subr.bf16.mxu1 %v1119_v4  ;;  %v1118_v27 = vsel %vm779_vm13, %v1113_v16, %v1115_v24  ;;  %v2990_v24 = vmul.f32 %v6191_v59, %v5615_v40  ;;  %v1606_v16 = vmul.f32 %v5914_v28, %v5555_v14 }
 0xb64   : > { %2940 = vrot.lane.b32.xlu0 %v6846_v43, %s5427_s21  ;;  %1225 = vmatpush1.bf16.msra.mxu1 %v1118_v27  ;;  %v6876_v4 = vmul.f32 %v6674_v30, %v5555_v14  ;;  %v6886_v28 = vmul.f32 %v6674_v30, %v5547_v8 }
 0xb65   : > { %v1139_v17 = vpop.permute.xlu1 %1138  ;;  %v2996_v27 = vpack.c.bf16 %v6601_v55, %v2990_v24  ;;  %v6893_v55 = vcombine.low %v6539_v46, %v6539_v46 }
 0xb66   : > { %v1141_v36 = vpop.permute.xlu0 %1140  ;;  %v1610_v45 = vpack.c.bf16 %v6876_v4, %v1606_v16  ;;  %v3042_v16 = vmul.f32 %v7644_v57, %v5650_v50 }
 0xb67   : > { %2972 = vrot.lane.b32.xlu1 %v2965_v5, %s5428_s22  ;;  %v1143_v60 = vsel %vm804_vm14, %v1139_v17, %v1141_v36  ;;  %v1605_v36 = vmul.f32 %v5908_v54, %v5547_v8 }
 0xb68   : > { %2974 = vrot.lane.b32.xlu0 %v2966_v35, %s5428_s22  ;;  %1226 = vmatprep.subr.bf16.mxu1 %v1143_v60 }
 0xb69   : > { %v1137_v22 = vpop.permute.xlu1 %1136 }
 0xb6a   : > { %v1169_v12 = vpop.permute.xlu0 %1168  ;;  %v1142_v58 = vsel %vm804_vm14, %v1137_v22, %v1139_v17  ;;  %v1609_v22 = vpack.c.bf16 %v6886_v28, %v1605_v36  ;;  %v3048_v36 = vpack.c.bf16 %v6771_v61, %v3042_v16 }
 0xb6b   : > { %2970 = vrot.lane.b32.xlu1 %v2964_v47, %s5428_s22  ;;  %1227 = vmatpush1.bf16.msra.mxu1 %v1142_v58  ;;  %v3043_v47 = vmul.f32 %v6194_v39, %v5706_v10 }
 0xb6c   : > { %3002 = vrot.lane.b32.xlu0 %v2995_v49, %s5429_s23 }
 0xb6d   : > { %v1171_v32 = vpop.permute.xlu1 %1170  ;;  %v3049_v23 = vpack.c.bf16 %v6758_v0, %v3043_v47 }
 0xb6e   : > { %v1167_v17 = vpop.permute.xlu0 %1166  ;;  %v1173_v5 = vsel %vm843_vm15, %v1169_v12, %v1171_v32 }
 0xb6f   : > { %3004 = vrot.lane.b32.xlu1 %v2996_v27, %s5429_s23  ;;  %1228 = vmatprep.subr.bf16.mxu1 %v1173_v5  ;;  %v1172_v35 = vsel %vm843_vm15, %v1167_v17, %v1169_v12  ;;  %v3044_v12 = vmul.f32 %v6191_v59, %v5652_v51  ;;  %v3073_v17 = vmul.f32 %v6194_v39, %v5702_v7 }
 0xb70   : > { %3000 = vrot.lane.b32.xlu0 %v2994_v3, %s5429_s23  ;;  %1229 = vmatpush1.bf16.msra.mxu1 %v1172_v35  ;;  %v3074_v35 = vmul.f32 %v6191_v59, %v5680_v62 }
 0xb71   : > { %1869 = vmatprep.subr.bf16.mxu1 %v1610_v45  ;;  %v1628_v54 = vpop.permute.xlu1 %1627  ;;  %v3050_v27 = vpack.c.bf16 %v6624_v13, %v3044_v12  ;;  %v3079_v13 = vpack.c.bf16 %v6784_v25, %v3073_v17 }
 0xb72   : > { %v1630_v60 = vpop.permute.xlu0 %1629 }
 0xb73   : > { %3026 = vrot.lane.b32.xlu1 %v6832_v38, %s5430_s25  ;;  %1245 = vmatmul.mubr.bf16.vlgmr.msra.gmra.mrb[0].mxu1 %v6893_v55  ;;  %v1632_v24 = vsel %vm594_vm8, %v1628_v54, %v1630_v60 }
 0xb74   : > { %3028 = vrot.lane.b32.xlu0 %v6839_v53, %s5430_s25  ;;  %1870 = vmatpush1.bf16.msra.mxu1 %v1609_v22  ;;  %v3080_v22 = vpack.c.bf16 %v6639_v11, %v3074_v35 }
 0xb75   : > { %1871 = vmatprep.subr.bf16.mxu1 %v1632_v24  ;;  %v1626_v46 = vpop.permute.xlu1 %1625  ;;  %5310 = vmatprep.mubr.msk.bf16.mxu1 %vm651_vm5, %v6544_v26 }
 0xb76   : > { %v1631_v58 = vsel %vm594_vm8, %v1626_v46, %v1628_v54  ;;  %v1658_v49 = vpop.permute.xlu0 %1657  ;;  %v3072_v54 = vmul.f32 %v7644_v57, %v5682_v63  ;;  %v3127_v46 = vmul.f32 %v6194_v39, %v5733_v34 }
 0xb77   : > { %3024 = vrot.lane.b32.xlu1 %v6846_v43, %s5430_s25 }
 0xb78   : > { %3056 = vrot.lane.b32.xlu0 %v3049_v23, %s5431_s26  ;;  %1872 = vmatpush1.bf16.msra.mxu1 %v1631_v58  ;;  %v3078_v47 = vpack.c.bf16 %v6795_v41, %v3072_v54  ;;  %v3133_v11 = vpack.c.bf16 %v6813_v15, %v3127_v46 }
 0xb79   : > { %v1660_v32 = vpop.permute.xlu1 %1659 }
 0xb7a   : > { %v1656_v5 = vpop.permute.xlu0 %1655  ;;  %v1662_v3 = vsel %vm634_vm9, %v1658_v49, %v1660_v32 }
 0xb7b   : > { %v1661_v45 = vsel %vm634_vm9, %v1656_v5, %v1658_v49  ;;  %3058 = vrot.lane.b32.xlu1 %v3050_v27, %s5431_s26  ;;  %1873 = vmatprep.subr.bf16.mxu1 %v1662_v3 }
 0xb7c   : > { %3054 = vrot.lane.b32.xlu0 %v3048_v36, %s5431_s26  ;;  %1874 = vmatpush1.bf16.msra.mxu1 %v1661_v45 }
 0xb7e   : > { %v1688_v60 = vpop.permute.xlu0 %1687 }
 0xb7f   : > { %3086 = vrot.lane.b32.xlu1 %v3079_v13, %s5432_s28 }
 0xb80   : > { %3088 = vrot.lane.b32.xlu0 %v3080_v22, %s5432_s28 }
 0xb82   : > { %v1686_v24 = vpop.permute.xlu0 %1685 }
 0xb83   : > { %3084 = vrot.lane.b32.xlu1 %v3078_v47, %s5432_s28  ;;  %v1691_v32 = vsel %vm674_vm10, %v1686_v24, %v1688_v60 }
 0xb84   : > { %3110 = vrot.lane.b32.xlu0 %v6832_v38, %s5433_s17 }
 0xb86   : > { %v1714_v12 = vpop.permute.xlu0 %1713 }
 0xb87   : > { %3112 = vrot.lane.b32.xlu1 %v6839_v53, %s5433_s17 }
 0xb88   : > { %3108 = vrot.lane.b32.xlu0 %v6846_v43, %s5433_s17 }
 0xb8a   : > { %v1742_v58 = vpop.permute.xlu0 %1741  ;;  %v6943_v49 = vpop.permute.xlu1 %4158 }
 0xb8b   : > { %3140 = vrot.lane.b32.xlu1 %v3133_v11, %s5435_s20 }
 0xb8e   : > { %v1740_v23 = vpop.permute.xlu0 %1739  ;;  %v1690_v16 = vpop.permute.xlu1 %1689 }
 0xb8f   : > { %v1692_v38 = vsel %vm674_vm10, %v1688_v60, %v1690_v16  ;;  %v1745_v13 = vsel %vm739_vm12, %v1740_v23, %v1742_v58 }
 0xb90   : > { %1875 = vmatprep.subr.bf16.mxu1 %v1692_v38 }
 0xb91   : > { %1876 = vmatpush1.bf16.msra.mxu1 %v1691_v32 }
 0xb92   : > { %v1774_v27 = vpop.permute.xlu0 %1773  ;;  %v1712_v53 = vpop.permute.xlu1 %1711 }
 0xb93   : > { %v1716_v17 = vsel %vm699_vm11, %v1712_v53, %v1714_v12 }
 0xb94   : > { %1877 = vmatprep.subr.bf16.mxu1 %v1716_v17 }
 0xb96   : > { %v1796_v43 = vpop.permute.xlu0 %1795  ;;  %v1710_v5 = vpop.permute.xlu1 %1709 }
 0xb97   : > { %v1715_v3 = vsel %vm699_vm11, %v1710_v5, %v1712_v53  ;;  %v2262_v5 = vmul.f32 %v6067_v52, %v5547_v8 }
 0xb98   : > { %1878 = vmatpush1.bf16.msra.mxu1 %v1715_v3 }
 0xb9a   : > { %v1794_v36 = vpop.permute.xlu0 %1793  ;;  %v1744_v35 = vpop.permute.xlu1 %1743 }
 0xb9b   : > { %v1746_v45 = vsel %vm739_vm12, %v1742_v58, %v1744_v35  ;;  %v1799_v38 = vsel %vm804_vm14, %v1794_v36, %v1796_v43 }
 0xb9c   : > { %1879 = vmatprep.subr.bf16.mxu1 %v1746_v45  ;;  %v2266_v45 = vpack.c.bf16 %v6886_v28, %v2262_v5 }
 0xb9d   : > { %1880 = vmatpush1.bf16.msra.mxu1 %v1745_v13 }
 0xb9e   : > { %v1828_v54 = vpop.permute.xlu0 %1827  ;;  %v1772_v60 = vpop.permute.xlu1 %1771 }
 0xb9f   : > { %v1776_v22 = vsel %vm779_vm13, %v1772_v60, %v1774_v27  ;;  %v2263_v27 = vmul.f32 %v6073_v6, %v5555_v14 }
 0xba0   : > { %1881 = vmatprep.subr.bf16.mxu1 %v1776_v22 }
 0xba1   : > { %v2267_v35 = vpack.c.bf16 %v6876_v4, %v2263_v27 }
 0xba2   : > { %v2285_v47 = vpop.permute.xlu0 %2284  ;;  %v1770_v24 = vpop.permute.xlu1 %1769 }
 0xba3   : > { %v1775_v46 = vsel %vm779_vm13, %v1770_v24, %v1772_v60 }
 0xba4   : > { %1882 = vmatpush1.bf16.msra.mxu1 %v1775_v46 }
 0xba6   : > { %v2283_v12 = vpop.permute.xlu0 %2282  ;;  %v1798_v11 = vpop.permute.xlu1 %1797 }
 0xba7   : > { %v1800_v16 = vsel %vm804_vm14, %v1796_v43, %v1798_v11 }
 0xba8   : > { %1883 = vmatprep.subr.bf16.mxu1 %v1800_v16 }
 0xba9   : > { %1884 = vmatpush1.bf16.msra.mxu1 %v1799_v38 }
 0xbaa   : > { %v2317_v58 = vpop.permute.xlu0 %2316  ;;  %v1826_v23 = vpop.permute.xlu1 %1825 }
 0xbab   : > { %v1830_v32 = vsel %vm843_vm15, %v1826_v23, %v1828_v54  ;;  %v2288_v54 = vsel %vm594_vm8, %v2283_v12, %v2285_v47 }
 0xbac   : > { %1885 = vmatprep.subr.bf16.mxu1 %v1830_v32 }
 0xbae   : > { %v2345_v53 = vpop.permute.xlu0 %2344  ;;  %v1824_v17 = vpop.permute.xlu1 %1823 }
 0xbaf   : > { %v1829_v3 = vsel %vm843_vm15, %v1824_v17, %v1826_v23 }
 0xbb0   : > { %1886 = vmatpush1.bf16.msra.mxu1 %v1829_v3 }
 0xbb1   : > { %2526 = vmatprep.subr.bf16.mxu1 %v2267_v35 }
 0xbb2   : > { %v2343_v43 = vpop.permute.xlu0 %2342  ;;  %v2287_v36 = vpop.permute.xlu1 %2286 }
 0xbb3   : > { %1902 = vmatmul.mubr.bf16.vlgmr.msra.gmra.mrb[4].mxu1 %v6893_v55  ;;  %v2289_v6 = vsel %vm594_vm8, %v2285_v47, %v2287_v36 }
 0xbb4   : > { %2527 = vmatpush1.bf16.msra.mxu1 %v2266_v45  ;;  %5316 = vmatprep.mubr.msk.bf16.mxu1 %vm651_vm5, %v6544_v26  ;;  %v2348_v26 = vsel %vm674_vm10, %v2343_v43, %v2345_v53 }
 0xbb5   : > { %2528 = vmatprep.subr.bf16.mxu1 %v2289_v6 }
 0xbb6   : > { %v2371_v52 = vpop.permute.xlu0 %2370  ;;  %v2315_v13 = vpop.permute.xlu1 %2314 }
 0xbb7   : > { %v2319_v60 = vsel %vm634_vm9, %v2315_v13, %v2317_v58 }
 0xbb8   : > { %2529 = vmatpush1.bf16.msra.mxu1 %v2288_v54 }
 0xbb9   : > { %2530 = vmatprep.subr.bf16.mxu1 %v2319_v60 }
 0xbba   : > { %v2399_v22 = vpop.permute.xlu0 %2398  ;;  %v2313_v24 = vpop.permute.xlu1 %2312 }
 0xbbb   : > { %v2318_v46 = vsel %vm634_vm9, %v2313_v24, %v2315_v13 }
 0xbbc   : > { %2531 = vmatpush1.bf16.msra.mxu1 %v2318_v46 }
 0xbbe   : > { %v2397_v11 = vpop.permute.xlu0 %2396  ;;  %v2347_v16 = vpop.permute.xlu1 %2346 }
 0xbbf   : > { %v2349_v38 = vsel %vm674_vm10, %v2345_v53, %v2347_v16  ;;  %v2402_v35 = vsel %vm739_vm12, %v2397_v11, %v2399_v22  ;;  %v2921_v16 = vmul.f32 %v6194_v39, %v5555_v14 }
 0xbc0   : > { %2532 = vmatprep.subr.bf16.mxu1 %v2349_v38 }
 0xbc1   : > { %2533 = vmatpush1.bf16.msra.mxu1 %v2348_v26 }
 0xbc2   : > { %v2431_v23 = vpop.permute.xlu0 %2430  ;;  %v2369_v32 = vpop.permute.xlu1 %2368 }
 0xbc3   : > { %v2373_v47 = vsel %vm699_vm11, %v2369_v32, %v2371_v52 }
 0xbc4   : > { %2534 = vmatprep.subr.bf16.mxu1 %v2373_v47  ;;  %v2925_v47 = vpack.c.bf16 %v6876_v4, %v2921_v16 }
 0xbc6   : > { %v2453_v12 = vpop.permute.xlu0 %2452  ;;  %v2367_v58 = vpop.permute.xlu1 %2366 }
 0xbc7   : > { %v2372_v27 = vsel %vm699_vm11, %v2367_v58, %v2369_v32 }
 0xbc8   : > { %2535 = vmatpush1.bf16.msra.mxu1 %v2372_v27 }
 0xbca   : > { %v2451_v17 = vpop.permute.xlu0 %2450  ;;  %v2401_v5 = vpop.permute.xlu1 %2400 }
 0xbcb   : > { %v2403_v3 = vsel %vm739_vm12, %v2399_v22, %v2401_v5  ;;  %v2456_v24 = vsel %vm804_vm14, %v2451_v17, %v2453_v12 }
 0xbcc   : > { %2536 = vmatprep.subr.bf16.mxu1 %v2403_v3 }
 0xbcd   : > { %2537 = vmatpush1.bf16.msra.mxu1 %v2402_v35 }
 0xbce   : > { %v2485_v53 = vpop.permute.xlu0 %2484  ;;  %v2429_v43 = vpop.permute.xlu1 %2428 }
 0xbcf   : > { %v2433_v36 = vsel %vm779_vm13, %v2429_v43, %v2431_v23  ;;  %v2920_v23 = vmul.f32 %v7644_v57, %v5547_v8 }
 0xbd0   : > { %2538 = vmatprep.subr.bf16.mxu1 %v2433_v36 }
 0xbd1   : > { %v2924_v27 = vpack.c.bf16 %v6886_v28, %v2920_v23 }
 0xbd2   : > { %v2943_v45 = vpop.permute.xlu0 %2942  ;;  %v2427_v6 = vpop.permute.xlu1 %2426 }
 0xbd3   : > { %v2432_v52 = vsel %vm779_vm13, %v2427_v6, %v2429_v43 }
 0xbd4   : > { %2539 = vmatpush1.bf16.msra.mxu1 %v2432_v52 }
 0xbd6   : > { %v2941_v13 = vpop.permute.xlu0 %2940  ;;  %v2455_v54 = vpop.permute.xlu1 %2454 }
 0xbd7   : > { %v2457_v60 = vsel %vm804_vm14, %v2453_v12, %v2455_v54  ;;  %v2946_v5 = vsel %vm594_vm8, %v2941_v13, %v2943_v45 }
 0xbd8   : > { %2540 = vmatprep.subr.bf16.mxu1 %v2457_v60 }
 0xbd9   : > { %2541 = vmatpush1.bf16.msra.mxu1 %v2456_v24 }
 0xbda   : > { %v2975_v22 = vpop.permute.xlu0 %2974  ;;  %v2483_v46 = vpop.permute.xlu1 %2482 }
 0xbdb   : > { %v2487_v11 = vsel %vm843_vm15, %v2483_v46, %v2485_v53 }
 0xbdc   : > { %2542 = vmatprep.subr.bf16.mxu1 %v2487_v11 }
 0xbde   : > { %v3003_v38 = vpop.permute.xlu0 %3002  ;;  %v2481_v26 = vpop.permute.xlu1 %2480 }
 0xbdf   : > { %v2486_v32 = vsel %vm843_vm15, %v2481_v26, %v2483_v46 }
 0xbe0   : > { %2543 = vmatpush1.bf16.msra.mxu1 %v2486_v32 }
 0xbe1   : > { %3184 = vmatprep.subr.bf16.mxu1 %v2925_v47 }
 0xbe2   : > { %v3001_v12 = vpop.permute.xlu0 %3000  ;;  %v2945_v58 = vpop.permute.xlu1 %2944 }
 0xbe3   : > { %2559 = vmatmul.mubr.bf16.vlgmr.msra.gmra.mrb[8].mxu1 %v6893_v55  ;;  %v2947_v39 = vsel %vm594_vm8, %v2943_v45, %v2945_v58  ;;  %v3006_v52 = vsel %vm674_vm10, %v3001_v12, %v3003_v38 }
 0xbe4   : > { %3185 = vmatpush1.bf16.msra.mxu1 %v2924_v27 }
 0xbe5   : > { %3186 = vmatprep.subr.bf16.mxu1 %v2947_v39 }
 0xbe6   : > { %v2973_v17 = vpop.permute.xlu1 %2972  ;;  %v3029_v3 = vpop.permute.xlu0 %3028 }
 0xbe7   : > { %v2977_v35 = vsel %vm634_vm9, %v2973_v17, %v2975_v22 }
 0xbe8   : > { %3187 = vmatpush1.bf16.msra.mxu1 %v2946_v5  ;;  %v7007_v5 = vld [vmem:[%s7635_s9] sm:$0xff] }
 0xbe9   : > { %3188 = vmatprep.subr.bf16.mxu1 %v2977_v35 }
 0xbea   : > { %v2971_v53 = vpop.permute.xlu1 %2970  ;;  %v3057_v36 = vpop.permute.xlu0 %3056 }
 0xbeb   : > { %v2976_v43 = vsel %vm634_vm9, %v2971_v53, %v2973_v17  ;;  %v7012_v53 = vcombine.high %v7007_v5, %v7007_v5 }
 0xbec   : > { %3189 = vmatpush1.bf16.msra.mxu1 %v2976_v43 }
 0xbed   : > { %5321 = vmatprep.mubr.msk.bf16.mxu1 %vm651_vm5, %v7012_v53 }
 0xbee   : > { %v3005_v6 = vpop.permute.xlu1 %3004  ;;  %v3055_v60 = vpop.permute.xlu0 %3054 }
 0xbef   : > { %v3007_v55 = vsel %vm674_vm10, %v3003_v38, %v3005_v6  ;;  %v3060_v16 = vsel %vm739_vm12, %v3055_v60, %v3057_v36  ;;  %v3128_v60 = vmul.f32 %v6191_v59, %v5722_v19 }
 0xbf0   : > { %3190 = vmatprep.subr.bf16.mxu1 %v3007_v55 }
 0xbf1   : > { %3191 = vmatpush1.bf16.msra.mxu1 %v3006_v52  ;;  %v3126_v52 = vmul.f32 %v7644_v57, %v5726_v31 }
 0xbf2   : > { %v3027_v54 = vpop.permute.xlu1 %3026  ;;  %v3089_v22 = vpop.permute.xlu0 %3088 }
 0xbf3   : > { %v3031_v45 = vsel %vm699_vm11, %v3027_v54, %v3029_v3 }
 0xbf4   : > { %3192 = vmatprep.subr.bf16.mxu1 %v3031_v45  ;;  %v7022_v45 = vld [vmem:[#allocation2 + $0x28] sm:$0xff] }
 0xbf5   : > { %v3593_v59 = vpack.c.bf16 %v7022_v45, %v6383_v42 }
 0xbf6   : > { %v3025_v13 = vpop.permute.xlu1 %3024  ;;  %v3111_v26 = vpop.permute.xlu0 %3110 }
 0xbf7   : > { %v3030_v24 = vsel %vm699_vm11, %v3025_v13, %v3027_v54  ;;  %v3132_v13 = vpack.c.bf16 %v6825_v2, %v3126_v52  ;;  %v3729_v52 = vmul.f32 %v6380_v1, %v5682_v63 }
 0xbf8   : > { %3193 = vmatpush1.bf16.msra.mxu1 %v3030_v24  ;;  %v3616_v24 = vmul.f32 %v6386_v9, %v5633_v44 }
 0xbfa   : > { %v3059_v46 = vpop.permute.xlu1 %3058  ;;  %v3109_v12 = vpop.permute.xlu0 %3108 }
 0xbfb   : > { %v3061_v11 = vsel %vm739_vm12, %v3057_v36, %v3059_v46  ;;  %v3114_v39 = vsel %vm804_vm14, %v3109_v12, %v3111_v26  ;;  %v3622_v46 = vpack.c.bf16 %v6703_v33, %v3616_v24  ;;  %v3647_v33 = vmul.f32 %v6383_v42, %v5615_v40 }
 0xbfc   : > { %3194 = vmatprep.subr.bf16.mxu1 %v3061_v11  ;;  %v3615_v11 = vmul.f32 %v6380_v1, %v5567_v21  ;;  %v7063_v12 = vmul.f32 %v7022_v45, %v5615_v40  ;;  %v3783_v24 = vmul.f32 %v6380_v1, %v5726_v31 }
 0xbfd   : > { %3195 = vmatpush1.bf16.msra.mxu1 %v3060_v16  ;;  %v3591_v16 = vpack.c.bf16 %v6674_v30, %v6380_v1 }
 0xbfe   : > { %v3087_v38 = vpop.permute.xlu1 %3086 }
 0xbff   : > { %v3091_v23 = vsel %vm779_vm13, %v3087_v38, %v3089_v22  ;;  %v3592_v22 = vpack.c.bf16 %v6674_v30, %v6386_v9 }
 0xc00   : > { %3196 = vmatprep.subr.bf16.mxu1 %v3091_v23  ;;  %v3621_v23 = vpack.c.bf16 %v6722_v48, %v3615_v11 }
 0xc02   : > { %v3085_v32 = vpop.permute.xlu1 %3084 }
 0xc03   : > { %v3090_v47 = vsel %vm779_vm13, %v3085_v32, %v3087_v38  ;;  %v3617_v38 = vmul.f32 %v6383_v42, %v5560_v18 }
 0xc04   : > { %3197 = vmatpush1.bf16.msra.mxu1 %v3090_v47  ;;  %v3646_v47 = vmul.f32 %v6386_v9, %v5664_v56 }
 0xc06   : > { %v3113_v58 = vpop.permute.xlu1 %3112 }
 0xc07   : > { %v3115_v27 = vsel %vm804_vm14, %v3111_v26, %v3113_v58  ;;  %v7052_v26 = vmul.f32 %v7022_v45, %v5560_v18  ;;  %v3653_v58 = vpack.c.bf16 %v7063_v12, %v3647_v33  ;;  %v3577_v33 = vmul.f32 %v6380_v1, %v5547_v8 }
 0xc08   : > { %3198 = vmatprep.subr.bf16.mxu1 %v3115_v27  ;;  %v3652_v27 = vpack.c.bf16 %v6727_v37, %v3646_v47  ;;  %v7082_v37 = vmul.f32 %v7022_v45, %v5652_v51 }
 0xc09   : > { %3199 = vmatpush1.bf16.msra.mxu1 %v3114_v39  ;;  %v3623_v32 = vpack.c.bf16 %v7052_v26, %v3617_v38  ;;  %v3645_v39 = vmul.f32 %v6380_v1, %v5565_v20 }
 0xc16   : > { %v4208_v17 = vpop.f32.mrb[20].mxu0 }
 0xc17   : > { %v4209_v3 = vadd.f32 %v4208_v17, %v6943_v49  ;;  %v4210_v35 = vpop.f32.mrb[21].mxu0  ;;  %v3651_v17 = vpack.c.bf16 %v6740_v29, %v3645_v39 }
 0xc18   : > { %v4211_v43 = vadd.f32 %v4210_v35, %v6943_v49  ;;  %v4212_v36 = vpop.f32.mrb[22].mxu0  ;;  %v7027_v49 = vmul.f32 %v7022_v45, %v5722_v19  ;;  %v3700_v35 = vmul.f32 %v6386_v9, %v5706_v10 }
 0xc19   : > { %v4215_v6 = vmax.f32 %v4209_v3, 0.0  ;;  %v4213_v55 = vpop.f32.mrb[23].mxu0  ;;  %v3701_v3 = vmul.f32 %v6383_v42, %v5652_v51 }
 0xc1a   : > { %v4216_v54 = vmax.f32 %v4211_v43, 0.0  ;;  %v3134_v57 = vpack.c.bf16 %v7027_v49, %v3128_v60  ;;  %v3730_v43 = vmul.f32 %v6386_v9, %v5702_v7  ;;  %v3706_v36 = vpack.c.bf16 %v6758_v0, %v3700_v35 }
 0xc1b   : > { %4219 = vrot.lane.b32.xlu1 %v4215_v6, %s5423_s30  ;;  %v3707_v29 = vpack.c.bf16 %v7082_v37, %v3701_v3  ;;  %v3699_v6 = vmul.f32 %v6380_v1, %v5650_v50  ;;  %v3731_v60 = vmul.f32 %v6383_v42, %v5680_v62  ;;  %v7103_v0 = vmul.f32 %v7022_v45, %v5680_v62 }
 0xc1c   : > { %4221 = vrot.lane.b32.xlu0 %v4216_v54, %s5423_s30  ;;  %v3736_v55 = vpack.c.bf16 %v6784_v25, %v3730_v43 }
 0xc1d   : > { %v3705_v54 = vpack.c.bf16 %v6771_v61, %v3699_v6  ;;  %v3737_v25 = vpack.c.bf16 %v7103_v0, %v3731_v60  ;;  %v3784_v61 = vmul.f32 %v6386_v9, %v5733_v34 }
 0xc1f   : > { %3138 = vrot.lane.b32.xlu1 %v3132_v13, %s5435_s20  ;;  %v3735_v13 = vpack.c.bf16 %v6795_v41, %v3729_v52  ;;  %v3785_v41 = vmul.f32 %v6383_v42, %v5722_v19  ;;  %v3578_v42 = vmul.f32 %v6386_v9, %v5555_v14  ;;  %v7168_v52 = vld [vmem:[#allocation2 + $0x18] sm:$0xff] }
 0xc20   : > { %3142 = vrot.lane.b32.xlu0 %v3134_v57, %s5435_s20  ;;  %v3790_v57 = vpack.c.bf16 %v6813_v15, %v3784_v61 }
 0xc21   : > { %v3791_v11 = vpack.c.bf16 %v7027_v49, %v3785_v41  ;;  %v3582_v47 = vpack.c.bf16 %v6876_v4, %v3578_v42  ;;  %v3581_v4 = vpack.c.bf16 %v6886_v28, %v3577_v33  ;;  %v7199_v42 = vmul.f32 %v7168_v52, %v5633_v44 }
 0xc23   : > { %3601 = vrot.lane.b32.xlu1 %v3593_v59, %s5427_s21 }
 0xc24   : > { %3599 = vrot.lane.b32.xlu0 %v3592_v22, %s5427_s21 }
 0xc27   : > { %3629 = vrot.lane.b32.xlu1 %v3622_v46, %s5428_s22  ;;  %v3789_v46 = vpack.c.bf16 %v6825_v2, %v3783_v24 }
 0xc28   : > { %3597 = vrot.lane.b32.xlu0 %v3591_v16, %s5427_s21 }
 0xc2b   : > { %3627 = vrot.lane.b32.xlu1 %v3621_v23, %s5428_s22 }
 0xc2c   : > { %3631 = vrot.lane.b32.xlu0 %v3623_v32, %s5428_s22 }
 0xc2f   : > { %3661 = vrot.lane.b32.xlu1 %v3653_v58, %s5429_s23  ;;  %v7136_v58 = vcombine.low %v7007_v5, %v7007_v5 }
 0xc30   : > { %3659 = vrot.lane.b32.xlu0 %v3652_v27, %s5429_s23 }
 0xc33   : > { %3683 = vrot.lane.b32.xlu1 %v3592_v22, %s5430_s25 }
 0xc34   : > { %3657 = vrot.lane.b32.xlu0 %v3651_v17, %s5429_s23 }
 0xc37   : > { %3681 = vrot.lane.b32.xlu1 %v3591_v16, %s5430_s25 }
 0xc38   : > { %3685 = vrot.lane.b32.xlu0 %v3593_v59, %s5430_s25 }
 0xc3b   : > { %3715 = vrot.lane.b32.xlu1 %v3707_v29, %s5431_s26 }
 0xc3c   : > { %3713 = vrot.lane.b32.xlu0 %v3706_v36, %s5431_s26 }
 0xc3f   : > { %3743 = vrot.lane.b32.xlu1 %v3736_v55, %s5432_s28 }
 0xc40   : > { %3711 = vrot.lane.b32.xlu0 %v3705_v54, %s5431_s26 }
 0xc43   : > { %3741 = vrot.lane.b32.xlu1 %v3735_v13, %s5432_s28 }
 0xc44   : > { %3745 = vrot.lane.b32.xlu0 %v3737_v25, %s5432_s28 }
 0xc47   : > { %3769 = vrot.lane.b32.xlu1 %v3593_v59, %s5433_s17  ;;  %v3141_v59 = vpop.permute.xlu1 %3140 }
 0xc48   : > { %3767 = vrot.lane.b32.xlu0 %v3592_v22, %s5433_s17 }
 0xc4b   : > { %3797 = vrot.lane.b32.xlu1 %v3790_v57, %s5435_s20  ;;  %v7184_v57 = vmul.f32 %v7168_v52, %v5565_v20 }
 0xc4c   : > { %3765 = vrot.lane.b32.xlu0 %v3591_v16, %s5433_s17 }
 0xc4f   : > { %3795 = vrot.lane.b32.xlu1 %v3789_v46, %s5435_s20 }
 0xc50   : > { %3799 = vrot.lane.b32.xlu0 %v3791_v11, %s5435_s20 }
 0xc8d   : > { %v4220_v15 = vpop.permute.xlu1 %4219 }
 0xc8e   : > { %4227 = vst.msk [vmem:[#allocation2] sm:$0xf] %vm539_vm2, %v4220_v15  ;;  %v4222_v22 = vpop.permute.xlu0 %4221 }
 0xc8f   : > { %v4223_v38 = vsel %vm534_vm1, %v4220_v15, %v4222_v22  ;;  %4229 = vst.msk [vmem:[#allocation2 + $0x10] sm:$0xf] %vm542_vm3, %v4222_v22 }
 0xc90   : > { %4228 = vst [vmem:[#allocation2 + $0x8] sm:$0xf] %v4223_v38 }
 0xc91   : > { %v3139_v2 = vpop.permute.xlu1 %3138 }
 0xc92   : > { %v3143_v16 = vpop.permute.xlu0 %3142  ;;  %v3144_v32 = vsel %vm843_vm15, %v3139_v2, %v3141_v59 }
 0xc93   : > { %v3145_v23 = vsel %vm843_vm15, %v3141_v59, %v3143_v16 }
 0xc94   : > { %3200 = vmatprep.subr.bf16.mxu1 %v3145_v23 }
 0xc95   : > { %3201 = vmatpush1.bf16.msra.mxu1 %v3144_v32  ;;  %v3602_v27 = vpop.permute.xlu1 %3601  ;;  %v7138_v39 = vld [vmem:[#allocation2] sm:$0xff]  ;;  %v7209_v32 = vmul.f32 %v7168_v52, %v5650_v50 }
 0xc96   : > { %v3600_v9 = vpop.permute.xlu0 %3599  ;;  %3841 = vmatprep.subr.bf16.mxu1 %v3582_v47  ;;  %v7142_v17 = vpack.c.bf16 %v6674_v30, %v7138_v39  ;;  %v7144_v1 = vld [vmem:[#allocation2 + $0x10] sm:$0xff]  ;;  %v4272_v5 = vmul.f32 %v7138_v39, %v5567_v21  ;;  %v4302_v60 = vmul.f32 %v7138_v39, %v5565_v20  ;;  %v4356_v23 = vmul.f32 %v7138_v39, %v5650_v50 }
 0xc97   : > { %v7148_v3 = vpack.c.bf16 %v7022_v45, %v7144_v1  ;;  %v3604_v35 = vsel %vm594_vm8, %v3600_v9, %v3602_v27  ;;  %v7161_v36 = vld [vmem:[#allocation2 + $0x8] sm:$0xff]  ;;  %v4304_v25 = vmul.f32 %v7144_v1, %v5615_v40  ;;  %v4274_v11 = vmul.f32 %v7144_v1, %v5560_v18 }
 0xc98   : > { %4254 = vrot.lane.b32.xlu0 %v7142_v17, %s5427_s21  ;;  %3217 = vmatmul.mubr.bf16.vlgmr.msra.gmra.mrb[12].mxu1 %v7136_v58  ;;  %v4278_v28 = vpack.c.bf16 %v6722_v48, %v4272_v5  ;;  %v7172_v54 = vpack.c.bf16 %v7168_v52, %v7161_v36  ;;  %v4308_v46 = vpack.c.bf16 %v7184_v57, %v4302_v60 }
 0xc99   : > { %4258 = vrot.lane.b32.xlu1 %v7148_v3, %s5427_s21  ;;  %3842 = vmatpush1.bf16.msra.mxu1 %v3581_v4  ;;  %v3630_v30 = vpop.permute.xlu1 %3629  ;;  %v4310_v15 = vpack.c.bf16 %v7063_v12, %v4304_v25  ;;  %v4273_v22 = vmul.f32 %v7161_v36, %v5633_v44  ;;  %v4280_v16 = vpack.c.bf16 %v7052_v26, %v4274_v11 }
 0xc9a   : > { %v3598_v29 = vpop.permute.xlu0 %3597  ;;  %3843 = vmatprep.subr.bf16.mxu1 %v3604_v35  ;;  %5327 = vmatprep.mubr.msk.bf16.mxu1 %vm651_vm5, %v7012_v53  ;;  %v4362_v26 = vpack.c.bf16 %v7209_v32, %v4356_v23  ;;  %v4358_v5 = vmul.f32 %v7144_v1, %v5652_v51  ;;  %v7222_v35 = vmul.f32 %v7168_v52, %v5664_v56 }
 0xc9b   : > { %v3603_v43 = vsel %vm594_vm8, %v3598_v29, %v3600_v9  ;;  %v4279_v33 = vpack.c.bf16 %v7199_v42, %v4273_v22  ;;  %v4303_v9 = vmul.f32 %v7161_v36, %v5664_v56  ;;  %v7254_v22 = vmul.f32 %v7168_v52, %v5702_v7 }
 0xc9c   : > { %4342 = vrot.lane.b32.xlu0 %v7148_v3, %s5430_s25  ;;  %v4364_v60 = vpack.c.bf16 %v7082_v37, %v4358_v5  ;;  %v7273_v5 = vmul.f32 %v7168_v52, %v5733_v34 }
 0xc9d   : > { %4284 = vrot.lane.b32.xlu1 %v4278_v28, %s5428_s22  ;;  %3844 = vmatpush1.bf16.msra.mxu1 %v3603_v43  ;;  %v3628_v6 = vpop.permute.xlu1 %3627  ;;  %v4309_v28 = vpack.c.bf16 %v7222_v35, %v4303_v9  ;;  %v7267_v9 = vpop.f32.mrb[0].mxu1 }
 0xc9e   : > { %v3632_v55 = vpop.permute.xlu0 %3631  ;;  %v3633_v61 = vsel %vm634_vm9, %v3628_v6, %v3630_v30  ;;  %v4388_v6 = vmul.f32 %v7144_v1, %v5680_v62 }
 0xc9f   : > { %v3634_v13 = vsel %vm634_vm9, %v3630_v30, %v3632_v55 }
 0xca0   : > { %4256 = vrot.lane.b32.xlu0 %v7172_v54, %s5427_s21  ;;  %3845 = vmatprep.subr.bf16.mxu1 %v3634_v13  ;;  %v4386_v13 = vmul.f32 %v7138_v39, %v5682_v63 }
 0xca1   : > { %4340 = vrot.lane.b32.xlu1 %v7172_v54, %s5430_s25  ;;  %3846 = vmatpush1.bf16.msra.mxu1 %v3633_v61  ;;  %v3662_v24 = vpop.permute.xlu1 %3661  ;;  %v7237_v61 = vmul.f32 %v7168_v52, %v5682_v63 }
 0xca2   : > { %v3660_v41 = vpop.permute.xlu0 %3659 }
 0xca3   : > { %v3664_v59 = vsel %vm674_vm10, %v3660_v41, %v3662_v24  ;;  %v4392_v11 = vpack.c.bf16 %v7237_v61, %v4386_v13  ;;  %v7289_v13 = vmul.f32 %v7168_v52, %v5555_v14 }
 0xca4   : > { %4314 = vrot.lane.b32.xlu0 %v4308_v46, %s5429_s23  ;;  %3847 = vmatprep.subr.bf16.mxu1 %v3664_v59  ;;  %v4357_v46 = vmul.f32 %v7161_v36, %v5706_v10  ;;  %v4387_v59 = vmul.f32 %v7161_v36, %v5702_v7 }
 0xca5   : > { %4318 = vrot.lane.b32.xlu1 %v4310_v15, %s5429_s23  ;;  %v3684_v38 = vpop.permute.xlu1 %3683  ;;  %v7249_v15 = vmul.f32 %v7168_v52, %v5706_v10 }
 0xca6   : > { %v3658_v2 = vpop.permute.xlu0 %3657  ;;  %v4393_v23 = vpack.c.bf16 %v7254_v22, %v4387_v59  ;;  %v4234_v59 = vmul.f32 %v7138_v39, %v5547_v8 }
 0xca7   : > { %v3663_v12 = vsel %vm674_vm10, %v3658_v2, %v3660_v41  ;;  %v4394_v41 = vpack.c.bf16 %v7103_v0, %v4388_v6  ;;  %v4363_v2 = vpack.c.bf16 %v7249_v15, %v4357_v46 }
 0xca8   : > { %4288 = vrot.lane.b32.xlu0 %v4280_v16, %s5428_s22  ;;  %3848 = vmatpush1.bf16.msra.mxu1 %v3663_v12 }
 0xca9   : > { %4286 = vrot.lane.b32.xlu1 %v4279_v33, %s5428_s22  ;;  %v3682_v47 = vpop.permute.xlu1 %3681 }
 0xcaa   : > { %v3686_v27 = vpop.permute.xlu0 %3685  ;;  %v3687_v30 = vsel %vm699_vm11, %v3682_v47, %v3684_v38 }
 0xcab   : > { %v3688_v4 = vsel %vm699_vm11, %v3684_v38, %v3686_v27 }
 0xcac   : > { %4368 = vrot.lane.b32.xlu0 %v4362_v26, %s5431_s26  ;;  %3849 = vmatprep.subr.bf16.mxu1 %v3688_v4  ;;  %v4441_v26 = vmul.f32 %v7161_v36, %v5733_v34 }
 0xcad   : > { %4338 = vrot.lane.b32.xlu1 %v7142_v17, %s5430_s25  ;;  %3850 = vmatpush1.bf16.msra.mxu1 %v3687_v30  ;;  %v3716_v29 = vpop.permute.xlu1 %3715  ;;  %v7275_v30 = vpop.f32.mrb[1].mxu1 }
 0xcae   : > { %v3714_v43 = vpop.permute.xlu0 %3713  ;;  %v4447_v6 = vpack.c.bf16 %v7273_v5, %v4441_v26 }
 0xcaf   : > { %v3718_v55 = vsel %vm739_vm12, %v3714_v43, %v3716_v29 }
 0xcb0   : > { %4316 = vrot.lane.b32.xlu0 %v4309_v28, %s5429_s23  ;;  %3851 = vmatprep.subr.bf16.mxu1 %v3718_v55  ;;  %v1250_v28 = vpop.f32.mrb[2].mxu1  ;;  %v4440_v55 = vmul.f32 %v7138_v39, %v5726_v31 }
 0xcb1   : > { %4372 = vrot.lane.b32.xlu1 %v4364_v60, %s5431_s26  ;;  %v3744_v25 = vpop.permute.xlu1 %3743  ;;  %v4235_v60 = vmul.f32 %v7161_v36, %v5555_v14 }
 0xcb2   : > { %v3712_v24 = vpop.permute.xlu0 %3711 }
 0xcb3   : > { %v3717_v37 = vsel %vm739_vm12, %v3712_v24, %v3714_v43  ;;  %v4442_v43 = vmul.f32 %v7144_v1, %v5722_v19  ;;  %v7296_v24 = vmul.f32 %v7168_v52, %v5726_v31 }
 0xcb4   : > { %4402 = vrot.lane.b32.xlu0 %v4394_v41, %s5432_s28  ;;  %3852 = vmatpush1.bf16.msra.mxu1 %v3717_v37 }
 0xcb5   : > { %4398 = vrot.lane.b32.xlu1 %v4392_v11, %s5432_s28  ;;  %v3742_v0 = vpop.permute.xlu1 %3741  ;;  %v4448_v46 = vpack.c.bf16 %v7027_v49, %v4442_v43  ;;  %v4446_v11 = vpack.c.bf16 %v7296_v24, %v4440_v55  ;;  %v4239_v49 = vpack.c.bf16 %v7289_v13, %v4235_v60 }
 0xcb6   : > { %v3746_v38 = vpop.permute.xlu0 %3745  ;;  %v3747_v12 = vsel %vm779_vm13, %v3742_v0, %v3744_v25  ;;  %v7307_v0 = vmul.f32 %v7168_v52, %v5547_v8 }
 0xcb7   : > { %v3748_v16 = vsel %vm779_vm13, %v3744_v25, %v3746_v38 }
 0xcb8   : > { %4370 = vrot.lane.b32.xlu0 %v4363_v2, %s5431_s26  ;;  %3853 = vmatprep.subr.bf16.mxu1 %v3748_v16  ;;  %v1854_v16 = vld [vmem:[%s7632_s6] sm:$0xff]  ;;  %v4238_v39 = vpack.c.bf16 %v7307_v0, %v4234_v59 }
 0xcb9   : > { %4400 = vrot.lane.b32.xlu1 %v4393_v23, %s5432_s28  ;;  %3854 = vmatpush1.bf16.msra.mxu1 %v3747_v12  ;;  %v3770_v33 = vpop.permute.xlu1 %3769  ;;  %v3169_v23 = vld [vmem:[%s7636_s10] sm:$0xff] }
 0xcba   : > { %v3768_v47 = vpop.permute.xlu0 %3767 }
 0xcbb   : > { %v3772_v27 = vsel %vm804_vm14, %v3768_v47, %v3770_v33 }
 0xcbc   : > { %4424 = vrot.lane.b32.xlu0 %v7172_v54, %s5433_s17  ;;  %3855 = vmatprep.subr.bf16.mxu1 %v3772_v27 }
 0xcbd   : > { %4426 = vrot.lane.b32.xlu1 %v7148_v3, %s5433_s17  ;;  %v3798_v4 = vpop.permute.xlu1 %3797  ;;  %v1251_v3 = vpop.f32.mrb[3].mxu1 }
 0xcbe   : > { %v3766_v29 = vpop.permute.xlu0 %3765  ;;  %v7291_v1 = vpop.f32.mrb[4].mxu1 }
 0xcbf   : > { %v3771_v54 = vsel %vm804_vm14, %v3766_v29, %v3768_v47  ;;  %v7298_v41 = vpop.f32.mrb[5].mxu1 }
 0xcc0   : > { %4422 = vrot.lane.b32.xlu0 %v7142_v17, %s5433_s17  ;;  %3856 = vmatpush1.bf16.msra.mxu1 %v3771_v54  ;;  %v1907_v37 = vpop.f32.mrb[6].mxu1 }
 0xcc1   : > { %4454 = vrot.lane.b32.xlu1 %v4447_v6, %s5435_s20  ;;  %v3796_v25 = vpop.permute.xlu1 %3795  ;;  %v1908_v38 = vpop.f32.mrb[7].mxu1 }
 0xcc2   : > { %v3800_v17 = vpop.permute.xlu0 %3799  ;;  %v3801_v2 = vsel %vm843_vm15, %v3796_v25, %v3798_v4  ;;  %v7323_v12 = vpop.f32.mrb[8].mxu1 }
 0xcc3   : > { %v3802_v36 = vsel %vm843_vm15, %v3798_v4, %v3800_v17  ;;  %v7325_v33 = vpop.f32.mrb[9].mxu1 }
 0xcc4   : > { %4456 = vrot.lane.b32.xlu0 %v4448_v46, %s5435_s20  ;;  %3857 = vmatprep.subr.bf16.mxu1 %v3802_v36  ;;  %v2564_v47 = vpop.f32.mrb[10].mxu1 }
 0xcc5   : > { %4452 = vrot.lane.b32.xlu1 %v4446_v11, %s5435_s20  ;;  %3858 = vmatpush1.bf16.msra.mxu1 %v3801_v2  ;;  %v2565_v27 = vpop.f32.mrb[11].mxu1 }
 0xcc6   : > { %4498 = vmatprep.subr.bf16.mxu1 %v4239_v49 }
 0xcc8   : > { %3874 = vmatmul.mubr.bf16.vlgmr.msra.gmra.mrb[16].mxu1 %v7136_v58  ;;  %1200 = vperm.xlu0 %5399, %v1854_v16  }
 0xcc9   : > { %1857 = vperm.xlu1 %5373, %v1854_v16   ;;  %4499 = vmatpush1.bf16.msra.mxu1 %v4238_v39 }
 0xcca   : > { %5333 = vmatprep.mubr.msk.bf16.mxu1 %vm651_vm5, %v7012_v53 }
 0xccc   : > { %3829 = vperm.xlu0 %5399, %v3169_v23  }
 0xccd   : > { %3172 = vperm.xlu1 %5373, %v3169_v23  }
 0xcd0   : > { %4486 = vperm.xlu0 %5399, %v3169_v23  }
 0xcd1   : > { %2514 = vperm.xlu1 %5373, %v1854_v16  }
 0xd0a   : > { %v4255_v26 = vpop.permute.xlu0 %4254 }
 0xd0b   : > { %v4259_v4 = vpop.permute.xlu1 %4258 }
 0xd0e   : > { %v4343_v29 = vpop.permute.xlu0 %4342 }
 0xd0f   : > { %v4285_v43 = vpop.permute.xlu1 %4284 }
 0xd12   : > { %v4257_v28 = vpop.permute.xlu0 %4256 }
 0xd13   : > { %v4260_v54 = vsel %vm594_vm8, %v4255_v26, %v4257_v28  ;;  %v4341_v6 = vpop.permute.xlu1 %4340  ;;  %v4261_v53 = vsel %vm594_vm8, %v4257_v28, %v4259_v4 }
 0xd14   : > { %4500 = vmatprep.subr.bf16.mxu1 %v4261_v53  ;;  %v4345_v49 = vsel %vm699_vm11, %v4341_v6, %v4343_v29 }
 0xd15   : > { %4501 = vmatpush1.bf16.msra.mxu1 %v4260_v54 }
 0xd16   : > { %v4315_v55 = vpop.permute.xlu0 %4314 }
 0xd17   : > { %v4319_v3 = vpop.permute.xlu1 %4318 }
 0xd1a   : > { %v4289_v60 = vpop.permute.xlu0 %4288 }
 0xd1b   : > { %v4287_v25 = vpop.permute.xlu1 %4286 }
 0xd1c   : > { %v4290_v17 = vsel %vm634_vm9, %v4285_v43, %v4287_v25  ;;  %v4291_v46 = vsel %vm634_vm9, %v4287_v25, %v4289_v60 }
 0xd1d   : > { %4502 = vmatprep.subr.bf16.mxu1 %v4291_v46 }
 0xd1e   : > { %v4369_v37 = vpop.permute.xlu0 %4368  ;;  %4503 = vmatpush1.bf16.msra.mxu1 %v4290_v17 }
 0xd1f   : > { %v4339_v36 = vpop.permute.xlu1 %4338 }
 0xd20   : > { %v4344_v23 = vsel %vm699_vm11, %v4339_v36, %v4341_v6 }
 0xd22   : > { %v4317_v11 = vpop.permute.xlu0 %4316 }
 0xd23   : > { %v4320_v59 = vsel %vm674_vm10, %v4315_v55, %v4317_v11  ;;  %v4373_v38 = vpop.permute.xlu1 %4372  ;;  %v4321_v2 = vsel %vm674_vm10, %v4317_v11, %v4319_v3 }
 0xd24   : > { %4504 = vmatprep.subr.bf16.mxu1 %v4321_v2 }
 0xd25   : > { %4505 = vmatpush1.bf16.msra.mxu1 %v4320_v59 }
 0xd26   : > { %v4403_v16 = vpop.permute.xlu0 %4402  ;;  %4506 = vmatprep.subr.bf16.mxu1 %v4345_v49 }
 0xd27   : > { %v4399_v39 = vpop.permute.xlu1 %4398 }
 0xd29   : > { %4507 = vmatpush1.bf16.msra.mxu1 %v4344_v23 }
 0xd2a   : > { %v4371_v47 = vpop.permute.xlu0 %4370 }
 0xd2b   : > { %v4374_v27 = vsel %vm739_vm12, %v4369_v37, %v4371_v47  ;;  %v4401_v26 = vpop.permute.xlu1 %4400  ;;  %v4375_v4 = vsel %vm739_vm12, %v4371_v47, %v4373_v38 }
 0xd2c   : > { %4508 = vmatprep.subr.bf16.mxu1 %v4375_v4  ;;  %v4405_v43 = vsel %vm779_vm13, %v4401_v26, %v4403_v16  ;;  %v4404_v29 = vsel %vm779_vm13, %v4399_v39, %v4401_v26 }
 0xd2d   : > { %4509 = vmatpush1.bf16.msra.mxu1 %v4374_v27 }
 0xd2e   : > { %v4425_v28 = vpop.permute.xlu0 %4424  ;;  %4510 = vmatprep.subr.bf16.mxu1 %v4405_v43 }
 0xd2f   : > { %v4427_v54 = vpop.permute.xlu1 %4426 }
 0xd30   : > { %v4429_v53 = vsel %vm804_vm14, %v4425_v28, %v4427_v54 }
 0xd31   : > { %4511 = vmatpush1.bf16.msra.mxu1 %v4404_v29 }
 0xd32   : > { %v4423_v6 = vpop.permute.xlu0 %4422  ;;  %4512 = vmatprep.subr.bf16.mxu1 %v4429_v53 }
 0xd33   : > { %v4428_v55 = vsel %vm804_vm14, %v4423_v6, %v4425_v28  ;;  %v4455_v3 = vpop.permute.xlu1 %4454 }
 0xd35   : > { %4513 = vmatpush1.bf16.msra.mxu1 %v4428_v55 }
 0xd36   : > { %v4457_v60 = vpop.permute.xlu0 %4456 }
 0xd37   : > { %v4453_v25 = vpop.permute.xlu1 %4452  ;;  %v4459_v17 = vsel %vm843_vm15, %v4455_v3, %v4457_v60 }
 0xd38   : > { %v4458_v46 = vsel %vm843_vm15, %v4453_v25, %v4455_v3  ;;  %4514 = vmatprep.subr.bf16.mxu1 %v4459_v17 }
 0xd39   : > { %4515 = vmatpush1.bf16.msra.mxu1 %v4458_v46 }
 0xd3c   : > { %4531 = vmatmul.mubr.bf16.vlgmr.msra.gmra.mrb[20].mxu1 %v7136_v58 }
 0xd47   : > { %v1201_v37 = vpop.permute.xlu0 %1200 }
 0xd48   : > { %v1247_v36 = vadd.f32 %v7267_v9, %v1201_v37  ;;  %v1249_v11 = vadd.f32 %v7275_v30, %v1201_v37  ;;  %v1858_v59 = vpop.permute.xlu1 %1857 }
 0xd49   : > { %v1904_v38 = vadd.f32 %v7291_v1, %v1858_v59  ;;  %v1906_v2 = vadd.f32 %v7298_v41, %v1858_v59 }
 0xd4a   : > { %v1253_v49 = vmax.f32 %v1247_v36, 0.0  ;;  %v1254_v16 = vmax.f32 %v1249_v11, 0.0 }
 0xd4b   : > { %v1910_v39 = vmax.f32 %v1904_v38, 0.0  ;;  %v1911_v23 = vmax.f32 %v1906_v2, 0.0  ;;  %v3830_v6 = vpop.permute.xlu0 %3829 }
 0xd4c   : > { %v3173_v47 = vpop.permute.xlu1 %3172 }
 0xd4d   : > { %v1912_v27 = vadd.f32 %v1910_v39, %v1253_v49  ;;  %v1913_v26 = vadd.f32 %v1911_v23, %v1254_v16 }
 0xd4f   : > { %v4487_v49 = vpop.permute.xlu0 %4486 }
 0xd50   : > { %v2515_v4 = vpop.permute.xlu1 %2514 }
 0xd51   : > { %v2561_v58 = vadd.f32 %v7323_v12, %v2515_v4  ;;  %v2563_v43 = vadd.f32 %v7325_v33, %v2515_v4 }
 0xd53   : > { %v2567_v9 = vmax.f32 %v2561_v58, 0.0  ;;  %v2568_v28 = vmax.f32 %v2563_v43, 0.0 }
 0xd55   : > { %v2569_v30 = vadd.f32 %v2567_v9, %v1912_v27  ;;  %v2570_v54 = vadd.f32 %v2568_v28, %v1913_v26 }
 0xd57   : > { %v2571_v28 = vmul.f32 0.33333334, %v2569_v30 }
 0xd6b   : > { %v3218_v29 = vpop.f32.mrb[12].mxu1 }
 0xd6c   : > { %v3220_v1 = vpop.f32.mrb[13].mxu1  ;;  %v3219_v55 = vadd.f32 %v3218_v29, %v3173_v47 }
 0xd6d   : > { %v3222_v53 = vpop.f32.mrb[14].mxu1  ;;  %v3221_v3 = vadd.f32 %v3220_v1, %v3173_v47  ;;  %v2572_v1 = vmul.f32 0.33333334, %v2570_v54 }
 0xd6e   : > { %v3223_v41 = vpop.f32.mrb[15].mxu1  ;;  %v3225_v36 = vmax.f32 %v3219_v55, 0.0 }
 0xd6f   : > { %v3226_v33 = vmax.f32 %v3221_v3, 0.0 }
 0xd9b   : > { %v3875_v60 = vpop.f32.mrb[16].mxu1 }
 0xd9c   : > { %v3876_v25 = vadd.f32 %v3875_v60, %v3830_v6  ;;  %v3877_v17 = vpop.f32.mrb[17].mxu1 }
 0xd9d   : > { %v3878_v46 = vadd.f32 %v3877_v17, %v3830_v6  ;;  %v3879_v37 = vpop.f32.mrb[18].mxu1 }
 0xd9e   : > { %v3882_v12 = vmax.f32 %v3876_v25, 0.0  ;;  %v3880_v11 = vpop.f32.mrb[19].mxu1 }
 0xd9f   : > { %v3883_v59 = vmax.f32 %v3878_v46, 0.0 }
 0xda0   : > { %v3884_v38 = vadd.f32 %v3882_v12, %v3225_v36 }
 0xda1   : > { %v3885_v2 = vadd.f32 %v3883_v59, %v3226_v33 }
 0xe0f   : > { %v4532_v16 = vpop.f32.mrb[20].mxu1 }
 0xe10   : > { %v4533_v39 = vadd.f32 %v4532_v16, %v4487_v49  ;;  %v4534_v23 = vpop.f32.mrb[21].mxu1 }
 0xe11   : > { %v4535_v27 = vadd.f32 %v4534_v23, %v4487_v49  ;;  %v4536_v26 = vpop.f32.mrb[22].mxu1 }
 0xe12   : > { %v4539_v4 = vmax.f32 %v4533_v39, 0.0  ;;  %v4537_v47 = vpop.f32.mrb[23].mxu1 }
 0xe13   : > { %v4540_v58 = vmax.f32 %v4535_v27, 0.0 }
 0xe14   : > { %v4541_v43 = vadd.f32 %v4539_v4, %v3884_v38  ;;  %v4632_v38 = vld [vmem:[#allocation2 + $0x28] sm:$0xff] }
 0xe15   : > { %v4542_v9 = vadd.f32 %v4540_v58, %v3885_v2  ;;  %v4692_v47 = vmul.f32 %v4632_v38, %v5652_v51 }
 0xe16   : > { %v4543_v29 = vmul.f32 0.33333334, %v4541_v43 }
 0xe17   : > { %v4544_v53 = vmul.f32 0.33333334, %v4542_v9 }
 0xe18   : > { %v4545_v41 = vadd.f32 %v4543_v29, %v2571_v28 }
 0xe19   : > { %v4546_v6 = vadd.f32 %v4544_v53, %v2572_v1 }
 0xe1a   : > { %4549 = vrot.lane.b32.xlu1 %v4545_v41, %s5423_s30 }
 0xe1b   : > { %4551 = vrot.lane.b32.xlu0 %v4546_v6, %s5423_s30  ;;  %v5404_v6 = vld [vmem:[%s7637_s11 + $0x4] ss:$8 sps:$4 sm:$0xff]  }
 0xe1c   : > { %5336 = vmatprep.mubr.msk.bf16.mxu0 %vm651_vm5, %v5404_v6 }
 0xe8c   : > { %v4550_v55 = vpop.permute.xlu1 %4549 }
 0xe8d   : > { %v4552_v3 = vpop.permute.xlu0 %4551  ;;  %4558 = vst.msk [vmem:[#allocation2] sm:$0xff] %vm4557_vm0, %v4550_v55 }
 0xe8e   : > { %v4553_v60 = vsel %vm534_vm1, %v4550_v55, %v4552_v3  ;;  %4560 = vst.msk [vmem:[#allocation2 + $0x10] sm:$0xff] %vm534_vm1, %v4552_v3 }
 0xe8f   : > { %v4566_v30 = vmul.f32 %v4553_v60, %v5555_v14  ;;  %v4580_v33 = vpack.c.bf16 %v7168_v52, %v4553_v60  ;;  %v4604_v16 = vmul.f32 %v4553_v60, %v5633_v44  ;;  %v4634_v26 = vmul.f32 %v4553_v60, %v5664_v56 }
 0xe90   : > { %v4688_v29 = vmul.f32 %v4553_v60, %v5706_v10  ;;  %v4718_v53 = vmul.f32 %v4553_v60, %v5702_v7 }
 0xe91   : > { %v4570_v54 = vpack.c.bf16 %v7289_v13, %v4566_v30  ;;  %v4610_v27 = vpack.c.bf16 %v7199_v42, %v4604_v16  ;;  %v4640_v58 = vpack.c.bf16 %v7222_v35, %v4634_v26  ;;  %v4776_v30 = vmul.f32 %v4632_v38, %v5722_v19 }
 0xe92   : > { %v4694_v35 = vpack.c.bf16 %v7249_v15, %v4688_v29  ;;  %v4724_v41 = vpack.c.bf16 %v7254_v22, %v4718_v53 }
 0xe93   : > { %4839 = vmatprep.subr.bf16.mxu0 %v4570_v54 }
 0xe94   : > { %v7357_v25 = vld [vmem:[#allocation2] sm:$0xff] }
 0xe95   : > { %v7361_v17 = vpack.c.bf16 %v7168_v52, %v7357_v25  ;;  %v4575_v46 = vld [vmem:[#allocation2 + $0x10] sm:$0xff]  ;;  %v4565_v37 = vmul.f32 %v7357_v25, %v5547_v8  ;;  %v4603_v12 = vmul.f32 %v7357_v25, %v5567_v21  ;;  %v4608_v52 = vmul.f32 %v4632_v38, %v5560_v18 }
 0xe96   : > { %v4581_v36 = vpack.c.bf16 %v7022_v45, %v4575_v46  ;;  %v4633_v45 = vmul.f32 %v7357_v25, %v5565_v20  ;;  %v4635_v59 = vmul.f32 %v4575_v46, %v5615_v40  ;;  %v4605_v2 = vmul.f32 %v4575_v46, %v5560_v18 }
 0xe97   : > { %4585 = vrot.lane.b32.xlu1 %v7361_v17, %s5427_s21  ;;  %v4569_v13 = vpack.c.bf16 %v7307_v0, %v4565_v37  ;;  %v4609_v11 = vpack.c.bf16 %v6722_v48, %v4603_v12  ;;  %v4638_v0 = vmul.f32 %v4632_v38, %v5615_v40  ;;  %v4687_v23 = vmul.f32 %v7357_v25, %v5650_v50 }
 0xe98   : > { %4589 = vrot.lane.b32.xlu0 %v4581_v36, %s5427_s21  ;;  %v4639_v48 = vpack.c.bf16 %v7184_v57, %v4633_v45  ;;  %v4611_v39 = vpack.c.bf16 %v4608_v52, %v4605_v2  ;;  %v4689_v4 = vmul.f32 %v4575_v46, %v5652_v51  ;;  %v4719_v42 = vmul.f32 %v4575_v46, %v5680_v62 }
 0xe99   : > { %4840 = vmatpush1.bf16.msra.mxu0 %v4569_v13  ;;  %v4641_v49 = vpack.c.bf16 %v4638_v0, %v4635_v59  ;;  %v4693_v57 = vpack.c.bf16 %v7209_v32, %v4687_v23  ;;  %v4717_v9 = vmul.f32 %v7357_v25, %v5682_v63  ;;  %v4722_v32 = vmul.f32 %v4632_v38, %v5680_v62 }
 0xe9a   : > { %v4695_v43 = vpack.c.bf16 %v4692_v47, %v4689_v4  ;;  %v4749_v55 = vpack.c.bf16 %v4632_v38, %v4575_v46  ;;  %v4773_v15 = vmul.f32 %v4575_v46, %v5722_v19  ;;  %v4771_v3 = vmul.f32 %v7357_v25, %v5726_v31  ;;  %v4816_v25 = vld [vmem:[%s7638_s12 + $0x8] sm:$0xff] }
 0xe9b   : > { %4673 = vrot.lane.b32.xlu1 %v4581_v36, %s5430_s25  ;;  %v4725_v28 = vpack.c.bf16 %v4722_v32, %v4719_v42  ;;  %v4723_v1 = vpack.c.bf16 %v7237_v61, %v4717_v9  ;;  %v4772_v61 = vmul.f32 %v4553_v60, %v5733_v34 }
 0xe9c   : > { %4615 = vrot.lane.b32.xlu0 %v4609_v11, %s5428_s22  ;;  %v4779_v60 = vpack.c.bf16 %v4776_v30, %v4773_v15  ;;  %v4777_v54 = vpack.c.bf16 %v7296_v24, %v4771_v3 }
 0xe9d   : > { %v4778_v22 = vpack.c.bf16 %v7273_v5, %v4772_v61  ;;  %v4815_v5 = vld [vmem:[%s7638_s12] sm:$0xff] }
 0xe9f   : > { %4587 = vrot.lane.b32.xlu1 %v4580_v33, %s5427_s21 }
 0xea0   : > { %4671 = vrot.lane.b32.xlu0 %v4580_v33, %s5430_s25 }
 0xea3   : > { %4645 = vrot.lane.b32.xlu1 %v4639_v48, %s5429_s23 }
 0xea4   : > { %4649 = vrot.lane.b32.xlu0 %v4641_v49, %s5429_s23 }
 0xea7   : > { %4619 = vrot.lane.b32.xlu1 %v4611_v39, %s5428_s22 }
 0xea8   : > { %4617 = vrot.lane.b32.xlu0 %v4610_v27, %s5428_s22 }
 0xeab   : > { %4699 = vrot.lane.b32.xlu1 %v4693_v57, %s5431_s26 }
 0xeac   : > { %4669 = vrot.lane.b32.xlu0 %v7361_v17, %s5430_s25 }
 0xeaf   : > { %4647 = vrot.lane.b32.xlu1 %v4640_v58, %s5429_s23 }
 0xeb0   : > { %4703 = vrot.lane.b32.xlu0 %v4695_v43, %s5431_s26 }
 0xeb3   : > { %4733 = vrot.lane.b32.xlu1 %v4725_v28, %s5432_s28 }
 0xeb4   : > { %4729 = vrot.lane.b32.xlu0 %v4723_v1, %s5432_s28 }
 0xeb7   : > { %4701 = vrot.lane.b32.xlu1 %v4694_v35, %s5431_s26 }
 0xeb8   : > { %4731 = vrot.lane.b32.xlu0 %v4724_v41, %s5432_s28 }
 0xebb   : > { %4755 = vrot.lane.b32.xlu1 %v4580_v33, %s5433_s17 }
 0xebc   : > { %4757 = vrot.lane.b32.xlu0 %v4749_v55, %s5433_s17 }
 0xebf   : > { %4753 = vrot.lane.b32.xlu1 %v7361_v17, %s5433_s17 }
 0xec0   : > { %4785 = vrot.lane.b32.xlu0 %v4778_v22, %s5435_s20  ;;  %v5406_v22 = vld [vmem:[%s7637_s11] ss:$8 sps:$4 sm:$0xff]  }
 0xec3   : > { %4787 = vrot.lane.b32.xlu1 %v4779_v60, %s5435_s20 }
 0xec4   : > { %4783 = vrot.lane.b32.xlu0 %v4777_v54, %s5435_s20 }
 0xec7   : > { %4819 = vperm.xlu1 %5373, %v4815_v5  }
 0xec8   : > { %4824 = vperm.xlu0 %5399, %v4816_v25  }
 0xf09   : > { %v4586_v17 = vpop.permute.xlu1 %4585 }
 0xf0a   : > { %v4590_v46 = vpop.permute.xlu0 %4589 }
 0xf0d   : > { %v4674_v37 = vpop.permute.xlu1 %4673 }
 0xf0e   : > { %v4616_v36 = vpop.permute.xlu0 %4615 }
 0xf11   : > { %v4588_v12 = vpop.permute.xlu1 %4587 }
 0xf12   : > { %v4591_v24 = vsel %vm594_vm8, %v4586_v17, %v4588_v12  ;;  %v4672_v13 = vpop.permute.xlu0 %4671  ;;  %v4592_v11 = vsel %vm594_vm8, %v4588_v12, %v4590_v46 }
 0xf13   : > { %4841 = vmatprep.subr.bf16.mxu0 %v4592_v11  ;;  %v4676_v27 = vsel %vm699_vm11, %v4672_v13, %v4674_v37 }
 0xf14   : > { %4842 = vmatpush1.bf16.msra.mxu0 %v4591_v24 }
 0xf15   : > { %v4646_v33 = vpop.permute.xlu1 %4645 }
 0xf16   : > { %v4650_v45 = vpop.permute.xlu0 %4649 }
 0xf19   : > { %v4620_v59 = vpop.permute.xlu1 %4619 }
 0xf1a   : > { %v4618_v38 = vpop.permute.xlu0 %4617 }
 0xf1b   : > { %v4621_v0 = vsel %vm634_vm9, %v4616_v36, %v4618_v38  ;;  %v4622_v48 = vsel %vm634_vm9, %v4618_v38, %v4620_v59 }
 0xf1c   : > { %4843 = vmatprep.subr.bf16.mxu0 %v4622_v48 }
 0xf1d   : > { %v4700_v2 = vpop.permute.xlu1 %4699  ;;  %4844 = vmatpush1.bf16.msra.mxu0 %v4621_v0 }
 0xf1e   : > { %v4670_v49 = vpop.permute.xlu0 %4669 }
 0xf1f   : > { %v4675_v4 = vsel %vm699_vm11, %v4670_v49, %v4672_v13 }
 0xf21   : > { %v4648_v16 = vpop.permute.xlu1 %4647 }
 0xf22   : > { %v4651_v52 = vsel %vm674_vm10, %v4646_v33, %v4648_v16  ;;  %v4704_v39 = vpop.permute.xlu0 %4703  ;;  %v4652_v23 = vsel %vm674_vm10, %v4648_v16, %v4650_v45 }
 0xf23   : > { %4845 = vmatprep.subr.bf16.mxu0 %v4652_v23 }
 0xf24   : > { %4846 = vmatpush1.bf16.msra.mxu0 %v4651_v52 }
 0xf25   : > { %v4734_v57 = vpop.permute.xlu1 %4733  ;;  %4847 = vmatprep.subr.bf16.mxu0 %v4676_v27 }
 0xf26   : > { %v4730_v26 = vpop.permute.xlu0 %4729 }
 0xf28   : > { %4848 = vmatpush1.bf16.msra.mxu0 %v4675_v4 }
 0xf29   : > { %v4702_v47 = vpop.permute.xlu1 %4701 }
 0xf2a   : > { %v4705_v58 = vsel %vm739_vm12, %v4700_v2, %v4702_v47  ;;  %v4732_v42 = vpop.permute.xlu0 %4731  ;;  %v4706_v43 = vsel %vm739_vm12, %v4702_v47, %v4704_v39 }
 0xf2b   : > { %4849 = vmatprep.subr.bf16.mxu0 %v4706_v43  ;;  %v4736_v9 = vsel %vm779_vm13, %v4732_v42, %v4734_v57  ;;  %v4735_v29 = vsel %vm779_vm13, %v4730_v26, %v4732_v42 }
 0xf2c   : > { %4850 = vmatpush1.bf16.msra.mxu0 %v4705_v58 }
 0xf2d   : > { %v4756_v32 = vpop.permute.xlu1 %4755  ;;  %4851 = vmatprep.subr.bf16.mxu0 %v4736_v9 }
 0xf2e   : > { %v4758_v28 = vpop.permute.xlu0 %4757 }
 0xf2f   : > { %v4760_v1 = vsel %vm804_vm14, %v4756_v32, %v4758_v28 }
 0xf30   : > { %4852 = vmatpush1.bf16.msra.mxu0 %v4735_v29 }
 0xf31   : > { %v4754_v53 = vpop.permute.xlu1 %4753  ;;  %4853 = vmatprep.subr.bf16.mxu0 %v4760_v1 }
 0xf32   : > { %v4759_v35 = vsel %vm804_vm14, %v4754_v53, %v4756_v32  ;;  %v4786_v41 = vpop.permute.xlu0 %4785 }
 0xf34   : > { %4854 = vmatpush1.bf16.msra.mxu0 %v4759_v35 }
 0xf35   : > { %v4788_v6 = vpop.permute.xlu1 %4787 }
 0xf36   : > { %v4784_v55 = vpop.permute.xlu0 %4783  ;;  %v4790_v61 = vsel %vm843_vm15, %v4786_v41, %v4788_v6 }
 0xf37   : > { %v4789_v15 = vsel %vm843_vm15, %v4784_v55, %v4786_v41  ;;  %4855 = vmatprep.subr.bf16.mxu0 %v4790_v61 }
 0xf38   : > { %4856 = vmatpush1.bf16.msra.mxu0 %v4789_v15 }
 0xf3b   : > { %4872 = vmatmul.mubr.bf16.vlgmr.msra.gmra.mrb[24].mxu0 %v5406_v22 }
 0xf46   : > { %v4820_v3 = vpop.permute.xlu1 %4819 }
 0xf47   : > { %v4825_v5 = vpop.permute.xlu0 %4824 }
0x100e   : > { %v4873_v30 = vpop.f32.mrb[24].mxu0 }
0x100f   : > { %v4874_v60 = vadd.f32 %v4873_v30, %v4820_v3  ;;  %v4875_v54 = vpop.f32.mrb[25].mxu0 }
0x1010   : > { %v4876_v25 = vadd.f32 %v4875_v54, %v4820_v3  ;;  %v4877_v17 = vpop.f32.mrb[26].mxu0 }
0x1011   : > { %v4882_v46 = vmax.f32 %v4874_v60, 0.0  ;;  %v4878_v37 = vadd.f32 %v4877_v17, %v4825_v5  ;;  %v4879_v36 = vpop.f32.mrb[27].mxu0 }
0x1012   : > { %v4883_v12 = vmax.f32 %v4876_v25, 0.0  ;;  %v4880_v24 = vadd.f32 %v4879_v36, %v4825_v5 }
0x1013   : > { %4890 = vrot.lane.b32.xlu1 %v4882_v46, %s5423_s30  ;;  %v4884_v13 = vmax.f32 %v4878_v37, 0.0 }
0x1014   : > { %4892 = vrot.lane.b32.xlu0 %v4883_v12, %s5423_s30  ;;  %v4885_v11 = vmax.f32 %v4880_v24, 0.0  ;;  %v7573_v12 = vld [vmem:[%s7639_s13] sm:$0x77] }
0x1015   : > { %v5338_v24 = vcombine.high %v7573_v12, %v7573_v12 }
0x1017   : > { %4894 = vrot.lane.b32.xlu1 %v4884_v13, %s5423_s30  ;;  %5339 = vmatprep.mubr.msk.bf16.mxu1 %vm651_vm5, %v5338_v24 }
0x1018   : > { %4896 = vrot.lane.b32.xlu0 %v4885_v11, %s5423_s30 }
0x1085   : > { %v4891_v33 = vpop.permute.xlu1 %4890 }
0x1086   : > { %4906 = vst.msk [vmem:[#allocation2] sm:$0xff] %vm4557_vm0, %v4891_v33  ;;  %v4893_v45 = vpop.permute.xlu0 %4892 }
0x1087   : > { %v7465_v59 = vsel %vm534_vm1, %v4891_v33, %v4893_v45  ;;  %4908 = vst.msk [vmem:[#allocation2 + $0x10] sm:$0xff] %vm534_vm1, %v4893_v45 }
0x1088   : > { %4907 = vst [vmem:[#allocation2 + $0x8] sm:$0xff] %v7465_v59  ;;  %v4917_v2 = vmul.f32 %v7465_v59, %v5555_v14  ;;  %v5039_v37 = vmul.f32 %v7465_v59, %v5706_v10 }
0x1089   : > { %v4895_v38 = vpop.permute.xlu1 %4894 }
0x108a   : > { %4909 = vst.msk [vmem:[#allocation2 + $0x18] sm:$0xff] %vm4557_vm0, %v4895_v38  ;;  %v4897_v0 = vpop.permute.xlu0 %4896 }
0x108b   : > { %v7471_v48 = vsel %vm534_vm1, %v4895_v38, %v4897_v0  ;;  %4911 = vst.msk [vmem:[#allocation2 + $0x28] sm:$0xff] %vm534_vm1, %v4897_v0 }
0x108c   : > { %v4919_v49 = vmul.f32 %v7471_v48, %v5555_v14  ;;  %v4958_v35 = vmul.f32 %v7471_v48, %v5633_v44  ;;  %v5072_v46 = vmul.f32 %v7471_v48, %v5702_v7 }
0x108d   : > { %v7478_v52 = vld [vmem:[#allocation2] sm:$0xff] }
0x108e   : > { %v4921_v16 = vpack.c.bf16 %v4919_v49, %v4917_v2  ;;  %v7486_v27 = vld [vmem:[#allocation2 + $0x10] sm:$0xff]  ;;  %v4916_v26 = vmul.f32 %v7478_v52, %v5547_v8  ;;  %v4954_v42 = vmul.f32 %v7478_v52, %v5567_v21  ;;  %v5038_v61 = vmul.f32 %v7478_v52, %v5650_v50 }
0x108f   : > { %v4986_v28 = vmul.f32 %v7486_v27, %v5615_v40  ;;  %v4956_v41 = vmul.f32 %v7486_v27, %v5560_v18  ;;  %v5070_v5 = vmul.f32 %v7486_v27, %v5680_v62  ;;  %v5124_v45 = vmul.f32 %v7486_v27, %v5722_v19 }
0x1090   : > { %5180 = vmatprep.subr.bf16.mxu1 %v4921_v16  ;;  %v5122_v38 = vmul.f32 %v7478_v52, %v5726_v31 }
0x1091   : > { %v7480_v39 = vld [vmem:[#allocation2 + $0x18] sm:$0xff] }
0x1092   : > { %v7484_v23 = vpack.c.bf16 %v7480_v39, %v7478_v52  ;;  %v7488_v57 = vld [vmem:[#allocation2 + $0x28] sm:$0xff]  ;;  %v4918_v14 = vmul.f32 %v7480_v39, %v5547_v8  ;;  %v4957_v47 = vmul.f32 %v7480_v39, %v5567_v21  ;;  %v4931_v8 = vpack.c.bf16 %v7471_v48, %v7465_v59 }
0x1093   : > { %v7496_v4 = vpack.c.bf16 %v7488_v57, %v7486_v27  ;;  %v4987_v9 = vmul.f32 %v7480_v39, %v5565_v20  ;;  %v4989_v32 = vmul.f32 %v7488_v57, %v5615_v40  ;;  %v4984_v21 = vmul.f32 %v7478_v52, %v5565_v20 }
0x1094   : > { %4936 = vrot.lane.b32.xlu1 %v7484_v23, %s5427_s21  ;;  %v4920_v58 = vpack.c.bf16 %v4918_v14, %v4916_v26  ;;  %v4960_v43 = vpack.c.bf16 %v4957_v47, %v4954_v42  ;;  %v4959_v1 = vmul.f32 %v7488_v57, %v5560_v18  ;;  %v4955_v20 = vmul.f32 %v7465_v59, %v5633_v44 }
0x1095   : > { %4940 = vrot.lane.b32.xlu0 %v7496_v4, %s5427_s21  ;;  %v4990_v29 = vpack.c.bf16 %v4987_v9, %v4984_v21  ;;  %v4992_v53 = vpack.c.bf16 %v4989_v32, %v4986_v28  ;;  %v5041_v40 = vmul.f32 %v7480_v39, %v5650_v50  ;;  %v4988_v18 = vmul.f32 %v7471_v48, %v5664_v56 }
0x1096   : > { %5181 = vmatpush1.bf16.msra.mxu1 %v4920_v58  ;;  %v4962_v6 = vpack.c.bf16 %v4959_v1, %v4956_v41  ;;  %v4961_v55 = vpack.c.bf16 %v4958_v35, %v4955_v20  ;;  %v5043_v22 = vmul.f32 %v7488_v57, %v5652_v51  ;;  %v4985_v44 = vmul.f32 %v7465_v59, %v5664_v56 }
0x1097   : > { %v5044_v15 = vpack.c.bf16 %v5041_v40, %v5038_v61  ;;  %v5040_v50 = vmul.f32 %v7486_v27, %v5652_v51  ;;  %v5073_v30 = vmul.f32 %v7488_v57, %v5680_v62  ;;  %v5071_v54 = vmul.f32 %v7480_v39, %v5682_v63 }
0x1098   : > { %5024 = vrot.lane.b32.xlu1 %v7496_v4, %s5430_s25  ;;  %v4991_v3 = vpack.c.bf16 %v4988_v18, %v4985_v44  ;;  %v5068_v56 = vmul.f32 %v7478_v52, %v5682_v63  ;;  %v5042_v51 = vmul.f32 %v7471_v48, %v5706_v10  ;;  %v5069_v62 = vmul.f32 %v7465_v59, %v5702_v7 }
0x1099   : > { %4966 = vrot.lane.b32.xlu0 %v4960_v43, %s5428_s22  ;;  %v5046_v60 = vpack.c.bf16 %v5043_v22, %v5040_v50  ;;  %v5076_v25 = vpack.c.bf16 %v5073_v30, %v5070_v5  ;;  %v5126_v10 = vmul.f32 %v7471_v48, %v5733_v34  ;;  %v5123_v7 = vmul.f32 %v7465_v59, %v5733_v34  ;;  %v5165_v59 = vld [vmem:[%s7640_s14] sm:$0x1f] }
0x109a   : > { %v5074_v17 = vpack.c.bf16 %v5071_v54, %v5068_v56  ;;  %v5045_v36 = vpack.c.bf16 %v5042_v51, %v5039_v37  ;;  %v5075_v63 = vpack.c.bf16 %v5072_v46, %v5069_v62  ;;  %v5127_v13 = vmul.f32 %v7488_v57, %v5722_v19 }
0x109b   : > { %v5129_v11 = vpack.c.bf16 %v5126_v10, %v5123_v7  ;;  %v5125_v33 = vmul.f32 %v7480_v39, %v5726_v31 }
0x109c   : > { %4938 = vrot.lane.b32.xlu1 %v4931_v8, %s5427_s21  ;;  %v5130_v0 = vpack.c.bf16 %v5127_v13, %v5124_v45 }
0x109d   : > { %5022 = vrot.lane.b32.xlu0 %v4931_v8, %s5430_s25  ;;  %v5128_v34 = vpack.c.bf16 %v5125_v33, %v5122_v38 }
0x10a0   : > { %4996 = vrot.lane.b32.xlu1 %v4990_v29, %s5429_s23 }
0x10a1   : > { %5000 = vrot.lane.b32.xlu0 %v4992_v53, %s5429_s23 }
0x10a4   : > { %4970 = vrot.lane.b32.xlu1 %v4962_v6, %s5428_s22 }
0x10a5   : > { %4968 = vrot.lane.b32.xlu0 %v4961_v55, %s5428_s22 }
0x10a8   : > { %5050 = vrot.lane.b32.xlu1 %v5044_v15, %s5431_s26 }
0x10a9   : > { %5020 = vrot.lane.b32.xlu0 %v7484_v23, %s5430_s25  ;;  %s5342_s25 = sshll.u32 %s7646_s19, 4 }
0x10ac   : > { %4998 = vrot.lane.b32.xlu1 %v4991_v3, %s5429_s23 }
0x10ad   : > { %5054 = vrot.lane.b32.xlu0 %v5046_v60, %s5431_s26  ;;  %v5337_v60 = vcombine.low %v7573_v12, %v7573_v12 }
0x10b0   : > { %5084 = vrot.lane.b32.xlu1 %v5076_v25, %s5432_s28 }
0x10b1   : > { %5080 = vrot.lane.b32.xlu0 %v5074_v17, %s5432_s28 }
0x10b4   : > { %5052 = vrot.lane.b32.xlu1 %v5045_v36, %s5431_s26 }
0x10b5   : > { %5082 = vrot.lane.b32.xlu0 %v5075_v63, %s5432_s28 }
0x10b8   : > { %5106 = vrot.lane.b32.xlu1 %v4931_v8, %s5433_s17 }
0x10b9   : > { %5108 = vrot.lane.b32.xlu0 %v7496_v4, %s5433_s17 }
0x10bc   : > { %5104 = vrot.lane.b32.xlu1 %v7484_v23, %s5433_s17  ;;  %s514_s17 = scalar_lea.vmem %s7641_s15, %s5342_s25 }
0x10bd   : > { %5136 = vrot.lane.b32.xlu0 %v5129_v11, %s5435_s20 }
0x10c0   : > { %5138 = vrot.lane.b32.xlu1 %v5130_v0, %s5435_s20 }
0x10c1   : > { %5134 = vrot.lane.b32.xlu0 %v5128_v34, %s5435_s20 }
0x10c4   : > { %5168 = vperm.xlu1 %5373, %v5165_v59  }
0x1106   : > { %v4937_v48 = vpop.permute.xlu1 %4936 }
0x1107   : > { %v4941_v2 = vpop.permute.xlu0 %4940 }
0x110a   : > { %v5025_v49 = vpop.permute.xlu1 %5024 }
0x110b   : > { %v4967_v19 = vpop.permute.xlu0 %4966 }
0x110e   : > { %v4939_v16 = vpop.permute.xlu1 %4938 }
0x110f   : > { %v4942_v39 = vsel %vm594_vm8, %v4937_v48, %v4939_v16  ;;  %v5023_v23 = vpop.permute.xlu0 %5022  ;;  %v4943_v31 = vsel %vm594_vm8, %v4939_v16, %v4941_v2 }
0x1110   : > { %5182 = vmatprep.subr.bf16.mxu1 %v4943_v31  ;;  %v5027_v32 = vsel %vm699_vm11, %v5023_v23, %v5025_v49 }
0x1111   : > { %5183 = vmatpush1.bf16.msra.mxu1 %v4942_v39 }
0x1112   : > { %v4997_v52 = vpop.permute.xlu1 %4996 }
0x1113   : > { %v5001_v27 = vpop.permute.xlu0 %5000 }
0x1116   : > { %v4971_v57 = vpop.permute.xlu1 %4970 }
0x1117   : > { %v4969_v26 = vpop.permute.xlu0 %4968 }
0x1118   : > { %v4972_v14 = vsel %vm634_vm9, %v4967_v19, %v4969_v26  ;;  %v4973_v4 = vsel %vm634_vm9, %v4969_v26, %v4971_v57 }
0x1119   : > { %5184 = vmatprep.subr.bf16.mxu1 %v4973_v4 }
0x111a   : > { %v5051_v47 = vpop.permute.xlu1 %5050  ;;  %5185 = vmatpush1.bf16.msra.mxu1 %v4972_v14 }
0x111b   : > { %v5021_v58 = vpop.permute.xlu0 %5020 }
0x111c   : > { %v5026_v29 = vsel %vm699_vm11, %v5021_v58, %v5023_v23 }
0x111e   : > { %v4999_v42 = vpop.permute.xlu1 %4998 }
0x111f   : > { %v5002_v43 = vsel %vm674_vm10, %v4997_v52, %v4999_v42  ;;  %v5055_v8 = vpop.permute.xlu0 %5054  ;;  %v5003_v9 = vsel %vm674_vm10, %v4999_v42, %v5001_v27 }
0x1120   : > { %5186 = vmatprep.subr.bf16.mxu1 %v5003_v9 }
0x1121   : > { %5187 = vmatpush1.bf16.msra.mxu1 %v5002_v43 }
0x1122   : > { %v5085_v21 = vpop.permute.xlu1 %5084  ;;  %5188 = vmatprep.subr.bf16.mxu1 %v5027_v32 }
0x1123   : > { %v5081_v28 = vpop.permute.xlu0 %5080 }
0x1125   : > { %5189 = vmatpush1.bf16.msra.mxu1 %v5026_v29 }
0x1126   : > { %v5053_v1 = vpop.permute.xlu1 %5052 }
0x1127   : > { %v5056_v53 = vsel %vm739_vm12, %v5051_v47, %v5053_v1  ;;  %v5083_v35 = vpop.permute.xlu0 %5082  ;;  %v5057_v41 = vsel %vm739_vm12, %v5053_v1, %v5055_v8 }
0x1128   : > { %5190 = vmatprep.subr.bf16.mxu1 %v5057_v41  ;;  %v5087_v20 = vsel %vm779_vm13, %v5083_v35, %v5085_v21  ;;  %v5086_v55 = vsel %vm779_vm13, %v5081_v28, %v5083_v35 }
0x1129   : > { %5191 = vmatpush1.bf16.msra.mxu1 %v5056_v53 }
0x112a   : > { %v5107_v6 = vpop.permute.xlu1 %5106  ;;  %5192 = vmatprep.subr.bf16.mxu1 %v5087_v20 }
0x112b   : > { %v5109_v40 = vpop.permute.xlu0 %5108 }
0x112c   : > { %v5111_v61 = vsel %vm804_vm14, %v5107_v6, %v5109_v40 }
0x112d   : > { %5193 = vmatpush1.bf16.msra.mxu1 %v5086_v55 }
0x112e   : > { %v5105_v15 = vpop.permute.xlu1 %5104  ;;  %5194 = vmatprep.subr.bf16.mxu1 %v5111_v61 }
0x112f   : > { %v5110_v18 = vsel %vm804_vm14, %v5105_v15, %v5107_v6  ;;  %v5137_v22 = vpop.permute.xlu0 %5136 }
0x1131   : > { %5195 = vmatpush1.bf16.msra.mxu1 %v5110_v18 }
0x1132   : > { %v5139_v44 = vpop.permute.xlu1 %5138 }
0x1133   : > { %v5135_v50 = vpop.permute.xlu0 %5134  ;;  %v5141_v3 = vsel %vm843_vm15, %v5137_v22, %v5139_v44 }
0x1134   : > { %v5140_v30 = vsel %vm843_vm15, %v5135_v50, %v5137_v22  ;;  %5196 = vmatprep.subr.bf16.mxu1 %v5141_v3 }
0x1135   : > { %5197 = vmatpush1.bf16.msra.mxu1 %v5140_v30 }
0x1138   : > { %5213 = vmatmul.mubr.bf16.vlgmr.msra.gmra.mrb[24].mxu1 %v5337_v60 }
0x1143   : > { %v5169_v54 = vpop.permute.xlu1 %5168 }
0x120b   : > { %v5214_v5 = vpop.f32.mrb[24].mxu1 }
0x120c   : > { %v5215_v56 = vadd.f32 %v5214_v5, %v5169_v54  ;;  %v5216_v25 = vpop.f32.mrb[25].mxu1 }
0x120d   : > { %v5217_v51 = vadd.f32 %v5216_v25, %v5169_v54  ;;  %v5218_v17 = vpop.f32.mrb[26].mxu1 }
0x120e   : > { %5221 = vst [vmem:[%s514_s17] sm:$0x1f] %v5215_v56  ;;  %v5219_v46 = vpop.f32.mrb[27].mxu1 }
0x120f   : > { %5222 = vst [vmem:[%s514_s17 + $0x8] sm:$0x1f] %v5217_v51 }
0x1210 PF: > { %s25_s18 = sadd.s32 1, %s5418_s18  }
0x1211   : > { %p22_p4 = scmp.ge.s32.totalorder %s25_s18, 4  }
0x1213   :  { %24 = sbr.rel (!%p22_p4) target bundleno = 1 (0x1), region = 118 }

</bundles_post_ra>
